<compile_context>
chip_gen: v7x
topology: tpu7x:2x2x1
jax: 0.10.0
libtpu: 0.0.40
codegen_flags: <defaults>
</compile_context>

<pallas_src>
import functools

import jax
import jax.numpy as jnp
from jax.experimental import pallas as pl
from jax.experimental.pallas import tpu as pltpu


def _round_up(x, m):
    return ((x + m - 1) // m) * m


# ----------------------------------------------------------------------------
# Fused kernel: embeddings + encoder LSTM + decoder LSTM + hidden2tag + log_softmax
# ----------------------------------------------------------------------------
def seq2seq_kernel(src_ids_ref, tgt_ids_ref,
                   e_emb_ref, d_emb_ref,
                   wih_ref, bih_ref,
                   e_whh_ref, d_whh_ref,
                   w_ref, b_ref,
                   out_ref, *, batch, vocab_out):
    """src_ids_ref: (Ts*B, 1) int32 time-major source token ids.
       tgt_ids_ref: (Tt*B, 1) int32 time-major target token ids.
       e_emb_ref / d_emb_ref: (Vpad, E) zero-row-padded embedding tables.
       wih_ref: (E, 8*Hp)  = [enc W_ih | dec W_ih], gate blocks 128-lane padded.
       bih_ref: (1, 8*Hp)  = [enc b    | dec b   ] (b_ih + b_hh combined).
       e_whh_ref / d_whh_ref: (Hp, 4*Hp) gate-padded recurrent weights.
       w_ref: (Hp, Vp), b_ref: (1, Vp) hidden2tag (vocab lane-padded).
       out_ref: (Tt*B, Vp) log-probs."""
    B = batch
    NsB = src_ids_ref.shape[0]
    NtB = tgt_ids_ref.shape[0]
    Ts = NsB // B
    Tt = NtB // B
    Hp = e_whh_ref.shape[0]
    G = 4 * Hp
    Vs = e_emb_ref.shape[0]
    Vt = d_emb_ref.shape[0]
    Vp = w_ref.shape[1]

    # --- Embedding lookups as one-hot @ table on the MXU (exact: padded rows
    #     are zero and the one-hot has a single 1.0 per row).
    src_oh = jnp.where(
        src_ids_ref[...] == jax.lax.broadcasted_iota(jnp.int32, (NsB, Vs), 1),
        1.0, 0.0).astype(jnp.float32)
    tgt_oh = jnp.where(
        tgt_ids_ref[...] == jax.lax.broadcasted_iota(jnp.int32, (NtB, Vt), 1),
        1.0, 0.0).astype(jnp.float32)
    x_src = jnp.dot(src_oh, e_emb_ref[...], preferred_element_type=jnp.float32)
    x_tgt = jnp.dot(tgt_oh, d_emb_ref[...], preferred_element_type=jnp.float32)

    # --- Hoisted input projections, fused into ONE full-width MXU matmul.
    #     Row split (NsB=16) is sublane aligned; column split (4*Hp=512) is
    #     lane aligned, so the sub-block extraction is cheap.
    xy = jnp.concatenate([x_src, x_tgt], axis=0)                  # (NsB+NtB, E)
    gx = jnp.dot(xy, wih_ref[...], preferred_element_type=jnp.float32) + bih_ref[...]
    gx_enc = gx[:NsB, :G]
    gx_dec = gx[NsB:, G:]

    e_whh = e_whh_ref[...]
    d_whh = d_whh_ref[...]
    w = w_ref[...]
    b = b_ref[...]

    def lstm_step(gx_t, h, c, whh):
        # PyTorch gate order i, f, g, o; gate blocks are 128-lane aligned so
        # every slice below is a whole-vreg slice (no cross-lane relayouts).
        gates = gx_t + jnp.dot(h, whh, preferred_element_type=jnp.float32)
        i = jax.nn.sigmoid(gates[:, 0 * Hp:1 * Hp])
        f = jax.nn.sigmoid(gates[:, 1 * Hp:2 * Hp])
        g = jnp.tanh(gates[:, 2 * Hp:3 * Hp])
        o = jax.nn.sigmoid(gates[:, 3 * Hp:4 * Hp])
        c_new = f * c + i * g
        h_new = o * jnp.tanh(c_new)
        return h_new, c_new

    # --- Encoder recurrence: fully unrolled (Ts static), h/c live in vregs.
    h = jnp.zeros((B, Hp), jnp.float32)
    c = jnp.zeros((B, Hp), jnp.float32)
    for t in range(Ts):
        h, c = lstm_step(gx_enc[t * B:(t + 1) * B, :], h, c, e_whh)

    # --- Decoder recurrence (init from encoder final state).  The hidden2tag
    #     matmul is issued per step so the MXU work hides under the otherwise
    #     EUP/VPU-bound serial chain; results stay in vregs (no VMEM scratch,
    #     no masked partial stores).
    logits_rows = []
    for t in range(Tt):
        h, c = lstm_step(gx_dec[t * B:(t + 1) * B, :], h, c, d_whh)
        logits_rows.append(
            jnp.dot(h, w, preferred_element_type=jnp.float32) + b)

    logits = jnp.concatenate(logits_rows, axis=0)                 # (NtB, Vp)

    # --- Mask padded vocab lanes in-kernel so the output is self-consistent,
    #     then log_softmax and a single unmasked full-lane store.
    lane = jax.lax.broadcasted_iota(jnp.int32, (NtB, Vp), 1)
    logits = jnp.where(lane < vocab_out, logits, -1e30)
    m = jnp.max(logits, axis=-1, keepdims=True)
    shifted = logits - m
    lse = jnp.log(jnp.sum(jnp.exp(shifted), axis=-1, keepdims=True))
    out_ref[...] = shifted - lse


# ----------------------------------------------------------------------------
# pallas_call wrapper
# ----------------------------------------------------------------------------
def run_seq2seq_fused(src_ids, tgt_ids, enc_emb, dec_emb, wih_both, b_both,
                      enc_whh, dec_whh, w_p, b_p, *, batch, vocab_out):
    NsB = src_ids.shape[0]
    NtB = tgt_ids.shape[0]
    Vs, E = enc_emb.shape
    Vt = dec_emb.shape[0]
    Hp = enc_whh.shape[0]
    G2 = wih_both.shape[1]
    Vp = w_p.shape[1]

    def full(shape):
        return pl.BlockSpec(shape, lambda i: (0,) * len(shape))

    return pl.pallas_call(
        functools.partial(seq2seq_kernel, batch=batch, vocab_out=vocab_out),
        out_shape=jax.ShapeDtypeStruct((NtB, Vp), jnp.float32),
        grid=(1,),
        in_specs=[
            full((NsB, 1)), full((NtB, 1)),
            full((Vs, E)), full((Vt, E)),
            full((E, G2)), full((1, G2)),
            full((Hp, 4 * Hp)), full((Hp, 4 * Hp)),
            full((Hp, Vp)), full((1, Vp)),
        ],
        out_specs=full((NtB, Vp)),
        compiler_params=pltpu.CompilerParams(
            dimension_semantics=("arbitrary",)),
    )(src_ids, tgt_ids, enc_emb, dec_emb, wih_both, b_both,
      enc_whh, dec_whh, w_p, b_p)


# ----------------------------------------------------------------------------
# One-time parameter preparation (gate alignment, vocab/row padding, fusion)
# ----------------------------------------------------------------------------
def prepare_params(params):
    E = params["enc_embedding"].shape[1]
    H = params["enc_whh"].shape[0]
    V_src = params["enc_embedding"].shape[0]
    V_tgt = params["dec_embedding"].shape[0]
    Hp = _round_up(H, 128)          # 128-lane-aligned gates
    Vp = _round_up(V_tgt, 128)      # lane-dense output vocab
    Vs_p = _round_up(V_src, 128)    # lane-dense one-hot width
    Vt_p = _round_up(V_tgt, 128)

    def pad_gate_cols(wm):
        # (..., 4H) -> (..., 4Hp): each gate block zero-padded to Hp lanes.
        parts = [
            jnp.pad(wm[..., k * H:(k + 1) * H],
                    [(0, 0)] * (wm.ndim - 1) + [(0, Hp - H)])
            for k in range(4)
        ]
        return jnp.concatenate(parts, axis=-1)

    enc_wih_p = pad_gate_cols(params["enc_wih"])                        # (E, 4Hp)
    dec_wih_p = pad_gate_cols(params["dec_wih"])
    enc_whh_p = jnp.pad(pad_gate_cols(params["enc_whh"]), ((0, Hp - H), (0, 0)))
    dec_whh_p = jnp.pad(pad_gate_cols(params["dec_whh"]), ((0, Hp - H), (0, 0)))
    enc_b_p = pad_gate_cols(params["enc_b"])                            # (1, 4Hp)
    dec_b_p = pad_gate_cols(params["dec_b"])

    return {
        "enc_emb": jnp.pad(params["enc_embedding"], ((0, Vs_p - V_src), (0, 0))),
        "dec_emb": jnp.pad(params["dec_embedding"], ((0, Vt_p - V_tgt), (0, 0))),
        "wih_both": jnp.concatenate([enc_wih_p, dec_wih_p], axis=1),    # (E, 8Hp)
        "b_both": jnp.concatenate([enc_b_p, dec_b_p], axis=1),          # (1, 8Hp)
        "enc_whh": enc_whh_p,
        "dec_whh": dec_whh_p,
        "w": jnp.pad(params["h2t_w"], ((0, Hp - H), (0, Vp - V_tgt))),  # (Hp, Vp)
        "b": jnp.pad(params["h2t_b"], ((0, 0), (0, Vp - V_tgt))),       # (1, Vp)
    }


def make_seq2seq_forward(params):
    prepped = prepare_params(params)
    V = params["h2t_w"].shape[1]

    @jax.jit
    def forward(prepped, source_ids, target_ids):
        """source_ids: (B, Ts) int32, target_ids: (B, Tt) int32 -> (B, Tt, V)."""
        B, Ts = source_ids.shape
        _, Tt = target_ids.shape
        # Tiny int32 layout glue only (no gathers, no pads) around the kernel.
        src_ids = source_ids.T.reshape(Ts * B, 1).astype(jnp.int32)
        tgt_ids = target_ids.T.reshape(Tt * B, 1).astype(jnp.int32)
        logp2d = run_seq2seq_fused(
            src_ids, tgt_ids,
            prepped["enc_emb"], prepped["dec_emb"],
            prepped["wih_both"], prepped["b_both"],
            prepped["enc_whh"], prepped["dec_whh"],
            prepped["w"], prepped["b"],
            batch=B, vocab_out=V)                                # (Tt*B, Vp)
        Vp = logp2d.shape[1]
        logp = logp2d.reshape(Tt, B, Vp)[:, :, :V]
        return jnp.transpose(logp, (1, 0, 2))                    # (B, Tt, V)

    return functools.partial(forward, prepped)


# ----------------------------------------------------------------------------
# Pure-JAX reference (for correctness check)
# ----------------------------------------------------------------------------
def _lstm_cell_ref(x, h, c, wih, whh, b):
    gates = (jnp.dot(x, wih, preferred_element_type=jnp.float32)
             + jnp.dot(h, whh, preferred_element_type=jnp.float32) + b)
    H = h.shape[-1]
    i = jax.nn.sigmoid(gates[:, 0 * H:1 * H])
    f = jax.nn.sigmoid(gates[:, 1 * H:2 * H])
    g = jnp.tanh(gates[:, 2 * H:3 * H])
    o = jax.nn.sigmoid(gates[:, 3 * H:4 * H])
    c_new = f * c + i * g
    return o * jnp.tanh(c_new), c_new


def _lstm_scan_ref(x_tbe, wih, whh, b, h0, c0):
    def step(carry, x_t):
        h, c = carry
        h, c = _lstm_cell_ref(x_t, h, c, wih, whh, b)
        return (h, c), h
    (hN, cN), outs = jax.lax.scan(step, (h0, c0), x_tbe)
    return outs, hN, cN


def seq2seq_forward_ref(params, source_ids, target_ids):
    B = source_ids.shape[0]
    H = params["enc_whh"].shape[0]
    z = jnp.zeros((B, H), jnp.float32)
    src_emb_tm = params["enc_embedding"][source_ids.T]
    _, hN, cN = _lstm_scan_ref(src_emb_tm, params["enc_wih"], params["enc_whh"],
                               params["enc_b"], z, z)
    tgt_emb_tm = params["dec_embedding"][target_ids.T]
    dec_out, _, _ = _lstm_scan_ref(tgt_emb_tm, params["dec_wih"], params["dec_whh"],
                                   params["dec_b"], hN, cN)
    logits = jnp.einsum("tbh,hv->tbv", dec_out, params["h2t_w"]) + params["h2t_b"]
    logp = jax.nn.log_softmax(logits, axis=-1)
    return jnp.transpose(logp, (1, 0, 2))


# ----------------------------------------------------------------------------
# Main
# ----------------------------------------------------------------------------
if __name__ == "__main__":
    # Small shapes consistent with the module's forward.
    B = 2            # batch (TODO(synk): pad/batch to 8 rows upstream to fill sublanes)
    T_SRC = 8        # source sequence length
    T_TGT = 8        # target sequence length
    E = 32           # embedding_size
    H = 32           # lstm_hidden_size
    V_SRC = 20       # len(source_dictionary)
    V_TGT = 32       # len(target_dictionary)

    key = jax.random.PRNGKey(0)
    ks = jax.random.split(key, 12)
    s = 1.0 / jnp.sqrt(H)

    params = {
        "enc_embedding": jax.random.normal(ks[0], (V_SRC, E), jnp.float32),
        "dec_embedding": jax.random.normal(ks[1], (V_TGT, E), jnp.float32),
        # LSTM weights stored transposed: x @ (E,4H), h @ (H,4H); gate order i,f,g,o.
        "enc_wih": jax.random.uniform(ks[2], (E, 4 * H), jnp.float32, -s, s),
        "enc_whh": jax.random.uniform(ks[3], (H, 4 * H), jnp.float32, -s, s),
        "enc_b":   jax.random.uniform(ks[4], (1, 4 * H), jnp.float32, -s, s),  # b_ih+b_hh
        "dec_wih": jax.random.uniform(ks[5], (E, 4 * H), jnp.float32, -s, s),
        "dec_whh": jax.random.uniform(ks[6], (H, 4 * H), jnp.float32, -s, s),
        "dec_b":   jax.random.uniform(ks[7], (1, 4 * H), jnp.float32, -s, s),
        "h2t_w":   jax.random.uniform(ks[8], (H, V_TGT), jnp.float32, -s, s),
        "h2t_b":   jax.random.uniform(ks[9], (1, V_TGT), jnp.float32, -s, s),
    }

    source_ids = jax.random.randint(ks[10], (B, T_SRC), 0, V_SRC, jnp.int32)
    target_ids = jax.random.randint(ks[11], (B, T_TGT), 0, V_TGT, jnp.int32)

    seq2seq_forward = make_seq2seq_forward(params)

    log_probs = seq2seq_forward(source_ids, target_ids)
    log_probs = jax.block_until_ready(log_probs)

    assert log_probs.shape == (B, T_TGT, V_TGT)
    # rows of log_softmax should (exp-)sum to 1
    row_sums = jnp.sum(jnp.exp(log_probs), axis=-1)
    assert jnp.allclose(row_sums, 1.0, atol=1e-4)

    ref = jax.block_until_ready(seq2seq_forward_ref(params, source_ids, target_ids))
    assert jnp.allclose(log_probs, ref, atol=1e-3, rtol=1e-3), "mismatch vs JAX reference"

    print("KERNEL_OK")
</pallas_src>

<mosaic_0001>
module attributes {stable_mosaic.version = 11 : i64} {
  func.func @seq2seq_kernel(%arg0: i32, %arg1: memref<16x1xi32, #tpu.memory_space<vmem>>, %arg2: memref<16x1xi32, #tpu.memory_space<vmem>>, %arg3: memref<128x32xf32, #tpu.memory_space<vmem>>, %arg4: memref<128x32xf32, #tpu.memory_space<vmem>>, %arg5: memref<32x1024xf32, #tpu.memory_space<vmem>>, %arg6: memref<1x1024xf32, #tpu.memory_space<vmem>>, %arg7: memref<128x512xf32, #tpu.memory_space<vmem>>, %arg8: memref<128x512xf32, #tpu.memory_space<vmem>>, %arg9: memref<128x128xf32, #tpu.memory_space<vmem>>, %arg10: memref<1x128xf32, #tpu.memory_space<vmem>>, %arg11: memref<16x128xf32, #tpu.memory_space<vmem>>) attributes {dimension_semantics = [#tpu.dimension_semantics<arbitrary>], iteration_bounds = array<i64: 1>, scalar_prefetch = 0 : i64, scratch_operands = 0 : i64, tpu.core_type = #tpu.core_type<tc>, window_params = [{pipeline_mode = #tpu.pipeline_mode<synchronous>, transform_indices = @transform_0, window_bounds = array<i64: 16, 1>}, {pipeline_mode = #tpu.pipeline_mode<synchronous>, transform_indices = @transform_1, window_bounds = array<i64: 16, 1>}, {pipeline_mode = #tpu.pipeline_mode<synchronous>, transform_indices = @transform_2, window_bounds = array<i64: 128, 32>}, {pipeline_mode = #tpu.pipeline_mode<synchronous>, transform_indices = @transform_3, window_bounds = array<i64: 128, 32>}, {pipeline_mode = #tpu.pipeline_mode<synchronous>, transform_indices = @transform_4, window_bounds = array<i64: 32, 1024>}, {pipeline_mode = #tpu.pipeline_mode<synchronous>, transform_indices = @transform_5, window_bounds = array<i64: 1, 1024>}, {pipeline_mode = #tpu.pipeline_mode<synchronous>, transform_indices = @transform_6, window_bounds = array<i64: 128, 512>}, {pipeline_mode = #tpu.pipeline_mode<synchronous>, transform_indices = @transform_7, window_bounds = array<i64: 128, 512>}, {pipeline_mode = #tpu.pipeline_mode<synchronous>, transform_indices = @transform_8, window_bounds = array<i64: 128, 128>}, {pipeline_mode = #tpu.pipeline_mode<synchronous>, transform_indices = @transform_9, window_bounds = array<i64: 1, 128>}, {pipeline_mode = #tpu.pipeline_mode<synchronous>, transform_indices = @transform_10, window_bounds = array<i64: 16, 128>}]} {
    %c0 = arith.constant 0 : index
    %c0_0 = arith.constant 0 : index
    %0 = vector.load %arg1[%c0, %c0_0] : memref<16x1xi32, #tpu.memory_space<vmem>>, vector<16x1xi32>
    %1 = tpu.iota {dimensions = array<i32: 1>} : vector<16x128xi32>
    %2 = vector.broadcast %0 : vector<16x1xi32> to vector<16x128xi32>
    %3 = arith.cmpi eq, %2, %1 : vector<16x128xi32>
    %cst = arith.constant 1.000000e+00 : f32
    %cst_1 = arith.constant 0.000000e+00 : f32
    %4 = vector.broadcast %cst : f32 to vector<16x128xf32>
    %5 = vector.broadcast %cst_1 : f32 to vector<16x128xf32>
    %6 = arith.select %3, %4, %5 : vector<16x128xi1>, vector<16x128xf32>
    %c0_2 = arith.constant 0 : index
    %c0_3 = arith.constant 0 : index
    %7 = vector.load %arg2[%c0_2, %c0_3] : memref<16x1xi32, #tpu.memory_space<vmem>>, vector<16x1xi32>
    %8 = tpu.iota {dimensions = array<i32: 1>} : vector<16x128xi32>
    %9 = vector.broadcast %7 : vector<16x1xi32> to vector<16x128xi32>
    %10 = arith.cmpi eq, %9, %8 : vector<16x128xi32>
    %cst_4 = arith.constant 1.000000e+00 : f32
    %cst_5 = arith.constant 0.000000e+00 : f32
    %11 = vector.broadcast %cst_4 : f32 to vector<16x128xf32>
    %12 = vector.broadcast %cst_5 : f32 to vector<16x128xf32>
    %13 = arith.select %10, %11, %12 : vector<16x128xi1>, vector<16x128xf32>
    %c0_6 = arith.constant 0 : index
    %c0_7 = arith.constant 0 : index
    %14 = vector.load %arg3[%c0_6, %c0_7] : memref<128x32xf32, #tpu.memory_space<vmem>>, vector<128x32xf32>
    %cst_8 = arith.constant dense<0.000000e+00> : vector<16x32xf32>
    %15 = tpu.matmul %6, %14, %cst_8 {dimension_numbers = #tpu.dot_dimension_numbers<[1], [0], [0], [1], [0, 0, 1, 1], [], []>} : vector<16x128xf32>, vector<128x32xf32>, vector<16x32xf32> -> vector<16x32xf32>
    %c0_9 = arith.constant 0 : index
    %c0_10 = arith.constant 0 : index
    %16 = vector.load %arg4[%c0_9, %c0_10] : memref<128x32xf32, #tpu.memory_space<vmem>>, vector<128x32xf32>
    %cst_11 = arith.constant dense<0.000000e+00> : vector<16x32xf32>
    %17 = tpu.matmul %13, %16, %cst_11 {dimension_numbers = #tpu.dot_dimension_numbers<[1], [0], [0], [1], [0, 0, 1, 1], [], []>} : vector<16x128xf32>, vector<128x32xf32>, vector<16x32xf32> -> vector<16x32xf32>
    %18 = tpu.concatenate %15, %17 in 0 : vector<16x32xf32>, vector<16x32xf32> -> vector<32x32xf32>
    %c0_12 = arith.constant 0 : index
    %c0_13 = arith.constant 0 : index
    %19 = vector.load %arg5[%c0_12, %c0_13] : memref<32x1024xf32, #tpu.memory_space<vmem>>, vector<32x1024xf32>
    %cst_14 = arith.constant dense<0.000000e+00> : vector<32x1024xf32>
    %20 = tpu.matmul %18, %19, %cst_14 {dimension_numbers = #tpu.dot_dimension_numbers<[1], [0], [0], [1], [0, 0, 1, 1], [], []>} : vector<32x32xf32>, vector<32x1024xf32>, vector<32x1024xf32> -> vector<32x1024xf32>
    %c0_15 = arith.constant 0 : index
    %c0_16 = arith.constant 0 : index
    %21 = vector.load %arg6[%c0_15, %c0_16] : memref<1x1024xf32, #tpu.memory_space<vmem>>, vector<1x1024xf32>
    %22 = vector.broadcast %21 : vector<1x1024xf32> to vector<32x1024xf32>
    %23 = arith.addf %20, %22 : vector<32x1024xf32>
    %24 = vector.extract_strided_slice %23 {offsets = [0, 0], sizes = [16, 512], strides = [1, 1]} : vector<32x1024xf32> to vector<16x512xf32>
    %25 = vector.extract_strided_slice %23 {offsets = [16, 512], sizes = [16, 512], strides = [1, 1]} : vector<32x1024xf32> to vector<16x512xf32>
    %c0_17 = arith.constant 0 : index
    %c0_18 = arith.constant 0 : index
    %26 = vector.load %arg7[%c0_17, %c0_18] : memref<128x512xf32, #tpu.memory_space<vmem>>, vector<128x512xf32>
    %c0_19 = arith.constant 0 : index
    %c0_20 = arith.constant 0 : index
    %27 = vector.load %arg8[%c0_19, %c0_20] : memref<128x512xf32, #tpu.memory_space<vmem>>, vector<128x512xf32>
    %c0_21 = arith.constant 0 : index
    %c0_22 = arith.constant 0 : index
    %28 = vector.load %arg9[%c0_21, %c0_22] : memref<128x128xf32, #tpu.memory_space<vmem>>, vector<128x128xf32>
    %c0_23 = arith.constant 0 : index
    %c0_24 = arith.constant 0 : index
    %29 = vector.load %arg10[%c0_23, %c0_24] : memref<1x128xf32, #tpu.memory_space<vmem>>, vector<1x128xf32>
    %cst_25 = arith.constant 0.000000e+00 : f32
    %30 = vector.broadcast %cst_25 : f32 to vector<2x128xf32>
    %cst_26 = arith.constant 0.000000e+00 : f32
    %31 = vector.broadcast %cst_26 : f32 to vector<2x128xf32>
    %32 = vector.extract_strided_slice %24 {offsets = [0, 0], sizes = [2, 512], strides = [1, 1]} : vector<16x512xf32> to vector<2x512xf32>
    %cst_27 = arith.constant dense<0.000000e+00> : vector<2x512xf32>
    %33 = tpu.matmul %30, %26, %cst_27 {dimension_numbers = #tpu.dot_dimension_numbers<[1], [0], [0], [1], [0, 0, 1, 1], [], []>} : vector<2x128xf32>, vector<128x512xf32>, vector<2x512xf32> -> vector<2x512xf32>
    %34 = arith.addf %32, %33 : vector<2x512xf32>
    %35 = vector.extract_strided_slice %34 {offsets = [0, 0], sizes = [2, 128], strides = [1, 1]} : vector<2x512xf32> to vector<2x128xf32>
    %36 = arith.negf %35 : vector<2x128xf32>
    %37 = math.exp %36 : vector<2x128xf32>
    %cst_28 = arith.constant 1.000000e+00 : f32
    %38 = vector.broadcast %cst_28 : f32 to vector<2x128xf32>
    %39 = arith.addf %38, %37 : vector<2x128xf32>
    %40 = arith.divf %38, %39 : vector<2x128xf32>
    %41 = vector.extract_strided_slice %34 {offsets = [0, 128], sizes = [2, 128], strides = [1, 1]} : vector<2x512xf32> to vector<2x128xf32>
    %42 = arith.negf %41 : vector<2x128xf32>
    %43 = math.exp %42 : vector<2x128xf32>
    %cst_29 = arith.constant 1.000000e+00 : f32
    %44 = vector.broadcast %cst_29 : f32 to vector<2x128xf32>
    %45 = arith.addf %44, %43 : vector<2x128xf32>
    %46 = arith.divf %44, %45 : vector<2x128xf32>
    %47 = vector.extract_strided_slice %34 {offsets = [0, 256], sizes = [2, 128], strides = [1, 1]} : vector<2x512xf32> to vector<2x128xf32>
    %48 = math.tanh %47 : vector<2x128xf32>
    %49 = vector.extract_strided_slice %34 {offsets = [0, 384], sizes = [2, 128], strides = [1, 1]} : vector<2x512xf32> to vector<2x128xf32>
    %50 = arith.negf %49 : vector<2x128xf32>
    %51 = math.exp %50 : vector<2x128xf32>
    %cst_30 = arith.constant 1.000000e+00 : f32
    %52 = vector.broadcast %cst_30 : f32 to vector<2x128xf32>
    %53 = arith.addf %52, %51 : vector<2x128xf32>
    %54 = arith.divf %52, %53 : vector<2x128xf32>
    %55 = arith.mulf %46, %31 : vector<2x128xf32>
    %56 = arith.mulf %40, %48 : vector<2x128xf32>
    %57 = arith.addf %55, %56 : vector<2x128xf32>
    %58 = math.tanh %57 : vector<2x128xf32>
    %59 = arith.mulf %54, %58 : vector<2x128xf32>
    %60 = vector.extract_strided_slice %24 {offsets = [2, 0], sizes = [2, 512], strides = [1, 1]} : vector<16x512xf32> to vector<2x512xf32>
    %cst_31 = arith.constant dense<0.000000e+00> : vector<2x512xf32>
    %61 = tpu.matmul %59, %26, %cst_31 {dimension_numbers = #tpu.dot_dimension_numbers<[1], [0], [0], [1], [0, 0, 1, 1], [], []>} : vector<2x128xf32>, vector<128x512xf32>, vector<2x512xf32> -> vector<2x512xf32>
    %62 = arith.addf %60, %61 : vector<2x512xf32>
    %63 = vector.extract_strided_slice %62 {offsets = [0, 0], sizes = [2, 128], strides = [1, 1]} : vector<2x512xf32> to vector<2x128xf32>
    %64 = arith.negf %63 : vector<2x128xf32>
    %65 = math.exp %64 : vector<2x128xf32>
    %cst_32 = arith.constant 1.000000e+00 : f32
    %66 = vector.broadcast %cst_32 : f32 to vector<2x128xf32>
    %67 = arith.addf %66, %65 : vector<2x128xf32>
    %68 = arith.divf %66, %67 : vector<2x128xf32>
    %69 = vector.extract_strided_slice %62 {offsets = [0, 128], sizes = [2, 128], strides = [1, 1]} : vector<2x512xf32> to vector<2x128xf32>
    %70 = arith.negf %69 : vector<2x128xf32>
    %71 = math.exp %70 : vector<2x128xf32>
    %cst_33 = arith.constant 1.000000e+00 : f32
    %72 = vector.broadcast %cst_33 : f32 to vector<2x128xf32>
    %73 = arith.addf %72, %71 : vector<2x128xf32>
    %74 = arith.divf %72, %73 : vector<2x128xf32>
    %75 = vector.extract_strided_slice %62 {offsets = [0, 256], sizes = [2, 128], strides = [1, 1]} : vector<2x512xf32> to vector<2x128xf32>
    %76 = math.tanh %75 : vector<2x128xf32>
    %77 = vector.extract_strided_slice %62 {offsets = [0, 384], sizes = [2, 128], strides = [1, 1]} : vector<2x512xf32> to vector<2x128xf32>
    %78 = arith.negf %77 : vector<2x128xf32>
    %79 = math.exp %78 : vector<2x128xf32>
    %cst_34 = arith.constant 1.000000e+00 : f32
    %80 = vector.broadcast %cst_34 : f32 to vector<2x128xf32>
    %81 = arith.addf %80, %79 : vector<2x128xf32>
    %82 = arith.divf %80, %81 : vector<2x128xf32>
    %83 = arith.mulf %74, %57 : vector<2x128xf32>
    %84 = arith.mulf %68, %76 : vector<2x128xf32>
    %85 = arith.addf %83, %84 : vector<2x128xf32>
    %86 = math.tanh %85 : vector<2x128xf32>
    %87 = arith.mulf %82, %86 : vector<2x128xf32>
    %88 = vector.extract_strided_slice %24 {offsets = [4, 0], sizes = [2, 512], strides = [1, 1]} : vector<16x512xf32> to vector<2x512xf32>
    %cst_35 = arith.constant dense<0.000000e+00> : vector<2x512xf32>
    %89 = tpu.matmul %87, %26, %cst_35 {dimension_numbers = #tpu.dot_dimension_numbers<[1], [0], [0], [1], [0, 0, 1, 1], [], []>} : vector<2x128xf32>, vector<128x512xf32>, vector<2x512xf32> -> vector<2x512xf32>
    %90 = arith.addf %88, %89 : vector<2x512xf32>
    %91 = vector.extract_strided_slice %90 {offsets = [0, 0], sizes = [2, 128], strides = [1, 1]} : vector<2x512xf32> to vector<2x128xf32>
    %92 = arith.negf %91 : vector<2x128xf32>
    %93 = math.exp %92 : vector<2x128xf32>
    %cst_36 = arith.constant 1.000000e+00 : f32
    %94 = vector.broadcast %cst_36 : f32 to vector<2x128xf32>
    %95 = arith.addf %94, %93 : vector<2x128xf32>
    %96 = arith.divf %94, %95 : vector<2x128xf32>
    %97 = vector.extract_strided_slice %90 {offsets = [0, 128], sizes = [2, 128], strides = [1, 1]} : vector<2x512xf32> to vector<2x128xf32>
    %98 = arith.negf %97 : vector<2x128xf32>
    %99 = math.exp %98 : vector<2x128xf32>
    %cst_37 = arith.constant 1.000000e+00 : f32
    %100 = vector.broadcast %cst_37 : f32 to vector<2x128xf32>
    %101 = arith.addf %100, %99 : vector<2x128xf32>
    %102 = arith.divf %100, %101 : vector<2x128xf32>
    %103 = vector.extract_strided_slice %90 {offsets = [0, 256], sizes = [2, 128], strides = [1, 1]} : vector<2x512xf32> to vector<2x128xf32>
    %104 = math.tanh %103 : vector<2x128xf32>
    %105 = vector.extract_strided_slice %90 {offsets = [0, 384], sizes = [2, 128], strides = [1, 1]} : vector<2x512xf32> to vector<2x128xf32>
    %106 = arith.negf %105 : vector<2x128xf32>
    %107 = math.exp %106 : vector<2x128xf32>
    %cst_38 = arith.constant 1.000000e+00 : f32
    %108 = vector.broadcast %cst_38 : f32 to vector<2x128xf32>
    %109 = arith.addf %108, %107 : vector<2x128xf32>
    %110 = arith.divf %108, %109 : vector<2x128xf32>
    %111 = arith.mulf %102, %85 : vector<2x128xf32>
    %112 = arith.mulf %96, %104 : vector<2x128xf32>
    %113 = arith.addf %111, %112 : vector<2x128xf32>
    %114 = math.tanh %113 : vector<2x128xf32>
    %115 = arith.mulf %110, %114 : vector<2x128xf32>
    %116 = vector.extract_strided_slice %24 {offsets = [6, 0], sizes = [2, 512], strides = [1, 1]} : vector<16x512xf32> to vector<2x512xf32>
    %cst_39 = arith.constant dense<0.000000e+00> : vector<2x512xf32>
    %117 = tpu.matmul %115, %26, %cst_39 {dimension_numbers = #tpu.dot_dimension_numbers<[1], [0], [0], [1], [0, 0, 1, 1], [], []>} : vector<2x128xf32>, vector<128x512xf32>, vector<2x512xf32> -> vector<2x512xf32>
    %118 = arith.addf %116, %117 : vector<2x512xf32>
    %119 = vector.extract_strided_slice %118 {offsets = [0, 0], sizes = [2, 128], strides = [1, 1]} : vector<2x512xf32> to vector<2x128xf32>
    %120 = arith.negf %119 : vector<2x128xf32>
    %121 = math.exp %120 : vector<2x128xf32>
    %cst_40 = arith.constant 1.000000e+00 : f32
    %122 = vector.broadcast %cst_40 : f32 to vector<2x128xf32>
    %123 = arith.addf %122, %121 : vector<2x128xf32>
    %124 = arith.divf %122, %123 : vector<2x128xf32>
    %125 = vector.extract_strided_slice %118 {offsets = [0, 128], sizes = [2, 128], strides = [1, 1]} : vector<2x512xf32> to vector<2x128xf32>
    %126 = arith.negf %125 : vector<2x128xf32>
    %127 = math.exp %126 : vector<2x128xf32>
    %cst_41 = arith.constant 1.000000e+00 : f32
    %128 = vector.broadcast %cst_41 : f32 to vector<2x128xf32>
    %129 = arith.addf %128, %127 : vector<2x128xf32>
    %130 = arith.divf %128, %129 : vector<2x128xf32>
    %131 = vector.extract_strided_slice %118 {offsets = [0, 256], sizes = [2, 128], strides = [1, 1]} : vector<2x512xf32> to vector<2x128xf32>
    %132 = math.tanh %131 : vector<2x128xf32>
    %133 = vector.extract_strided_slice %118 {offsets = [0, 384], sizes = [2, 128], strides = [1, 1]} : vector<2x512xf32> to vector<2x128xf32>
    %134 = arith.negf %133 : vector<2x128xf32>
    %135 = math.exp %134 : vector<2x128xf32>
    %cst_42 = arith.constant 1.000000e+00 : f32
    %136 = vector.broadcast %cst_42 : f32 to vector<2x128xf32>
    %137 = arith.addf %136, %135 : vector<2x128xf32>
    %138 = arith.divf %136, %137 : vector<2x128xf32>
    %139 = arith.mulf %130, %113 : vector<2x128xf32>
    %140 = arith.mulf %124, %132 : vector<2x128xf32>
    %141 = arith.addf %139, %140 : vector<2x128xf32>
    %142 = math.tanh %141 : vector<2x128xf32>
    %143 = arith.mulf %138, %142 : vector<2x128xf32>
    %144 = vector.extract_strided_slice %24 {offsets = [8, 0], sizes = [2, 512], strides = [1, 1]} : vector<16x512xf32> to vector<2x512xf32>
    %cst_43 = arith.constant dense<0.000000e+00> : vector<2x512xf32>
    %145 = tpu.matmul %143, %26, %cst_43 {dimension_numbers = #tpu.dot_dimension_numbers<[1], [0], [0], [1], [0, 0, 1, 1], [], []>} : vector<2x128xf32>, vector<128x512xf32>, vector<2x512xf32> -> vector<2x512xf32>
    %146 = arith.addf %144, %145 : vector<2x512xf32>
    %147 = vector.extract_strided_slice %146 {offsets = [0, 0], sizes = [2, 128], strides = [1, 1]} : vector<2x512xf32> to vector<2x128xf32>
    %148 = arith.negf %147 : vector<2x128xf32>
    %149 = math.exp %148 : vector<2x128xf32>
    %cst_44 = arith.constant 1.000000e+00 : f32
    %150 = vector.broadcast %cst_44 : f32 to vector<2x128xf32>
    %151 = arith.addf %150, %149 : vector<2x128xf32>
    %152 = arith.divf %150, %151 : vector<2x128xf32>
    %153 = vector.extract_strided_slice %146 {offsets = [0, 128], sizes = [2, 128], strides = [1, 1]} : vector<2x512xf32> to vector<2x128xf32>
    %154 = arith.negf %153 : vector<2x128xf32>
    %155 = math.exp %154 : vector<2x128xf32>
    %cst_45 = arith.constant 1.000000e+00 : f32
    %156 = vector.broadcast %cst_45 : f32 to vector<2x128xf32>
    %157 = arith.addf %156, %155 : vector<2x128xf32>
    %158 = arith.divf %156, %157 : vector<2x128xf32>
    %159 = vector.extract_strided_slice %146 {offsets = [0, 256], sizes = [2, 128], strides = [1, 1]} : vector<2x512xf32> to vector<2x128xf32>
    %160 = math.tanh %159 : vector<2x128xf32>
    %161 = vector.extract_strided_slice %146 {offsets = [0, 384], sizes = [2, 128], strides = [1, 1]} : vector<2x512xf32> to vector<2x128xf32>
    %162 = arith.negf %161 : vector<2x128xf32>
    %163 = math.exp %162 : vector<2x128xf32>
    %cst_46 = arith.constant 1.000000e+00 : f32
    %164 = vector.broadcast %cst_46 : f32 to vector<2x128xf32>
    %165 = arith.addf %164, %163 : vector<2x128xf32>
    %166 = arith.divf %164, %165 : vector<2x128xf32>
    %167 = arith.mulf %158, %141 : vector<2x128xf32>
    %168 = arith.mulf %152, %160 : vector<2x128xf32>
    %169 = arith.addf %167, %168 : vector<2x128xf32>
    %170 = math.tanh %169 : vector<2x128xf32>
    %171 = arith.mulf %166, %170 : vector<2x128xf32>
    %172 = vector.extract_strided_slice %24 {offsets = [10, 0], sizes = [2, 512], strides = [1, 1]} : vector<16x512xf32> to vector<2x512xf32>
    %cst_47 = arith.constant dense<0.000000e+00> : vector<2x512xf32>
    %173 = tpu.matmul %171, %26, %cst_47 {dimension_numbers = #tpu.dot_dimension_numbers<[1], [0], [0], [1], [0, 0, 1, 1], [], []>} : vector<2x128xf32>, vector<128x512xf32>, vector<2x512xf32> -> vector<2x512xf32>
    %174 = arith.addf %172, %173 : vector<2x512xf32>
    %175 = vector.extract_strided_slice %174 {offsets = [0, 0], sizes = [2, 128], strides = [1, 1]} : vector<2x512xf32> to vector<2x128xf32>
    %176 = arith.negf %175 : vector<2x128xf32>
    %177 = math.exp %176 : vector<2x128xf32>
    %cst_48 = arith.constant 1.000000e+00 : f32
    %178 = vector.broadcast %cst_48 : f32 to vector<2x128xf32>
    %179 = arith.addf %178, %177 : vector<2x128xf32>
    %180 = arith.divf %178, %179 : vector<2x128xf32>
    %181 = vector.extract_strided_slice %174 {offsets = [0, 128], sizes = [2, 128], strides = [1, 1]} : vector<2x512xf32> to vector<2x128xf32>
    %182 = arith.negf %181 : vector<2x128xf32>
    %183 = math.exp %182 : vector<2x128xf32>
    %cst_49 = arith.constant 1.000000e+00 : f32
    %184 = vector.broadcast %cst_49 : f32 to vector<2x128xf32>
    %185 = arith.addf %184, %183 : vector<2x128xf32>
    %186 = arith.divf %184, %185 : vector<2x128xf32>
    %187 = vector.extract_strided_slice %174 {offsets = [0, 256], sizes = [2, 128], strides = [1, 1]} : vector<2x512xf32> to vector<2x128xf32>
    %188 = math.tanh %187 : vector<2x128xf32>
    %189 = vector.extract_strided_slice %174 {offsets = [0, 384], sizes = [2, 128], strides = [1, 1]} : vector<2x512xf32> to vector<2x128xf32>
    %190 = arith.negf %189 : vector<2x128xf32>
    %191 = math.exp %190 : vector<2x128xf32>
    %cst_50 = arith.constant 1.000000e+00 : f32
    %192 = vector.broadcast %cst_50 : f32 to vector<2x128xf32>
    %193 = arith.addf %192, %191 : vector<2x128xf32>
    %194 = arith.divf %192, %193 : vector<2x128xf32>
    %195 = arith.mulf %186, %169 : vector<2x128xf32>
    %196 = arith.mulf %180, %188 : vector<2x128xf32>
    %197 = arith.addf %195, %196 : vector<2x128xf32>
    %198 = math.tanh %197 : vector<2x128xf32>
    %199 = arith.mulf %194, %198 : vector<2x128xf32>
    %200 = vector.extract_strided_slice %24 {offsets = [12, 0], sizes = [2, 512], strides = [1, 1]} : vector<16x512xf32> to vector<2x512xf32>
    %cst_51 = arith.constant dense<0.000000e+00> : vector<2x512xf32>
    %201 = tpu.matmul %199, %26, %cst_51 {dimension_numbers = #tpu.dot_dimension_numbers<[1], [0], [0], [1], [0, 0, 1, 1], [], []>} : vector<2x128xf32>, vector<128x512xf32>, vector<2x512xf32> -> vector<2x512xf32>
    %202 = arith.addf %200, %201 : vector<2x512xf32>
    %203 = vector.extract_strided_slice %202 {offsets = [0, 0], sizes = [2, 128], strides = [1, 1]} : vector<2x512xf32> to vector<2x128xf32>
    %204 = arith.negf %203 : vector<2x128xf32>
    %205 = math.exp %204 : vector<2x128xf32>
    %cst_52 = arith.constant 1.000000e+00 : f32
    %206 = vector.broadcast %cst_52 : f32 to vector<2x128xf32>
    %207 = arith.addf %206, %205 : vector<2x128xf32>
    %208 = arith.divf %206, %207 : vector<2x128xf32>
    %209 = vector.extract_strided_slice %202 {offsets = [0, 128], sizes = [2, 128], strides = [1, 1]} : vector<2x512xf32> to vector<2x128xf32>
    %210 = arith.negf %209 : vector<2x128xf32>
    %211 = math.exp %210 : vector<2x128xf32>
    %cst_53 = arith.constant 1.000000e+00 : f32
    %212 = vector.broadcast %cst_53 : f32 to vector<2x128xf32>
    %213 = arith.addf %212, %211 : vector<2x128xf32>
    %214 = arith.divf %212, %213 : vector<2x128xf32>
    %215 = vector.extract_strided_slice %202 {offsets = [0, 256], sizes = [2, 128], strides = [1, 1]} : vector<2x512xf32> to vector<2x128xf32>
    %216 = math.tanh %215 : vector<2x128xf32>
    %217 = vector.extract_strided_slice %202 {offsets = [0, 384], sizes = [2, 128], strides = [1, 1]} : vector<2x512xf32> to vector<2x128xf32>
    %218 = arith.negf %217 : vector<2x128xf32>
    %219 = math.exp %218 : vector<2x128xf32>
    %cst_54 = arith.constant 1.000000e+00 : f32
    %220 = vector.broadcast %cst_54 : f32 to vector<2x128xf32>
    %221 = arith.addf %220, %219 : vector<2x128xf32>
    %222 = arith.divf %220, %221 : vector<2x128xf32>
    %223 = arith.mulf %214, %197 : vector<2x128xf32>
    %224 = arith.mulf %208, %216 : vector<2x128xf32>
    %225 = arith.addf %223, %224 : vector<2x128xf32>
    %226 = math.tanh %225 : vector<2x128xf32>
    %227 = arith.mulf %222, %226 : vector<2x128xf32>
    %228 = vector.extract_strided_slice %24 {offsets = [14, 0], sizes = [2, 512], strides = [1, 1]} : vector<16x512xf32> to vector<2x512xf32>
    %cst_55 = arith.constant dense<0.000000e+00> : vector<2x512xf32>
    %229 = tpu.matmul %227, %26, %cst_55 {dimension_numbers = #tpu.dot_dimension_numbers<[1], [0], [0], [1], [0, 0, 1, 1], [], []>} : vector<2x128xf32>, vector<128x512xf32>, vector<2x512xf32> -> vector<2x512xf32>
    %230 = arith.addf %228, %229 : vector<2x512xf32>
    %231 = vector.extract_strided_slice %230 {offsets = [0, 0], sizes = [2, 128], strides = [1, 1]} : vector<2x512xf32> to vector<2x128xf32>
    %232 = arith.negf %231 : vector<2x128xf32>
    %233 = math.exp %232 : vector<2x128xf32>
    %cst_56 = arith.constant 1.000000e+00 : f32
    %234 = vector.broadcast %cst_56 : f32 to vector<2x128xf32>
    %235 = arith.addf %234, %233 : vector<2x128xf32>
    %236 = arith.divf %234, %235 : vector<2x128xf32>
    %237 = vector.extract_strided_slice %230 {offsets = [0, 128], sizes = [2, 128], strides = [1, 1]} : vector<2x512xf32> to vector<2x128xf32>
    %238 = arith.negf %237 : vector<2x128xf32>
    %239 = math.exp %238 : vector<2x128xf32>
    %cst_57 = arith.constant 1.000000e+00 : f32
    %240 = vector.broadcast %cst_57 : f32 to vector<2x128xf32>
    %241 = arith.addf %240, %239 : vector<2x128xf32>
    %242 = arith.divf %240, %241 : vector<2x128xf32>
    %243 = vector.extract_strided_slice %230 {offsets = [0, 256], sizes = [2, 128], strides = [1, 1]} : vector<2x512xf32> to vector<2x128xf32>
    %244 = math.tanh %243 : vector<2x128xf32>
    %245 = vector.extract_strided_slice %230 {offsets = [0, 384], sizes = [2, 128], strides = [1, 1]} : vector<2x512xf32> to vector<2x128xf32>
    %246 = arith.negf %245 : vector<2x128xf32>
    %247 = math.exp %246 : vector<2x128xf32>
    %cst_58 = arith.constant 1.000000e+00 : f32
    %248 = vector.broadcast %cst_58 : f32 to vector<2x128xf32>
    %249 = arith.addf %248, %247 : vector<2x128xf32>
    %250 = arith.divf %248, %249 : vector<2x128xf32>
    %251 = arith.mulf %242, %225 : vector<2x128xf32>
    %252 = arith.mulf %236, %244 : vector<2x128xf32>
    %253 = arith.addf %251, %252 : vector<2x128xf32>
    %254 = math.tanh %253 : vector<2x128xf32>
    %255 = arith.mulf %250, %254 : vector<2x128xf32>
    %256 = vector.extract_strided_slice %25 {offsets = [0, 0], sizes = [2, 512], strides = [1, 1]} : vector<16x512xf32> to vector<2x512xf32>
    %cst_59 = arith.constant dense<0.000000e+00> : vector<2x512xf32>
    %257 = tpu.matmul %255, %27, %cst_59 {dimension_numbers = #tpu.dot_dimension_numbers<[1], [0], [0], [1], [0, 0, 1, 1], [], []>} : vector<2x128xf32>, vector<128x512xf32>, vector<2x512xf32> -> vector<2x512xf32>
    %258 = arith.addf %256, %257 : vector<2x512xf32>
    %259 = vector.extract_strided_slice %258 {offsets = [0, 0], sizes = [2, 128], strides = [1, 1]} : vector<2x512xf32> to vector<2x128xf32>
    %260 = arith.negf %259 : vector<2x128xf32>
    %261 = math.exp %260 : vector<2x128xf32>
    %cst_60 = arith.constant 1.000000e+00 : f32
    %262 = vector.broadcast %cst_60 : f32 to vector<2x128xf32>
    %263 = arith.addf %262, %261 : vector<2x128xf32>
    %264 = arith.divf %262, %263 : vector<2x128xf32>
    %265 = vector.extract_strided_slice %258 {offsets = [0, 128], sizes = [2, 128], strides = [1, 1]} : vector<2x512xf32> to vector<2x128xf32>
    %266 = arith.negf %265 : vector<2x128xf32>
    %267 = math.exp %266 : vector<2x128xf32>
    %cst_61 = arith.constant 1.000000e+00 : f32
    %268 = vector.broadcast %cst_61 : f32 to vector<2x128xf32>
    %269 = arith.addf %268, %267 : vector<2x128xf32>
    %270 = arith.divf %268, %269 : vector<2x128xf32>
    %271 = vector.extract_strided_slice %258 {offsets = [0, 256], sizes = [2, 128], strides = [1, 1]} : vector<2x512xf32> to vector<2x128xf32>
    %272 = math.tanh %271 : vector<2x128xf32>
    %273 = vector.extract_strided_slice %258 {offsets = [0, 384], sizes = [2, 128], strides = [1, 1]} : vector<2x512xf32> to vector<2x128xf32>
    %274 = arith.negf %273 : vector<2x128xf32>
    %275 = math.exp %274 : vector<2x128xf32>
    %cst_62 = arith.constant 1.000000e+00 : f32
    %276 = vector.broadcast %cst_62 : f32 to vector<2x128xf32>
    %277 = arith.addf %276, %275 : vector<2x128xf32>
    %278 = arith.divf %276, %277 : vector<2x128xf32>
    %279 = arith.mulf %270, %253 : vector<2x128xf32>
    %280 = arith.mulf %264, %272 : vector<2x128xf32>
    %281 = arith.addf %279, %280 : vector<2x128xf32>
    %282 = math.tanh %281 : vector<2x128xf32>
    %283 = arith.mulf %278, %282 : vector<2x128xf32>
    %cst_63 = arith.constant dense<0.000000e+00> : vector<2x128xf32>
    %284 = tpu.matmul %283, %28, %cst_63 {dimension_numbers = #tpu.dot_dimension_numbers<[1], [0], [0], [1], [0, 0, 1, 1], [], []>} : vector<2x128xf32>, vector<128x128xf32>, vector<2x128xf32> -> vector<2x128xf32>
    %285 = vector.broadcast %29 : vector<1x128xf32> to vector<2x128xf32>
    %286 = arith.addf %284, %285 : vector<2x128xf32>
    %287 = vector.extract_strided_slice %25 {offsets = [2, 0], sizes = [2, 512], strides = [1, 1]} : vector<16x512xf32> to vector<2x512xf32>
    %cst_64 = arith.constant dense<0.000000e+00> : vector<2x512xf32>
    %288 = tpu.matmul %283, %27, %cst_64 {dimension_numbers = #tpu.dot_dimension_numbers<[1], [0], [0], [1], [0, 0, 1, 1], [], []>} : vector<2x128xf32>, vector<128x512xf32>, vector<2x512xf32> -> vector<2x512xf32>
    %289 = arith.addf %287, %288 : vector<2x512xf32>
    %290 = vector.extract_strided_slice %289 {offsets = [0, 0], sizes = [2, 128], strides = [1, 1]} : vector<2x512xf32> to vector<2x128xf32>
    %291 = arith.negf %290 : vector<2x128xf32>
    %292 = math.exp %291 : vector<2x128xf32>
    %cst_65 = arith.constant 1.000000e+00 : f32
    %293 = vector.broadcast %cst_65 : f32 to vector<2x128xf32>
    %294 = arith.addf %293, %292 : vector<2x128xf32>
    %295 = arith.divf %293, %294 : vector<2x128xf32>
    %296 = vector.extract_strided_slice %289 {offsets = [0, 128], sizes = [2, 128], strides = [1, 1]} : vector<2x512xf32> to vector<2x128xf32>
    %297 = arith.negf %296 : vector<2x128xf32>
    %298 = math.exp %297 : vector<2x128xf32>
    %cst_66 = arith.constant 1.000000e+00 : f32
    %299 = vector.broadcast %cst_66 : f32 to vector<2x128xf32>
    %300 = arith.addf %299, %298 : vector<2x128xf32>
    %301 = arith.divf %299, %300 : vector<2x128xf32>
    %302 = vector.extract_strided_slice %289 {offsets = [0, 256], sizes = [2, 128], strides = [1, 1]} : vector<2x512xf32> to vector<2x128xf32>
    %303 = math.tanh %302 : vector<2x128xf32>
    %304 = vector.extract_strided_slice %289 {offsets = [0, 384], sizes = [2, 128], strides = [1, 1]} : vector<2x512xf32> to vector<2x128xf32>
    %305 = arith.negf %304 : vector<2x128xf32>
    %306 = math.exp %305 : vector<2x128xf32>
    %cst_67 = arith.constant 1.000000e+00 : f32
    %307 = vector.broadcast %cst_67 : f32 to vector<2x128xf32>
    %308 = arith.addf %307, %306 : vector<2x128xf32>
    %309 = arith.divf %307, %308 : vector<2x128xf32>
    %310 = arith.mulf %301, %281 : vector<2x128xf32>
    %311 = arith.mulf %295, %303 : vector<2x128xf32>
    %312 = arith.addf %310, %311 : vector<2x128xf32>
    %313 = math.tanh %312 : vector<2x128xf32>
    %314 = arith.mulf %309, %313 : vector<2x128xf32>
    %cst_68 = arith.constant dense<0.000000e+00> : vector<2x128xf32>
    %315 = tpu.matmul %314, %28, %cst_68 {dimension_numbers = #tpu.dot_dimension_numbers<[1], [0], [0], [1], [0, 0, 1, 1], [], []>} : vector<2x128xf32>, vector<128x128xf32>, vector<2x128xf32> -> vector<2x128xf32>
    %316 = vector.broadcast %29 : vector<1x128xf32> to vector<2x128xf32>
    %317 = arith.addf %315, %316 : vector<2x128xf32>
    %318 = vector.extract_strided_slice %25 {offsets = [4, 0], sizes = [2, 512], strides = [1, 1]} : vector<16x512xf32> to vector<2x512xf32>
    %cst_69 = arith.constant dense<0.000000e+00> : vector<2x512xf32>
    %319 = tpu.matmul %314, %27, %cst_69 {dimension_numbers = #tpu.dot_dimension_numbers<[1], [0], [0], [1], [0, 0, 1, 1], [], []>} : vector<2x128xf32>, vector<128x512xf32>, vector<2x512xf32> -> vector<2x512xf32>
    %320 = arith.addf %318, %319 : vector<2x512xf32>
    %321 = vector.extract_strided_slice %320 {offsets = [0, 0], sizes = [2, 128], strides = [1, 1]} : vector<2x512xf32> to vector<2x128xf32>
    %322 = arith.negf %321 : vector<2x128xf32>
    %323 = math.exp %322 : vector<2x128xf32>
    %cst_70 = arith.constant 1.000000e+00 : f32
    %324 = vector.broadcast %cst_70 : f32 to vector<2x128xf32>
    %325 = arith.addf %324, %323 : vector<2x128xf32>
    %326 = arith.divf %324, %325 : vector<2x128xf32>
    %327 = vector.extract_strided_slice %320 {offsets = [0, 128], sizes = [2, 128], strides = [1, 1]} : vector<2x512xf32> to vector<2x128xf32>
    %328 = arith.negf %327 : vector<2x128xf32>
    %329 = math.exp %328 : vector<2x128xf32>
    %cst_71 = arith.constant 1.000000e+00 : f32
    %330 = vector.broadcast %cst_71 : f32 to vector<2x128xf32>
    %331 = arith.addf %330, %329 : vector<2x128xf32>
    %332 = arith.divf %330, %331 : vector<2x128xf32>
    %333 = vector.extract_strided_slice %320 {offsets = [0, 256], sizes = [2, 128], strides = [1, 1]} : vector<2x512xf32> to vector<2x128xf32>
    %334 = math.tanh %333 : vector<2x128xf32>
    %335 = vector.extract_strided_slice %320 {offsets = [0, 384], sizes = [2, 128], strides = [1, 1]} : vector<2x512xf32> to vector<2x128xf32>
    %336 = arith.negf %335 : vector<2x128xf32>
    %337 = math.exp %336 : vector<2x128xf32>
    %cst_72 = arith.constant 1.000000e+00 : f32
    %338 = vector.broadcast %cst_72 : f32 to vector<2x128xf32>
    %339 = arith.addf %338, %337 : vector<2x128xf32>
    %340 = arith.divf %338, %339 : vector<2x128xf32>
    %341 = arith.mulf %332, %312 : vector<2x128xf32>
    %342 = arith.mulf %326, %334 : vector<2x128xf32>
    %343 = arith.addf %341, %342 : vector<2x128xf32>
    %344 = math.tanh %343 : vector<2x128xf32>
    %345 = arith.mulf %340, %344 : vector<2x128xf32>
    %cst_73 = arith.constant dense<0.000000e+00> : vector<2x128xf32>
    %346 = tpu.matmul %345, %28, %cst_73 {dimension_numbers = #tpu.dot_dimension_numbers<[1], [0], [0], [1], [0, 0, 1, 1], [], []>} : vector<2x128xf32>, vector<128x128xf32>, vector<2x128xf32> -> vector<2x128xf32>
    %347 = vector.broadcast %29 : vector<1x128xf32> to vector<2x128xf32>
    %348 = arith.addf %346, %347 : vector<2x128xf32>
    %349 = vector.extract_strided_slice %25 {offsets = [6, 0], sizes = [2, 512], strides = [1, 1]} : vector<16x512xf32> to vector<2x512xf32>
    %cst_74 = arith.constant dense<0.000000e+00> : vector<2x512xf32>
    %350 = tpu.matmul %345, %27, %cst_74 {dimension_numbers = #tpu.dot_dimension_numbers<[1], [0], [0], [1], [0, 0, 1, 1], [], []>} : vector<2x128xf32>, vector<128x512xf32>, vector<2x512xf32> -> vector<2x512xf32>
    %351 = arith.addf %349, %350 : vector<2x512xf32>
    %352 = vector.extract_strided_slice %351 {offsets = [0, 0], sizes = [2, 128], strides = [1, 1]} : vector<2x512xf32> to vector<2x128xf32>
    %353 = arith.negf %352 : vector<2x128xf32>
    %354 = math.exp %353 : vector<2x128xf32>
    %cst_75 = arith.constant 1.000000e+00 : f32
    %355 = vector.broadcast %cst_75 : f32 to vector<2x128xf32>
    %356 = arith.addf %355, %354 : vector<2x128xf32>
    %357 = arith.divf %355, %356 : vector<2x128xf32>
    %358 = vector.extract_strided_slice %351 {offsets = [0, 128], sizes = [2, 128], strides = [1, 1]} : vector<2x512xf32> to vector<2x128xf32>
    %359 = arith.negf %358 : vector<2x128xf32>
    %360 = math.exp %359 : vector<2x128xf32>
    %cst_76 = arith.constant 1.000000e+00 : f32
    %361 = vector.broadcast %cst_76 : f32 to vector<2x128xf32>
    %362 = arith.addf %361, %360 : vector<2x128xf32>
    %363 = arith.divf %361, %362 : vector<2x128xf32>
    %364 = vector.extract_strided_slice %351 {offsets = [0, 256], sizes = [2, 128], strides = [1, 1]} : vector<2x512xf32> to vector<2x128xf32>
    %365 = math.tanh %364 : vector<2x128xf32>
    %366 = vector.extract_strided_slice %351 {offsets = [0, 384], sizes = [2, 128], strides = [1, 1]} : vector<2x512xf32> to vector<2x128xf32>
    %367 = arith.negf %366 : vector<2x128xf32>
    %368 = math.exp %367 : vector<2x128xf32>
    %cst_77 = arith.constant 1.000000e+00 : f32
    %369 = vector.broadcast %cst_77 : f32 to vector<2x128xf32>
    %370 = arith.addf %369, %368 : vector<2x128xf32>
    %371 = arith.divf %369, %370 : vector<2x128xf32>
    %372 = arith.mulf %363, %343 : vector<2x128xf32>
    %373 = arith.mulf %357, %365 : vector<2x128xf32>
    %374 = arith.addf %372, %373 : vector<2x128xf32>
    %375 = math.tanh %374 : vector<2x128xf32>
    %376 = arith.mulf %371, %375 : vector<2x128xf32>
    %cst_78 = arith.constant dense<0.000000e+00> : vector<2x128xf32>
    %377 = tpu.matmul %376, %28, %cst_78 {dimension_numbers = #tpu.dot_dimension_numbers<[1], [0], [0], [1], [0, 0, 1, 1], [], []>} : vector<2x128xf32>, vector<128x128xf32>, vector<2x128xf32> -> vector<2x128xf32>
    %378 = vector.broadcast %29 : vector<1x128xf32> to vector<2x128xf32>
    %379 = arith.addf %377, %378 : vector<2x128xf32>
    %380 = vector.extract_strided_slice %25 {offsets = [8, 0], sizes = [2, 512], strides = [1, 1]} : vector<16x512xf32> to vector<2x512xf32>
    %cst_79 = arith.constant dense<0.000000e+00> : vector<2x512xf32>
    %381 = tpu.matmul %376, %27, %cst_79 {dimension_numbers = #tpu.dot_dimension_numbers<[1], [0], [0], [1], [0, 0, 1, 1], [], []>} : vector<2x128xf32>, vector<128x512xf32>, vector<2x512xf32> -> vector<2x512xf32>
    %382 = arith.addf %380, %381 : vector<2x512xf32>
    %383 = vector.extract_strided_slice %382 {offsets = [0, 0], sizes = [2, 128], strides = [1, 1]} : vector<2x512xf32> to vector<2x128xf32>
    %384 = arith.negf %383 : vector<2x128xf32>
    %385 = math.exp %384 : vector<2x128xf32>
    %cst_80 = arith.constant 1.000000e+00 : f32
    %386 = vector.broadcast %cst_80 : f32 to vector<2x128xf32>
    %387 = arith.addf %386, %385 : vector<2x128xf32>
    %388 = arith.divf %386, %387 : vector<2x128xf32>
    %389 = vector.extract_strided_slice %382 {offsets = [0, 128], sizes = [2, 128], strides = [1, 1]} : vector<2x512xf32> to vector<2x128xf32>
    %390 = arith.negf %389 : vector<2x128xf32>
    %391 = math.exp %390 : vector<2x128xf32>
    %cst_81 = arith.constant 1.000000e+00 : f32
    %392 = vector.broadcast %cst_81 : f32 to vector<2x128xf32>
    %393 = arith.addf %392, %391 : vector<2x128xf32>
    %394 = arith.divf %392, %393 : vector<2x128xf32>
    %395 = vector.extract_strided_slice %382 {offsets = [0, 256], sizes = [2, 128], strides = [1, 1]} : vector<2x512xf32> to vector<2x128xf32>
    %396 = math.tanh %395 : vector<2x128xf32>
    %397 = vector.extract_strided_slice %382 {offsets = [0, 384], sizes = [2, 128], strides = [1, 1]} : vector<2x512xf32> to vector<2x128xf32>
    %398 = arith.negf %397 : vector<2x128xf32>
    %399 = math.exp %398 : vector<2x128xf32>
    %cst_82 = arith.constant 1.000000e+00 : f32
    %400 = vector.broadcast %cst_82 : f32 to vector<2x128xf32>
    %401 = arith.addf %400, %399 : vector<2x128xf32>
    %402 = arith.divf %400, %401 : vector<2x128xf32>
    %403 = arith.mulf %394, %374 : vector<2x128xf32>
    %404 = arith.mulf %388, %396 : vector<2x128xf32>
    %405 = arith.addf %403, %404 : vector<2x128xf32>
    %406 = math.tanh %405 : vector<2x128xf32>
    %407 = arith.mulf %402, %406 : vector<2x128xf32>
    %cst_83 = arith.constant dense<0.000000e+00> : vector<2x128xf32>
    %408 = tpu.matmul %407, %28, %cst_83 {dimension_numbers = #tpu.dot_dimension_numbers<[1], [0], [0], [1], [0, 0, 1, 1], [], []>} : vector<2x128xf32>, vector<128x128xf32>, vector<2x128xf32> -> vector<2x128xf32>
    %409 = vector.broadcast %29 : vector<1x128xf32> to vector<2x128xf32>
    %410 = arith.addf %408, %409 : vector<2x128xf32>
    %411 = vector.extract_strided_slice %25 {offsets = [10, 0], sizes = [2, 512], strides = [1, 1]} : vector<16x512xf32> to vector<2x512xf32>
    %cst_84 = arith.constant dense<0.000000e+00> : vector<2x512xf32>
    %412 = tpu.matmul %407, %27, %cst_84 {dimension_numbers = #tpu.dot_dimension_numbers<[1], [0], [0], [1], [0, 0, 1, 1], [], []>} : vector<2x128xf32>, vector<128x512xf32>, vector<2x512xf32> -> vector<2x512xf32>
    %413 = arith.addf %411, %412 : vector<2x512xf32>
    %414 = vector.extract_strided_slice %413 {offsets = [0, 0], sizes = [2, 128], strides = [1, 1]} : vector<2x512xf32> to vector<2x128xf32>
    %415 = arith.negf %414 : vector<2x128xf32>
    %416 = math.exp %415 : vector<2x128xf32>
    %cst_85 = arith.constant 1.000000e+00 : f32
    %417 = vector.broadcast %cst_85 : f32 to vector<2x128xf32>
    %418 = arith.addf %417, %416 : vector<2x128xf32>
    %419 = arith.divf %417, %418 : vector<2x128xf32>
    %420 = vector.extract_strided_slice %413 {offsets = [0, 128], sizes = [2, 128], strides = [1, 1]} : vector<2x512xf32> to vector<2x128xf32>
    %421 = arith.negf %420 : vector<2x128xf32>
    %422 = math.exp %421 : vector<2x128xf32>
    %cst_86 = arith.constant 1.000000e+00 : f32
    %423 = vector.broadcast %cst_86 : f32 to vector<2x128xf32>
    %424 = arith.addf %423, %422 : vector<2x128xf32>
    %425 = arith.divf %423, %424 : vector<2x128xf32>
    %426 = vector.extract_strided_slice %413 {offsets = [0, 256], sizes = [2, 128], strides = [1, 1]} : vector<2x512xf32> to vector<2x128xf32>
    %427 = math.tanh %426 : vector<2x128xf32>
    %428 = vector.extract_strided_slice %413 {offsets = [0, 384], sizes = [2, 128], strides = [1, 1]} : vector<2x512xf32> to vector<2x128xf32>
    %429 = arith.negf %428 : vector<2x128xf32>
    %430 = math.exp %429 : vector<2x128xf32>
    %cst_87 = arith.constant 1.000000e+00 : f32
    %431 = vector.broadcast %cst_87 : f32 to vector<2x128xf32>
    %432 = arith.addf %431, %430 : vector<2x128xf32>
    %433 = arith.divf %431, %432 : vector<2x128xf32>
    %434 = arith.mulf %425, %405 : vector<2x128xf32>
    %435 = arith.mulf %419, %427 : vector<2x128xf32>
    %436 = arith.addf %434, %435 : vector<2x128xf32>
    %437 = math.tanh %436 : vector<2x128xf32>
    %438 = arith.mulf %433, %437 : vector<2x128xf32>
    %cst_88 = arith.constant dense<0.000000e+00> : vector<2x128xf32>
    %439 = tpu.matmul %438, %28, %cst_88 {dimension_numbers = #tpu.dot_dimension_numbers<[1], [0], [0], [1], [0, 0, 1, 1], [], []>} : vector<2x128xf32>, vector<128x128xf32>, vector<2x128xf32> -> vector<2x128xf32>
    %440 = vector.broadcast %29 : vector<1x128xf32> to vector<2x128xf32>
    %441 = arith.addf %439, %440 : vector<2x128xf32>
    %442 = vector.extract_strided_slice %25 {offsets = [12, 0], sizes = [2, 512], strides = [1, 1]} : vector<16x512xf32> to vector<2x512xf32>
    %cst_89 = arith.constant dense<0.000000e+00> : vector<2x512xf32>
    %443 = tpu.matmul %438, %27, %cst_89 {dimension_numbers = #tpu.dot_dimension_numbers<[1], [0], [0], [1], [0, 0, 1, 1], [], []>} : vector<2x128xf32>, vector<128x512xf32>, vector<2x512xf32> -> vector<2x512xf32>
    %444 = arith.addf %442, %443 : vector<2x512xf32>
    %445 = vector.extract_strided_slice %444 {offsets = [0, 0], sizes = [2, 128], strides = [1, 1]} : vector<2x512xf32> to vector<2x128xf32>
    %446 = arith.negf %445 : vector<2x128xf32>
    %447 = math.exp %446 : vector<2x128xf32>
    %cst_90 = arith.constant 1.000000e+00 : f32
    %448 = vector.broadcast %cst_90 : f32 to vector<2x128xf32>
    %449 = arith.addf %448, %447 : vector<2x128xf32>
    %450 = arith.divf %448, %449 : vector<2x128xf32>
    %451 = vector.extract_strided_slice %444 {offsets = [0, 128], sizes = [2, 128], strides = [1, 1]} : vector<2x512xf32> to vector<2x128xf32>
    %452 = arith.negf %451 : vector<2x128xf32>
    %453 = math.exp %452 : vector<2x128xf32>
    %cst_91 = arith.constant 1.000000e+00 : f32
    %454 = vector.broadcast %cst_91 : f32 to vector<2x128xf32>
    %455 = arith.addf %454, %453 : vector<2x128xf32>
    %456 = arith.divf %454, %455 : vector<2x128xf32>
    %457 = vector.extract_strided_slice %444 {offsets = [0, 256], sizes = [2, 128], strides = [1, 1]} : vector<2x512xf32> to vector<2x128xf32>
    %458 = math.tanh %457 : vector<2x128xf32>
    %459 = vector.extract_strided_slice %444 {offsets = [0, 384], sizes = [2, 128], strides = [1, 1]} : vector<2x512xf32> to vector<2x128xf32>
    %460 = arith.negf %459 : vector<2x128xf32>
    %461 = math.exp %460 : vector<2x128xf32>
    %cst_92 = arith.constant 1.000000e+00 : f32
    %462 = vector.broadcast %cst_92 : f32 to vector<2x128xf32>
    %463 = arith.addf %462, %461 : vector<2x128xf32>
    %464 = arith.divf %462, %463 : vector<2x128xf32>
    %465 = arith.mulf %456, %436 : vector<2x128xf32>
    %466 = arith.mulf %450, %458 : vector<2x128xf32>
    %467 = arith.addf %465, %466 : vector<2x128xf32>
    %468 = math.tanh %467 : vector<2x128xf32>
    %469 = arith.mulf %464, %468 : vector<2x128xf32>
    %cst_93 = arith.constant dense<0.000000e+00> : vector<2x128xf32>
    %470 = tpu.matmul %469, %28, %cst_93 {dimension_numbers = #tpu.dot_dimension_numbers<[1], [0], [0], [1], [0, 0, 1, 1], [], []>} : vector<2x128xf32>, vector<128x128xf32>, vector<2x128xf32> -> vector<2x128xf32>
    %471 = vector.broadcast %29 : vector<1x128xf32> to vector<2x128xf32>
    %472 = arith.addf %470, %471 : vector<2x128xf32>
    %473 = vector.extract_strided_slice %25 {offsets = [14, 0], sizes = [2, 512], strides = [1, 1]} : vector<16x512xf32> to vector<2x512xf32>
    %cst_94 = arith.constant dense<0.000000e+00> : vector<2x512xf32>
    %474 = tpu.matmul %469, %27, %cst_94 {dimension_numbers = #tpu.dot_dimension_numbers<[1], [0], [0], [1], [0, 0, 1, 1], [], []>} : vector<2x128xf32>, vector<128x512xf32>, vector<2x512xf32> -> vector<2x512xf32>
    %475 = arith.addf %473, %474 : vector<2x512xf32>
    %476 = vector.extract_strided_slice %475 {offsets = [0, 0], sizes = [2, 128], strides = [1, 1]} : vector<2x512xf32> to vector<2x128xf32>
    %477 = arith.negf %476 : vector<2x128xf32>
    %478 = math.exp %477 : vector<2x128xf32>
    %cst_95 = arith.constant 1.000000e+00 : f32
    %479 = vector.broadcast %cst_95 : f32 to vector<2x128xf32>
    %480 = arith.addf %479, %478 : vector<2x128xf32>
    %481 = arith.divf %479, %480 : vector<2x128xf32>
    %482 = vector.extract_strided_slice %475 {offsets = [0, 128], sizes = [2, 128], strides = [1, 1]} : vector<2x512xf32> to vector<2x128xf32>
    %483 = arith.negf %482 : vector<2x128xf32>
    %484 = math.exp %483 : vector<2x128xf32>
    %cst_96 = arith.constant 1.000000e+00 : f32
    %485 = vector.broadcast %cst_96 : f32 to vector<2x128xf32>
    %486 = arith.addf %485, %484 : vector<2x128xf32>
    %487 = arith.divf %485, %486 : vector<2x128xf32>
    %488 = vector.extract_strided_slice %475 {offsets = [0, 256], sizes = [2, 128], strides = [1, 1]} : vector<2x512xf32> to vector<2x128xf32>
    %489 = math.tanh %488 : vector<2x128xf32>
    %490 = vector.extract_strided_slice %475 {offsets = [0, 384], sizes = [2, 128], strides = [1, 1]} : vector<2x512xf32> to vector<2x128xf32>
    %491 = arith.negf %490 : vector<2x128xf32>
    %492 = math.exp %491 : vector<2x128xf32>
    %cst_97 = arith.constant 1.000000e+00 : f32
    %493 = vector.broadcast %cst_97 : f32 to vector<2x128xf32>
    %494 = arith.addf %493, %492 : vector<2x128xf32>
    %495 = arith.divf %493, %494 : vector<2x128xf32>
    %496 = arith.mulf %487, %467 : vector<2x128xf32>
    %497 = arith.mulf %481, %489 : vector<2x128xf32>
    %498 = arith.addf %496, %497 : vector<2x128xf32>
    %499 = math.tanh %498 : vector<2x128xf32>
    %500 = arith.mulf %495, %499 : vector<2x128xf32>
    %cst_98 = arith.constant dense<0.000000e+00> : vector<2x128xf32>
    %501 = tpu.matmul %500, %28, %cst_98 {dimension_numbers = #tpu.dot_dimension_numbers<[1], [0], [0], [1], [0, 0, 1, 1], [], []>} : vector<2x128xf32>, vector<128x128xf32>, vector<2x128xf32> -> vector<2x128xf32>
    %502 = vector.broadcast %29 : vector<1x128xf32> to vector<2x128xf32>
    %503 = arith.addf %501, %502 : vector<2x128xf32>
    %504 = tpu.concatenate %286, %317, %348, %379, %410, %441, %472, %503 in 0 : vector<2x128xf32>, vector<2x128xf32>, vector<2x128xf32>, vector<2x128xf32>, vector<2x128xf32>, vector<2x128xf32>, vector<2x128xf32>, vector<2x128xf32> -> vector<16x128xf32>
    %505 = tpu.iota {dimensions = array<i32: 1>} : vector<16x128xi32>
    %c32_i32 = arith.constant 32 : i32
    %506 = vector.broadcast %c32_i32 : i32 to vector<16x128xi32>
    %507 = arith.cmpi slt, %505, %506 : vector<16x128xi32>
    %cst_99 = arith.constant -1.000000e+30 : f32
    %508 = vector.broadcast %cst_99 : f32 to vector<16x128xf32>
    %509 = arith.select %507, %504, %508 : vector<16x128xi1>, vector<16x128xf32>
    %cst_100 = arith.constant dense<0xFF800000> : vector<16xf32>
    %510 = vector.multi_reduction <maximumf>, %509, %cst_100 [1] : vector<16x128xf32> to vector<16xf32>
    %511 = vector.shape_cast %510 : vector<16xf32> to vector<16x1xf32>
    %512 = vector.broadcast %511 : vector<16x1xf32> to vector<16x128xf32>
    %513 = arith.subf %509, %512 : vector<16x128xf32>
    %514 = math.exp %513 : vector<16x128xf32>
    %cst_101 = arith.constant dense<0.000000e+00> : vector<16xf32>
    %515 = vector.multi_reduction <add>, %514, %cst_101 [1] : vector<16x128xf32> to vector<16xf32>
    %516 = vector.shape_cast %515 : vector<16xf32> to vector<16x1xf32>
    %517 = math.log %516 : vector<16x1xf32>
    %518 = vector.broadcast %517 : vector<16x1xf32> to vector<16x128xf32>
    %519 = arith.subf %513, %518 : vector<16x128xf32>
    %c0_102 = arith.constant 0 : index
    %c0_103 = arith.constant 0 : index
    %520 = vector.load %arg11[%c0_102, %c0_103] : memref<16x128xf32, #tpu.memory_space<vmem>>, vector<16x128xf32>
    tpu.vector_store %arg11[%c0_102, %c0_103], %519 {strides = array<i32>} : memref<16x128xf32, #tpu.memory_space<vmem>>, vector<16x128xf32>,
    return
  }
  func.func @transform_0(%arg0: i32) -> (i32, i32) {
    %c0_i32 = arith.constant 0 : i32
    %c0_i32_0 = arith.constant 0 : i32
    %c0_i32_1 = arith.constant 0 : i32
    return %c0_i32, %c0_i32_0 : i32, i32
  }
  func.func @transform_1(%arg0: i32) -> (i32, i32) {
    %c0_i32 = arith.constant 0 : i32
    %c0_i32_0 = arith.constant 0 : i32
    %c0_i32_1 = arith.constant 0 : i32
    return %c0_i32, %c0_i32_0 : i32, i32
  }
  func.func @transform_2(%arg0: i32) -> (i32, i32) {
    %c0_i32 = arith.constant 0 : i32
    %c0_i32_0 = arith.constant 0 : i32
    %c0_i32_1 = arith.constant 0 : i32
    return %c0_i32, %c0_i32_0 : i32, i32
  }
  func.func @transform_3(%arg0: i32) -> (i32, i32) {
    %c0_i32 = arith.constant 0 : i32
    %c0_i32_0 = arith.constant 0 : i32
    %c0_i32_1 = arith.constant 0 : i32
    return %c0_i32, %c0_i32_0 : i32, i32
  }
  func.func @transform_4(%arg0: i32) -> (i32, i32) {
    %c0_i32 = arith.constant 0 : i32
    %c0_i32_0 = arith.constant 0 : i32
    %c0_i32_1 = arith.constant 0 : i32
    return %c0_i32, %c0_i32_0 : i32, i32
  }
  func.func @transform_5(%arg0: i32) -> (i32, i32) {
    %c0_i32 = arith.constant 0 : i32
    %c0_i32_0 = arith.constant 0 : i32
    %c0_i32_1 = arith.constant 0 : i32
    return %c0_i32, %c0_i32_0 : i32, i32
  }
  func.func @transform_6(%arg0: i32) -> (i32, i32) {
    %c0_i32 = arith.constant 0 : i32
    %c0_i32_0 = arith.constant 0 : i32
    %c0_i32_1 = arith.constant 0 : i32
    return %c0_i32, %c0_i32_0 : i32, i32
  }
  func.func @transform_7(%arg0: i32) -> (i32, i32) {
    %c0_i32 = arith.constant 0 : i32
    %c0_i32_0 = arith.constant 0 : i32
    %c0_i32_1 = arith.constant 0 : i32
    return %c0_i32, %c0_i32_0 : i32, i32
  }
  func.func @transform_8(%arg0: i32) -> (i32, i32) {
    %c0_i32 = arith.constant 0 : i32
    %c0_i32_0 = arith.constant 0 : i32
    %c0_i32_1 = arith.constant 0 : i32
    return %c0_i32, %c0_i32_0 : i32, i32
  }
  func.func @transform_9(%arg0: i32) -> (i32, i32) {
    %c0_i32 = arith.constant 0 : i32
    %c0_i32_0 = arith.constant 0 : i32
    %c0_i32_1 = arith.constant 0 : i32
    return %c0_i32, %c0_i32_0 : i32, i32
  }
  func.func @transform_10(%arg0: i32) -> (i32, i32) {
    %c0_i32 = arith.constant 0 : i32
    %c0_i32_0 = arith.constant 0 : i32
    %c0_i32_1 = arith.constant 0 : i32
    return %c0_i32, %c0_i32_0 : i32, i32
  }
}

</mosaic_0001>

<bundles_post_ra>
// kernel: forward.1
= control target key start
LH: loop header
LB: loop body
LE: loop exit
PB: predicated region body
PF: predicated region fallthrough
CT: control target
= control target key end

     0   :  { %15 = vsyncpa [#allocation3], 0  ;;  %s8112_s0 = inlined_call_operand.vmem [shape: s32[16,1], index: 0, kind: input, shape index: {}]   ;;  %s8113_s1 = inlined_call_operand.vmem [shape: s32[16,1], index: 1, kind: input, shape index: {}]   ;;  %s8114_s2 = inlined_call_operand.vmem [shape: f32[128,32], index: 2, kind: input, shape index: {}]   ;;  %s8115_s3 = inlined_call_operand.vmem [shape: f32[128,32], index: 3, kind: input, shape index: {}]   ;;  %s8116_s4 = inlined_call_operand.vmem [shape: f32[32,1024], index: 4, kind: input, shape index: {}]   ;;  %s8117_s5 = inlined_call_operand.vmem [shape: f32[1,1024], index: 5, kind: input, shape index: {}]   ;;  %s8118_s6 = inlined_call_operand.hbm [shape: f32[128,512], index: 6, kind: input, shape index: {}]   ;;  %s8119_s7 = inlined_call_operand.hbm [shape: f32[128,512], index: 7, kind: input, shape index: {}]   ;;  %s8120_s8 = inlined_call_operand.vmem [shape: f32[128,128], index: 8, kind: input, shape index: {}]   ;;  %s8121_s9 = inlined_call_operand.vmem [shape: f32[1,128], index: 9, kind: input, shape index: {}]   ;;  %s8122_s10 = inlined_call_operand.vmem [shape: f32[16,128], index: 10, kind: output, shape index: {}]  }
   0x1   :  { %16 = vsyncpa [#allocation5], 0  ;;  %s6639_s13 = smov [#allocation2]   ;;  %s6591_s17 = scalar_lea.hbm %s8118_s6, 8192 }
   0x2   :  { %s34_s14 = sshll.u32 %s6639_s13, 4  ;;  %p6592_p0 = scmp.ne.s32.totalorder %s8118_s6, %s6591_s17  ;;  %s35_s14 = int_to_ptr.vmem [resolvable:$true] %s34_s14 }
   0x3   :  { %p6595_p1 = scmp.lt.u32.totalorder %s6591_s17, %s8118_s6 }
   0x5   :  { %p6597_p2 = pnand %p6595_p1, %p6592_p0 }
   0x7   :  { %6600 = shalt.err (!%p6597_p2)
}
   0x8   :  { %s6601_s22 = scalar_lea.vmem %s35_s14, 8192  ;;  %p6606_p4 = scmp.lt.s32.totalorder %s35_s14, %s35_s14 }
   0x9   :  { %p6602_p3 = scmp.ne.s32.totalorder %s35_s14, %s6601_s22  ;;  %p6607_p5 = scmp.lt.s32.totalorder %s6601_s22, %s6601_s22 }
   0xb   :  { %p6608_p6 = por %p6607_p5, %p6606_p4 }
   0xd   :  { %p6609_p7 = pnand %p6608_p6, %p6602_p3 }
   0xf   :  { %6612 = shalt.err (!%p6609_p7)
}
  0x10   :  { %s6640_s23 = smov 512   ;;  %s6641_s24 = smov 32  }
  0x11   :  { %40 = dma.hbm_to_vmem [thread:$0]  %s8118_s6, 8192, %s35_s14, [#allocation3], %s6640_s23, %s6640_s23, %s6641_s24  }
  0x12   :  { %s6642_s27 = smov [#allocation4]   ;;  %s6613_s11 = scalar_lea.hbm %s8119_s7, 8192 }
  0x13   :  { %s46_s28 = sshll.u32 %s6642_s27, 4  ;;  %p6614_p8 = scmp.ne.s32.totalorder %s8119_s7, %s6613_s11  ;;  %s47_s28 = int_to_ptr.vmem [resolvable:$true] %s46_s28 }
  0x14   :  { %p6617_p9 = scmp.lt.u32.totalorder %s6613_s11, %s8119_s7 }
  0x16   :  { %p6619_p10 = pnand %p6617_p9, %p6614_p8 }
  0x18   :  { %6622 = shalt.err (!%p6619_p10)
}
  0x19   :  { %s6623_s17 = scalar_lea.vmem %s47_s28, 8192  ;;  %p6628_p12 = scmp.lt.s32.totalorder %s47_s28, %s47_s28 }
  0x1a   :  { %p6624_p11 = scmp.ne.s32.totalorder %s47_s28, %s6623_s17  ;;  %p6629_p13 = scmp.lt.s32.totalorder %s6623_s17, %s6623_s17 }
  0x1c   :  { %p6630_p0 = por %p6629_p13, %p6628_p12 }
  0x1e   :  { %p6631_p1 = pnand %p6630_p0, %p6624_p11 }
  0x20   :  { %6634 = shalt.err (!%p6631_p1)
}
  0x21   :  { %52 = dma.hbm_to_vmem [thread:$0]  %s8119_s7, 8192, %s47_s28, [#allocation5], %s6640_s23, %s6640_s23, %s6641_s24  }
  0x22   :  { %6635 = dma.done.wait [#allocation3], 8192  }
  0x23   :  { %6636 = vsyncadd [#allocation3], 4294959104 }
  0x24   :  { %6637 = dma.done.wait [#allocation5], 8192  }
  0x25   :  { %6638 = vsyncadd [#allocation5], 4294959104  ;;  %v6643_v0 = vmov 0   ;;  %v63_v1 = vld [vmem:[%s8112_s0] sm:$0xff]  ;;  %v64_v3 = vld [vmem:[%s8112_s0 + $0x8] sm:$0xff]  ;;  %v65_v59 = vlaneseq  ;;  %vm345_vm4 = vcmask 261120  }
  0x26   :  { %6324 = vset.pattern.permute.xlu0 %v6643_v0  ;;  %6325 = vset.pattern.permute.xlu1 %v6643_v0  ;;  %v77_v2 = vld [vmem:[%s8113_s1] sm:$0xff]  ;;  %v78_v4 = vld [vmem:[%s8113_s1 + $0x8] sm:$0xff]  ;;  %v91_v10 = vld [vmem:[%s8114_s2 + $0x10] sm:$0xff]  ;;  %vm6647_vm5 = vmmov 0   ;;  %vm4372_vm6 = vcmask 1041408   ;;  %vm4374_vm7 = vcmask 1043456  }
  0x27   :  { %68 = vperm.xlu0 %6324, %v63_v1   ;;  %80 = vperm.xlu1 %6325, %v77_v2   ;;  %v89_v5 = vld [vmem:[%s8114_s2] sm:$0xff]  ;;  %v90_v6 = vld [vmem:[%s8114_s2 + $0x8] sm:$0xff]  ;;  %v92_v12 = vld [vmem:[%s8114_s2 + $0x18] sm:$0xff]  ;;  %v6848_v60 = vand.u32 127, %v65_v59  ;;  %vm4376_vm8 = vcmask 1045504  }
  0x28   :  { %v5003_v7 = vpack.c.bf16 %v90_v6, %v89_v5  ;;  %v180_v8 = vld [vmem:[%s8115_s3] sm:$0xff]  ;;  %v181_v9 = vld [vmem:[%s8115_s3 + $0x8] sm:$0xff]  ;;  %v182_v13 = vld [vmem:[%s8115_s3 + $0x10] sm:$0xff]  ;;  %v5007_v15 = vpack.c.bf16 %v92_v12, %v91_v10 }
  0x29   :  { %v5035_v11 = vpack.c.bf16 %v181_v9, %v180_v8  ;;  %v183_v14 = vld [vmem:[%s8115_s3 + $0x18] sm:$0xff]  ;;  %v93_v17 = vld [vmem:[%s8114_s2 + $0x20] sm:$0xff]  ;;  %v94_v18 = vld [vmem:[%s8114_s2 + $0x28] sm:$0xff]  ;;  %8139 = vst [vmem:[#allocation8_spill] sm:$0xff] %v6848_v60 }
  0x2a   :  { %5004 = vmatprep.subr.bf16.mxu0 %v5003_v7  ;;  %v5039_v16 = vpack.c.bf16 %v183_v14, %v182_v13  ;;  %v184_v19 = vld [vmem:[%s8115_s3 + $0x20] sm:$0xff]  ;;  %v185_v20 = vld [vmem:[%s8115_s3 + $0x28] sm:$0xff]  ;;  %v5011_v21 = vpack.c.bf16 %v94_v18, %v93_v17  ;;  %v95_v23 = vld [vmem:[%s8114_s2 + $0x30] sm:$0xff] }
  0x2b   :  { %71 = vperm.xlu0 %6324, %v64_v3   ;;  %83 = vperm.xlu1 %6325, %v78_v4   ;;  %v5043_v22 = vpack.c.bf16 %v185_v20, %v184_v19  ;;  %v96_v24 = vld [vmem:[%s8114_s2 + $0x38] sm:$0xff]  ;;  %v186_v25 = vld [vmem:[%s8115_s3 + $0x30] sm:$0xff]  ;;  %v97_v29 = vld [vmem:[%s8114_s2 + $0x40] sm:$0xff]  ;;  %v8123_v20 = vmov 0.0  }
  0x2c   :  { %5006 = vmatpush3.bf16.msra.mxu0 %v5003_v7  ;;  %5036 = vmatprep.subr.bf16.mxu1 %v5035_v11  ;;  %v187_v26 = vld [vmem:[%s8115_s3 + $0x38] sm:$0xff]  ;;  %v5015_v27 = vpack.c.bf16 %v96_v24, %v95_v23  ;;  %v98_v30 = vld [vmem:[%s8114_s2 + $0x48] sm:$0xff]  ;;  %v188_v31 = vld [vmem:[%s8115_s3 + $0x40] sm:$0xff]  ;;  %v6644_v7 = vmov 1.0  }
  0x2d   :  { %5008 = vmatprep.subr.bf16.mxu0 %v5007_v15  ;;  %5038 = vmatpush3.bf16.msra.mxu1 %v5035_v11  ;;  %v5047_v28 = vpack.c.bf16 %v187_v26, %v186_v25  ;;  %v189_v32 = vld [vmem:[%s8115_s3 + $0x48] sm:$0xff]  ;;  %v5019_v33 = vpack.c.bf16 %v98_v30, %v97_v29  ;;  %v99_v35 = vld [vmem:[%s8114_s2 + $0x50] sm:$0xff]  ;;  %v100_v36 = vld [vmem:[%s8114_s2 + $0x58] sm:$0xff] }
  0x2e   :  { %5040 = vmatprep.subr.bf16.mxu1 %v5039_v16  ;;  %v5051_v34 = vpack.c.bf16 %v189_v32, %v188_v31  ;;  %v190_v37 = vld [vmem:[%s8115_s3 + $0x50] sm:$0xff]  ;;  %v191_v38 = vld [vmem:[%s8115_s3 + $0x58] sm:$0xff]  ;;  %v5023_v39 = vpack.c.bf16 %v100_v36, %v99_v35  ;;  %v101_v41 = vld [vmem:[%s8114_s2 + $0x60] sm:$0xff] }
  0x2f   :  { %v5055_v40 = vpack.c.bf16 %v191_v38, %v190_v37  ;;  %v102_v42 = vld [vmem:[%s8114_s2 + $0x68] sm:$0xff]  ;;  %v192_v43 = vld [vmem:[%s8115_s3 + $0x60] sm:$0xff]  ;;  %v103_v47 = vld [vmem:[%s8114_s2 + $0x70] sm:$0xff] }
  0x30   :  { %5010 = vmatpush3.bf16.msra.mxu0 %v5007_v15  ;;  %v193_v44 = vld [vmem:[%s8115_s3 + $0x68] sm:$0xff]  ;;  %v5027_v45 = vpack.c.bf16 %v102_v42, %v101_v41  ;;  %v104_v48 = vld [vmem:[%s8114_s2 + $0x78] sm:$0xff]  ;;  %v194_v49 = vld [vmem:[%s8115_s3 + $0x70] sm:$0xff] }
  0x31   :  { %5012 = vmatprep.subr.bf16.mxu0 %v5011_v21  ;;  %5042 = vmatpush3.bf16.msra.mxu1 %v5039_v16  ;;  %v5059_v46 = vpack.c.bf16 %v193_v44, %v192_v43  ;;  %v195_v50 = vld [vmem:[%s8115_s3 + $0x78] sm:$0xff]  ;;  %v5031_v51 = vpack.c.bf16 %v104_v48, %v103_v47  ;;  %v272_v53 = vld [vmem:[%s8116_s4 + $0x8] sm:$0xff]  ;;  %v271_v61 = vld [vmem:[%s8116_s4] sm:$0xff] }
  0x32   :  { %5044 = vmatprep.subr.bf16.mxu1 %v5043_v22  ;;  %v5063_v52 = vpack.c.bf16 %v195_v50, %v194_v49  ;;  %v280_v54 = vld [vmem:[%s8116_s4 + $0x48] sm:$0xff]  ;;  %v274_v55 = vld [vmem:[%s8116_s4 + $0x18] sm:$0xff]  ;;  %v279_v62 = vld [vmem:[%s8116_s4 + $0x40] sm:$0xff] }
  0x33   :  { %v282_v56 = vld [vmem:[%s8116_s4 + $0x58] sm:$0xff]  ;;  %v5067_v57 = vpack.c.bf16 %v280_v54, %v272_v53  ;;  %v273_v1 = vld [vmem:[%s8116_s4 + $0x10] sm:$0xff]  ;;  %v288_v3 = vld [vmem:[%s8116_s4 + $0x88] sm:$0xff]  ;;  %v5069_v8 = vpack.c.bf16 %v279_v62, %v271_v61 }
  0x34   :  { %5014 = vmatpush3.bf16.msra.mxu0 %v5011_v21  ;;  %v5075_v58 = vpack.c.bf16 %v282_v56, %v274_v55  ;;  %v281_v2 = vld [vmem:[%s8116_s4 + $0x50] sm:$0xff]  ;;  %v296_v4 = vld [vmem:[%s8116_s4 + $0xc8] sm:$0xff]  ;;  %v290_v5 = vld [vmem:[%s8116_s4 + $0x98] sm:$0xff] }
  0x35   :  { %5016 = vmatprep.subr.bf16.mxu0 %v5015_v27  ;;  %5046 = vmatpush3.bf16.msra.mxu1 %v5043_v22  ;;  %v298_v6 = vld [vmem:[%s8116_s4 + $0xd8] sm:$0xff]  ;;  %v5077_v9 = vpack.c.bf16 %v281_v2, %v273_v1  ;;  %v287_v10 = vld [vmem:[%s8116_s4 + $0x80] sm:$0xff]  ;;  %v5071_v13 = vpack.c.bf16 %v296_v4, %v288_v3  ;;  %v289_v16 = vld [vmem:[%s8116_s4 + $0x90] sm:$0xff] }
  0x36   :  { %5048 = vmatprep.subr.bf16.mxu1 %v5047_v28  ;;  %v295_v14 = vld [vmem:[%s8116_s4 + $0xc0] sm:$0xff]  ;;  %v5079_v15 = vpack.c.bf16 %v298_v6, %v290_v5  ;;  %v297_v17 = vld [vmem:[%s8116_s4 + $0xd0] sm:$0xff]  ;;  %v276_v21 = vld [vmem:[%s8116_s4 + $0x28] sm:$0xff] }
  0x37   :  { %v5073_v18 = vpack.c.bf16 %v295_v14, %v287_v10  ;;  %v5081_v19 = vpack.c.bf16 %v297_v17, %v289_v16  ;;  %v284_v22 = vld [vmem:[%s8116_s4 + $0x68] sm:$0xff]  ;;  %v278_v24 = vld [vmem:[%s8116_s4 + $0x38] sm:$0xff]  ;;  %v277_v31 = vld [vmem:[%s8116_s4 + $0x30] sm:$0xff] }
  0x38   :  { %5018 = vmatpush3.bf16.msra.mxu0 %v5015_v27  ;;  %v5083_v23 = vpack.c.bf16 %v284_v22, %v276_v21  ;;  %v286_v25 = vld [vmem:[%s8116_s4 + $0x78] sm:$0xff]  ;;  %v275_v27 = vld [vmem:[%s8116_s4 + $0x20] sm:$0xff]  ;;  %v292_v29 = vld [vmem:[%s8116_s4 + $0xa8] sm:$0xff] }
  0x39   :  { %5020 = vmatprep.subr.bf16.mxu0 %v5019_v33  ;;  %5050 = vmatpush3.bf16.msra.mxu1 %v5047_v28  ;;  %v5091_v26 = vpack.c.bf16 %v286_v25, %v278_v24  ;;  %v283_v28 = vld [vmem:[%s8116_s4 + $0x60] sm:$0xff]  ;;  %v300_v30 = vld [vmem:[%s8116_s4 + $0xe8] sm:$0xff]  ;;  %v285_v32 = vld [vmem:[%s8116_s4 + $0x70] sm:$0xff] }
  0x3a   :  { %5052 = vmatprep.subr.bf16.mxu1 %v5051_v34  ;;  %v5087_v36 = vpack.c.bf16 %v300_v30, %v292_v29  ;;  %v291_v37 = vld [vmem:[%s8116_s4 + $0xa0] sm:$0xff]  ;;  %v5093_v41 = vpack.c.bf16 %v285_v32, %v277_v31  ;;  %v294_v42 = vld [vmem:[%s8116_s4 + $0xb8] sm:$0xff]  ;;  %v293_v44 = vld [vmem:[%s8116_s4 + $0xb0] sm:$0xff] }
  0x3b   :  { %v299_v38 = vld [vmem:[%s8116_s4 + $0xe0] sm:$0xff]  ;;  %v302_v43 = vld [vmem:[%s8116_s4 + $0xf8] sm:$0xff]  ;;  %v703_v47 = vld [vmem:[#allocation2 + $0x28] sm:$0xff] }
  0x3c   :  { %5022 = vmatpush3.bf16.msra.mxu0 %v5019_v33  ;;  %v5085_v33 = vpack.c.bf16 %v283_v28, %v275_v27  ;;  %v5089_v48 = vpack.c.bf16 %v299_v38, %v291_v37  ;;  %v5095_v49 = vpack.c.bf16 %v302_v43, %v294_v42  ;;  %v705_v53 = vld [vmem:[#allocation2 + $0x38] sm:$0xff]  ;;  %v698_v55 = vld [vmem:[#allocation2] sm:$0xff]  ;;  %v707_v61 = vld [vmem:[#allocation2 + $0x48] sm:$0xff] }
  0x3d   :  { %5024 = vmatprep.subr.bf16.mxu0 %v5023_v39  ;;  %5054 = vmatpush3.bf16.msra.mxu1 %v5051_v34  ;;  %v702_v56 = vld [vmem:[#allocation2 + $0x20] sm:$0xff]  ;;  %v711_v62 = vld [vmem:[#allocation2 + $0x68] sm:$0xff]  ;;  %v708_v5 = vld [vmem:[#allocation2 + $0x50] sm:$0xff] }
  0x3e   :  { %5056 = vmatprep.subr.bf16.mxu1 %v5055_v40  ;;  %v6974_v1 = vpack.c.bf16 %v702_v56, %v698_v55  ;;  %v706_v3 = vld [vmem:[#allocation2 + $0x40] sm:$0xff]  ;;  %v712_v6 = vld [vmem:[#allocation2 + $0x70] sm:$0xff]  ;;  %v719_v10 = vld [vmem:[#allocation2 + $0xa8] sm:$0xff] }
  0x3f   :  { %v710_v4 = vld [vmem:[#allocation2 + $0x60] sm:$0xff]  ;;  %v6988_v14 = vpack.c.bf16 %v712_v6, %v708_v5  ;;  %v716_v17 = vld [vmem:[#allocation2 + $0x90] sm:$0xff]  ;;  %v723_v22 = vld [vmem:[#allocation2 + $0xc8] sm:$0xff] }
  0x40   :  { %5026 = vmatpush3.bf16.msra.mxu0 %v5023_v39  ;;  %v718_v16 = vld [vmem:[#allocation2 + $0xa0] sm:$0xff]  ;;  %v725_v24 = vld [vmem:[#allocation2 + $0xd8] sm:$0xff]  ;;  %v724_v30 = vld [vmem:[#allocation2 + $0xd0] sm:$0xff] }
  0x41   :  { %5028 = vmatprep.subr.bf16.mxu0 %v5027_v45  ;;  %5058 = vmatpush3.bf16.msra.mxu1 %v5055_v40  ;;  %v729_v25 = vld [vmem:[#allocation2 + $0xf8] sm:$0xff]  ;;  %v722_v28 = vld [vmem:[#allocation2 + $0xc0] sm:$0xff]  ;;  %v728_v31 = vld [vmem:[#allocation2 + $0xf0] sm:$0xff] }
  0x42   :  { %5060 = vmatprep.subr.bf16.mxu1 %v5059_v46  ;;  %v726_v29 = vld [vmem:[#allocation2 + $0xe0] sm:$0xff]  ;;  %v731_v32 = vld [vmem:[#allocation2 + $0x108] sm:$0xff]  ;;  %v733_v37 = vld [vmem:[#allocation2 + $0x118] sm:$0xff] }
  0x43   :  { %v737_v38 = vld [vmem:[#allocation2 + $0x138] sm:$0xff]  ;;  %v730_v42 = vld [vmem:[#allocation2 + $0x100] sm:$0xff] }
  0x44   :  { %5030 = vmatpush3.bf16.msra.mxu0 %v5027_v45  ;;  %v301_v45 = vld [vmem:[%s8116_s4 + $0xf0] sm:$0xff]  ;;  %v734_v43 = vld [vmem:[#allocation2 + $0x120] sm:$0xff] }
  0x45   :  { %5032 = vmatprep.subr.bf16.mxu0 %v5031_v51  ;;  %5062 = vmatpush3.bf16.msra.mxu1 %v5059_v46  ;;  %v699_v46 = vld [vmem:[#allocation2 + $0x8] sm:$0xff]  ;;  %v5097_v50 = vpack.c.bf16 %v301_v45, %v293_v44  ;;  %v7030_v45 = vpack.c.bf16 %v737_v38, %v733_v37  ;;  %v738_v55 = vld [vmem:[#allocation2 + $0x140] sm:$0xff]  ;;  %v306_v38 = vshrl.u32 %v65_v59, 7 }
  0x46   :  { %5064 = vmatprep.subr.bf16.mxu1 %v5063_v52  ;;  %v742_v56 = vld [vmem:[#allocation2 + $0x160] sm:$0xff] }
  0x47   :  { %v746_v6 = vld [vmem:[#allocation2 + $0x180] sm:$0xff] }
  0x48   :  { %5034 = vmatpush3.bf16.msra.mxu0 %v5031_v51  ;;  %v6950_v51 = vpack.c.bf16 %v703_v47, %v699_v46  ;;  %v732_v46 = vld [vmem:[#allocation2 + $0x110] sm:$0xff]  ;;  %v739_v47 = vld [vmem:[#allocation2 + $0x148] sm:$0xff] }
  0x49   :  { %5066 = vmatpush3.bf16.msra.mxu1 %v5063_v52  ;;  %5068 = vmatprep.subr.bf16.mxu0 %v5067_v57  ;;  %v701_v52 = vld [vmem:[#allocation2 + $0x18] sm:$0xff]  ;;  %v700_v57 = vld [vmem:[#allocation2 + $0x10] sm:$0xff] }
  0x4a   :  { %5076 = vmatprep.subr.bf16.mxu1 %v5075_v58  ;;  %v6958_v54 = vpack.c.bf16 %v705_v53, %v701_v52  ;;  %v704_v58 = vld [vmem:[#allocation2 + $0x30] sm:$0xff]  ;;  %v7040_v52 = vpack.c.bf16 %v734_v43, %v730_v42  ;;  %v307_v42 = vsub.s32 0, %v306_v38  ;;  %v315_v43 = vsub.s32 2, %v306_v38 }
  0x4b   :  { %v6976_v2 = vpack.c.bf16 %v704_v58, %v700_v57 }
  0xa6   :  { %v69_v63 = vpop.permute.xlu0 %68  ;;  %v81_v0 = vpop.permute.xlu1 %80 }
  0xa7   :  { %vm73_vm0 = vcmp.eq.s32.totalorder %v69_v63, %v6848_v60  ;;  %vm85_vm1 = vcmp.eq.s32.totalorder %v81_v0, %v6848_v60  ;;  %v709_v63 = vld [vmem:[#allocation2 + $0x58] sm:$0xff] }
  0xa8   :  { %4685 = vmatprep.mubr.msk.f32.mxu0 %vm73_vm0, %v6644_v7  ;;  %4720 = vmatprep.mubr.msk.f32.mxu1 %vm85_vm1, %v6644_v7  ;;  %v713_v0 = vld [vmem:[#allocation2 + $0x78] sm:$0xff] }
  0xaa   :  { %v72_v11 = vpop.permute.xlu0 %71  ;;  %v84_v12 = vpop.permute.xlu1 %83 }
  0xab   :  { %vm74_vm2 = vcmp.eq.s32.totalorder %v72_v11, %v6848_v60  ;;  %vm86_vm3 = vcmp.eq.s32.totalorder %v84_v12, %v6848_v60  ;;  %v717_v11 = vld [vmem:[#allocation2 + $0x98] sm:$0xff] }
  0xac   :  { %4686 = vmatmul.mubr.msk.f32.vlgmr.msra.gmra.mrb[0].mxu0 %vm74_vm2, %v6644_v7  ;;  %4721 = vmatmul.mubr.msk.f32.vlgmr.msra.gmra.mrb[0].mxu1 %vm86_vm3, %v6644_v7  ;;  %v6978_v7 = vpack.c.bf16 %v711_v62, %v707_v61  ;;  %v721_v12 = vld [vmem:[#allocation2 + $0xb8] sm:$0xff]  ;;  %v740_v61 = vld [vmem:[#allocation2 + $0x150] sm:$0xff]  ;;  %v747_v62 = vld [vmem:[#allocation2 + $0x188] sm:$0xff] }
  0xad   :  { %5070 = vmatpush1.bf16.msra.mxu0 %v5069_v8  ;;  %5078 = vmatpush1.bf16.msra.mxu1 %v5077_v9  ;;  %v6980_v8 = vpack.c.bf16 %v713_v0, %v709_v63  ;;  %v715_v9 = vld [vmem:[#allocation2 + $0x88] sm:$0xff]  ;;  %v6996_v21 = vpack.c.bf16 %v721_v12, %v717_v11  ;;  %v749_v0 = vld [vmem:[#allocation2 + $0x198] sm:$0xff]  ;;  %v748_v12 = vld [vmem:[#allocation2 + $0x190] sm:$0xff] }
  0xae   :  { %5072 = vmatprep.subr.bf16.mxu0 %v5071_v13  ;;  %5080 = vmatprep.subr.bf16.mxu1 %v5079_v15  ;;  %v6986_v13 = vpack.c.bf16 %v710_v4, %v706_v3  ;;  %v714_v15 = vld [vmem:[#allocation2 + $0x80] sm:$0xff]  ;;  %v751_v63 = vld [vmem:[#allocation2 + $0x1a8] sm:$0xff]  ;;  %v753_v3 = vld [vmem:[#allocation2 + $0x1b8] sm:$0xff]  ;;  %v7054_v4 = vpack.c.bf16 %v742_v56, %v738_v55 }
  0xaf   :  { %422 = vmatprep.mubr.f32.mxu0 %v8123_v20  ;;  %507 = vmatprep.mubr.f32.mxu1 %v8123_v20  ;;  %v7062_v11 = vpack.c.bf16 %v753_v3, %v749_v0 }
  0xb1   :  { %5074 = vmatpush1.bf16.msra.mxu0 %v5073_v18  ;;  %5082 = vmatpush1.bf16.msra.mxu1 %v5081_v19  ;;  %v720_v18 = vld [vmem:[#allocation2 + $0xb0] sm:$0xff]  ;;  %v6994_v19 = vpack.c.bf16 %v719_v10, %v715_v9  ;;  %v750_v9 = vld [vmem:[#allocation2 + $0x1a0] sm:$0xff]  ;;  %v7060_v10 = vpack.c.bf16 %v751_v63, %v747_v62 }
  0xb2   :  { %5084 = vmatprep.subr.bf16.mxu0 %v5083_v23  ;;  %5092 = vmatprep.subr.bf16.mxu1 %v5091_v26  ;;  %v727_v23 = vld [vmem:[#allocation2 + $0xe8] sm:$0xff]  ;;  %v7004_v26 = vpack.c.bf16 %v718_v16, %v714_v15  ;;  %v7006_v27 = vpack.c.bf16 %v720_v18, %v716_v17  ;;  %v752_v15 = vld [vmem:[#allocation2 + $0x1b0] sm:$0xff]  ;;  %v757_v18 = vld [vmem:[#allocation2 + $0x1d8] sm:$0xff] }
  0xb3   :  { %v755_v16 = vld [vmem:[#allocation2 + $0x1c8] sm:$0xff] }
  0xb4   :  { %v759_v17 = vld [vmem:[#allocation2 + $0x1e8] sm:$0xff] }
 0x17f   :  { %v6922_v34 = vpop.f32.mrb[0].mxu0  ;;  %v6924_v35 = vpop.f32.mrb[0].mxu1 }
 0x180   :  { %v171_v39 = vpop.f32.mrb[1].mxu0  ;;  %v6932_v40 = vpop.f32.mrb[1].mxu1 }
 0x181   :  { %4416 = vmatmul.mubr.msk.f32.vlgmr.msra.gmra.mrb[2].mxu0 %vm345_vm4, %v171_v39  ;;  %4420 = vmatmul.mubr.msk.f32.vlgmr.msra.gmra.mrb[2].mxu1 %vm345_vm4, %v171_v39 }
 0x182   :  { %5086 = vmatpush1.bf16.msra.mxu0 %v5085_v33  ;;  %428 = vmatprep.mubr.f32.mxu0 %v8123_v20  ;;  %v7012_v33 = vpack.c.bf16 %v727_v23, %v723_v22  ;;  %v761_v22 = vld [vmem:[#allocation2 + $0x1f8] sm:$0xff]  ;;  %v7066_v23 = vpack.c.bf16 %v750_v9, %v746_v6 }
 0x183   :  { %513 = vmatprep.mubr.f32.mxu1 %v8123_v20  ;;  %5088 = vmatprep.subr.bf16.mxu0 %v5087_v36  ;;  %v735_v36 = vld [vmem:[#allocation2 + $0x128] sm:$0xff] }
 0x184   :  { %5094 = vmatpush1.bf16.msra.mxu1 %v5093_v41  ;;  %v7024_v41 = vpack.c.bf16 %v728_v31, %v724_v30  ;;  %v7028_v44 = vpack.c.bf16 %v735_v36, %v731_v32  ;;  %v758_v30 = vld [vmem:[#allocation2 + $0x1e0] sm:$0xff]  ;;  %v756_v31 = vld [vmem:[#allocation2 + $0x1d0] sm:$0xff] }
 0x185   :  { %4417 = vmatmul.mubr.msk.f32.gmra.mrb[4].mxu0 %vm345_vm4, %v6922_v34  ;;  %4421 = vmatmul.mubr.msk.f32.gmra.mrb[4].mxu1 %vm345_vm4, %v6922_v34  ;;  %v760_v32 = vld [vmem:[#allocation2 + $0x1f0] sm:$0xff] }
 0x186   :  { %434 = vmatprep.mubr.f32.mxu0 %v8123_v20  ;;  %519 = vmatprep.mubr.f32.mxu1 %v8123_v20  ;;  %v7080_v37 = vpack.c.bf16 %v760_v32, %v756_v31 }
 0x187   :  { %5090 = vmatpush1.bf16.msra.mxu0 %v5089_v48  ;;  %5096 = vmatprep.subr.bf16.mxu1 %v5095_v49  ;;  %v743_v48 = vld [vmem:[#allocation2 + $0x168] sm:$0xff]  ;;  %v741_v49 = vld [vmem:[#allocation2 + $0x158] sm:$0xff] }
 0x188   :  { %5098 = vmatpush1.bf16.msra.mxu1 %v5097_v50  ;;  %5100 = vmatprep.subr.bf16.mxu0 %v6950_v51  ;;  %v745_v50 = vld [vmem:[#allocation2 + $0x178] sm:$0xff]  ;;  %v7046_v57 = vpack.c.bf16 %v743_v48, %v739_v47  ;;  %v311_v48 = vsub.s32 1, %v306_v38 }
 0x189   :  { %4418 = vmatmul.mubr.msk.f32.gmra.mrb[6].mxu0 %vm345_vm4, %v6932_v40  ;;  %4422 = vmatmul.mubr.msk.f32.gmra.mrb[6].mxu1 %vm345_vm4, %v6932_v40  ;;  %v7048_v58 = vpack.c.bf16 %v745_v50, %v741_v49  ;;  %v319_v49 = vsub.s32 3, %v306_v38 }
 0x18a   :  { %438 = vmatprep.mubr.f32.mxu0 %v8123_v20  ;;  %523 = vmatprep.mubr.f32.mxu1 %v8123_v20 }
 0x18b   :  { %5132 = vmatprep.subr.bf16.mxu1 %v6958_v54 }
 0x18d   :  { %4419 = vmatmul.mubr.msk.f32.gmra.mrb[8].mxu0 %vm345_vm4, %v6924_v35  ;;  %4423 = vmatmul.mubr.msk.f32.gmra.mrb[8].mxu1 %vm345_vm4, %v6924_v35 }
 0x18e   :  { %592 = vmatprep.mubr.f32.mxu0 %v8123_v20  ;;  %677 = vmatprep.mubr.f32.mxu1 %v8123_v20 }
 0x191   :  { %4424 = vmatmul.mubr.msk.f32.vlgmr.msra.gmra.mrb[10].mxu0 %vm345_vm4, %v171_v39  ;;  %4428 = vmatmul.mubr.msk.f32.vlgmr.msra.gmra.mrb[10].mxu1 %vm345_vm4, %v171_v39  ;;  %v7022_v39 = vpack.c.bf16 %v726_v29, %v722_v28  ;;  %v7072_v28 = vpack.c.bf16 %v759_v17, %v755_v16  ;;  %v7074_v29 = vpack.c.bf16 %v761_v22, %v757_v18 }
 0x192   :  { %5102 = vmatpush1.bf16.msra.mxu0 %v6974_v1  ;;  %5134 = vmatpush1.bf16.msra.mxu1 %v6976_v2 }
 0x193   :  { %596 = vmatprep.mubr.f32.mxu0 %v8123_v20  ;;  %681 = vmatprep.mubr.f32.mxu1 %v8123_v20 }
 0x194   :  { %5104 = vmatprep.subr.bf16.mxu0 %v6978_v7  ;;  %5136 = vmatprep.subr.bf16.mxu1 %v6980_v8 }
 0x195   :  { %4425 = vmatmul.mubr.msk.f32.gmra.mrb[12].mxu0 %vm345_vm4, %v6922_v34  ;;  %4429 = vmatmul.mubr.msk.f32.gmra.mrb[12].mxu1 %vm345_vm4, %v6922_v34  ;;  %v7014_v34 = vpack.c.bf16 %v729_v25, %v725_v24  ;;  %v7068_v24 = vpack.c.bf16 %v752_v15, %v748_v12  ;;  %v754_v25 = vld [vmem:[#allocation2 + $0x1c0] sm:$0xff] }
 0x196   :  { %5106 = vmatpush1.bf16.msra.mxu0 %v6986_v13  ;;  %5138 = vmatpush1.bf16.msra.mxu1 %v6988_v14  ;;  %v7078_v36 = vpack.c.bf16 %v758_v30, %v754_v25 }
 0x197   :  { %600 = vmatprep.mubr.f32.mxu0 %v8123_v20  ;;  %685 = vmatprep.mubr.f32.mxu1 %v8123_v20 }
 0x198   :  { %5108 = vmatprep.subr.bf16.mxu0 %v6994_v19  ;;  %5140 = vmatprep.subr.bf16.mxu1 %v6996_v21 }
 0x199   :  { %4426 = vmatmul.mubr.msk.f32.gmra.mrb[14].mxu0 %vm345_vm4, %v6932_v40  ;;  %4430 = vmatmul.mubr.msk.f32.gmra.mrb[14].mxu1 %vm345_vm4, %v6932_v40  ;;  %v736_v40 = vld [vmem:[#allocation2 + $0x130] sm:$0xff] }
 0x19a   :  { %5110 = vmatpush1.bf16.msra.mxu0 %v7004_v26  ;;  %5142 = vmatpush1.bf16.msra.mxu1 %v7006_v27  ;;  %v7042_v53 = vpack.c.bf16 %v736_v40, %v732_v46  ;;  %v303_v46 = vld [vmem:[%s8117_s5] sm:$0xff] }
 0x19b   :  { %606 = vmatprep.mubr.f32.mxu0 %v8123_v20  ;;  %691 = vmatprep.mubr.f32.mxu1 %v8123_v20  ;;  %v308_v56 = vrot.slane %v303_v46, %v307_v42  ;;  %v320_v62 = vrot.slane %v303_v46, %v319_v49 }
 0x19c   :  { %5112 = vmatprep.subr.bf16.mxu0 %v7012_v33  ;;  %5144 = vmatprep.subr.bf16.mxu1 %v7014_v34 }
 0x19d   :  { %4427 = vmatmul.mubr.msk.f32.gmra.mrb[16].mxu0 %vm345_vm4, %v6924_v35  ;;  %4431 = vmatmul.mubr.msk.f32.gmra.mrb[16].mxu1 %vm345_vm4, %v6924_v35  ;;  %v744_v35 = vld [vmem:[#allocation2 + $0x170] sm:$0xff] }
 0x19e   :  { %5114 = vmatpush1.bf16.msra.mxu0 %v7022_v39  ;;  %5146 = vmatpush1.bf16.msra.mxu1 %v7024_v41  ;;  %v7056_v5 = vpack.c.bf16 %v744_v35, %v740_v61  ;;  %v316_v61 = vrot.slane %v303_v46, %v315_v43  ;;  %v312_v35 = vrot.slane %v303_v46, %v311_v48 }
 0x19f   :  { %5116 = vmatprep.subr.bf16.mxu0 %v7028_v44  ;;  %5148 = vmatprep.subr.bf16.mxu1 %v7030_v45 }
 0x1a0   :  { %907 = vmatprep.mubr.f32.mxu0 %v8123_v20  ;;  %978 = vmatprep.mubr.f32.mxu1 %v8123_v20 }
 0x1a2   :  { %5118 = vmatpush1.bf16.msra.mxu0 %v7040_v52  ;;  %5150 = vmatpush1.bf16.msra.mxu1 %v7042_v53 }
 0x1a3   :  { %5120 = vmatprep.subr.bf16.mxu0 %v7046_v57  ;;  %5152 = vmatprep.subr.bf16.mxu1 %v7048_v58 }
 0x1a6   :  { %5122 = vmatpush1.bf16.msra.mxu0 %v7054_v4  ;;  %5154 = vmatpush1.bf16.msra.mxu1 %v7056_v5 }
 0x1a7   :  { %5124 = vmatprep.subr.bf16.mxu0 %v7060_v10  ;;  %5156 = vmatprep.subr.bf16.mxu1 %v7062_v11 }
 0x1aa   :  { %5126 = vmatpush1.bf16.msra.mxu0 %v7066_v23  ;;  %5158 = vmatpush1.bf16.msra.mxu1 %v7068_v24 }
 0x1ab   :  { %5128 = vmatprep.subr.bf16.mxu0 %v7072_v28  ;;  %5160 = vmatprep.subr.bf16.mxu1 %v7074_v29 }
 0x1ae   :  { %5130 = vmatpush1.bf16.msra.mxu0 %v7078_v36  ;;  %5162 = vmatpush1.bf16.msra.mxu1 %v7080_v37 }
 0x1af   :  { %5164 = vmatprep.subr.bf16.mxu0 %v6950_v51  ;;  %5196 = vmatprep.subr.bf16.mxu1 %v6958_v54 }
 0x1b1   :  { %908 = vmatmul.mubr.f32.vlgmr.msra.gmra.mrb[18].mxu0 %v8123_v20  ;;  %979 = vmatmul.mubr.f32.vlgmr.msra.gmra.mrb[18].mxu1 %v8123_v20 }
 0x1b2   :  { %5166 = vmatpush1.bf16.msra.mxu0 %v6974_v1  ;;  %5198 = vmatpush1.bf16.msra.mxu1 %v6976_v2 }
 0x1b3   :  { %5168 = vmatprep.subr.bf16.mxu0 %v6978_v7  ;;  %5200 = vmatprep.subr.bf16.mxu1 %v6980_v8 }
 0x1b4   :  { %1077 = vmatprep.mubr.f32.mxu0 %v8123_v20  ;;  %1148 = vmatprep.mubr.f32.mxu1 %v8123_v20 }
 0x1b6   :  { %5170 = vmatpush1.bf16.msra.mxu0 %v6986_v13  ;;  %5202 = vmatpush1.bf16.msra.mxu1 %v6988_v14 }
 0x1b7   :  { %5172 = vmatprep.subr.bf16.mxu0 %v6994_v19  ;;  %5204 = vmatprep.subr.bf16.mxu1 %v6996_v21 }
 0x1ba   :  { %5174 = vmatpush1.bf16.msra.mxu0 %v7004_v26  ;;  %5206 = vmatpush1.bf16.msra.mxu1 %v7006_v27 }
 0x1bb   :  { %5176 = vmatprep.subr.bf16.mxu0 %v7012_v33  ;;  %5208 = vmatprep.subr.bf16.mxu1 %v7014_v34 }
 0x1be   :  { %5178 = vmatpush1.bf16.msra.mxu0 %v7022_v39  ;;  %5210 = vmatpush1.bf16.msra.mxu1 %v7024_v41 }
 0x1bf   :  { %5180 = vmatprep.subr.bf16.mxu0 %v7028_v44  ;;  %5212 = vmatprep.subr.bf16.mxu1 %v7030_v45 }
 0x1c2   :  { %5182 = vmatpush1.bf16.msra.mxu0 %v7040_v52  ;;  %5214 = vmatpush1.bf16.msra.mxu1 %v7042_v53 }
 0x1c3   :  { %5184 = vmatprep.subr.bf16.mxu0 %v7046_v57  ;;  %5216 = vmatprep.subr.bf16.mxu1 %v7048_v58 }
 0x1c6   :  { %5186 = vmatpush1.bf16.msra.mxu0 %v7054_v4  ;;  %5218 = vmatpush1.bf16.msra.mxu1 %v7056_v5 }
 0x1c7   :  { %5188 = vmatprep.subr.bf16.mxu0 %v7060_v10  ;;  %5220 = vmatprep.subr.bf16.mxu1 %v7062_v11 }
 0x1ca   :  { %5190 = vmatpush1.bf16.msra.mxu0 %v7066_v23  ;;  %5222 = vmatpush1.bf16.msra.mxu1 %v7068_v24 }
 0x1cb   :  { %5192 = vmatprep.subr.bf16.mxu0 %v7072_v28  ;;  %5224 = vmatprep.subr.bf16.mxu1 %v7074_v29 }
 0x1ce   :  { %5194 = vmatpush1.bf16.msra.mxu0 %v7078_v36  ;;  %5226 = vmatpush1.bf16.msra.mxu1 %v7080_v37 }
 0x1cf   :  { %5228 = vmatprep.subr.bf16.mxu0 %v6950_v51  ;;  %5260 = vmatprep.subr.bf16.mxu1 %v6958_v54 }
 0x254   :  { %v424_v40 = vpop.f32.mrb[2].mxu0  ;;  %v7128_v47 = vpop.f32.mrb[2].mxu1 }
 0x255   :  { %v426_v50 = vpop.f32.mrb[3].mxu0  ;;  %v511_v55 = vpop.f32.mrb[3].mxu1 }
 0x258   :  { %v430_v63 = vpop.f32.mrb[4].mxu0  ;;  %v515_v0 = vpop.f32.mrb[4].mxu1 }
 0x259   :  { %v7130_v59 = vadd.f32 %v430_v63, %v308_v56  ;;  %v7132_v3 = vadd.f32 %v515_v0, %v316_v61  ;;  %v432_v6 = vpop.f32.mrb[5].mxu0  ;;  %v517_v9 = vpop.f32.mrb[5].mxu1 }
 0x25a   :  { %v7134_v12 = vadd.f32 %v432_v6, %v312_v35  ;;  %v7136_v15 = vadd.f32 %v517_v9, %v320_v62  ;;  %v323_v6 = vsub.s32 4, %v306_v38 }
 0x25b   :  { %8140 = vst [vmem:[#allocation9_spill] sm:$0xff] %v7132_v3  ;;  %v331_v3 = vsub.s32 6, %v306_v38 }
 0x25c   :  { %v436_v16 = vpop.f32.mrb[6].mxu0  ;;  %v521_v17 = vpop.f32.mrb[6].mxu1 }
 0x25d   :  { %v437_v18 = vpop.f32.mrb[7].mxu0  ;;  %v522_v22 = vpop.f32.mrb[7].mxu1  ;;  %v327_v17 = vsub.s32 5, %v306_v38 }
 0x25e   :  { %v335_v18 = vsub.s32 7, %v306_v38 }
 0x260   :  { %v440_v25 = vpop.f32.mrb[8].mxu0  ;;  %v525_v30 = vpop.f32.mrb[8].mxu1 }
 0x261   :  { %v441_v31 = vpop.f32.mrb[9].mxu0  ;;  %v526_v32 = vpop.f32.mrb[9].mxu1  ;;  %v7146_v30 = vrot.slane %v303_v46, %v323_v6 }
 0x262   :  { %v7148_v31 = vrot.slane %v303_v46, %v331_v3  ;;  %v7150_v32 = vrot.slane %v303_v46, %v327_v17 }
 0x264   :  { %v594_v42 = vpop.f32.mrb[10].mxu0  ;;  %v679_v43 = vpop.f32.mrb[10].mxu1  ;;  %8142 = vst [vmem:[#allocation11_spill] sm:$0xff] %v7148_v31 }
 0x265   :  { %v595_v48 = vpop.f32.mrb[11].mxu0  ;;  %v680_v49 = vpop.f32.mrb[11].mxu1 }
 0x268   :  { %v598_v63 = vpop.f32.mrb[12].mxu0  ;;  %v683_v0 = vpop.f32.mrb[12].mxu1 }
 0x269   :  { %v599_v20 = vpop.f32.mrb[13].mxu0  ;;  %v684_v60 = vpop.f32.mrb[13].mxu1  ;;  %v7166_v0 = vadd.f32 %v424_v40, %v308_v56  ;;  %v7176_v40 = vadd.f32 %v7128_v47, %v316_v61 }
 0x26a   :  { %v7152_v20 = vrot.slane %v303_v46, %v335_v18  ;;  %v7168_v46 = vadd.f32 %v426_v50, %v312_v35 }
 0x26c   :  { %v7138_v9 = vpop.f32.mrb[14].mxu0  ;;  %v7140_v16 = vpop.f32.mrb[14].mxu1 }
 0x26d   :  { %8141 = vst [vmem:[#allocation10_spill] sm:$0xff] %v7140_v16  ;;  %v7142_v22 = vpop.f32.mrb[15].mxu0  ;;  %v7144_v25 = vpop.f32.mrb[15].mxu1 }
 0x270   :  { %v608_v60 = vpop.f32.mrb[16].mxu0  ;;  %v693_v42 = vpop.f32.mrb[16].mxu1 }
 0x271   :  { %v7155_v43 = vadd.f32 %v608_v60, %v7146_v30  ;;  %v7158_v48 = vadd.f32 %v693_v42, %v7148_v31  ;;  %v610_v38 = vpop.f32.mrb[17].mxu0  ;;  %v695_v49 = vpop.f32.mrb[17].mxu1 }
 0x272   :  { %v7161_v63 = vadd.f32 %v610_v38, %v7150_v32  ;;  %v7164_v3 = vadd.f32 %v695_v49, %v7152_v20  ;;  %v7172_v38 = vadd.f32 %v511_v55, %v320_v62 }
 0x273   :  { %8143 = vst [vmem:[#allocation12_spill] sm:$0xff] %v7155_v43  ;;  %8144 = vst [vmem:[#allocation13_spill] sm:$0xff] %v7158_v48 }
 0x274   :  { %8145 = vst [vmem:[#allocation14_spill] sm:$0xff] %v7161_v63  ;;  %8146 = vst [vmem:[#allocation15_spill] sm:$0xff] %v7164_v3 }
 0x284   :  { %v909_v6 = vpop.f32.mrb[18].mxu0  ;;  %v980_v17 = vpop.f32.mrb[18].mxu1 }
 0x285   :  { %v985_v18 = vadd.f32 %v909_v6, %v7166_v0  ;;  %v911_v60 = vpop.f32.mrb[19].mxu0  ;;  %v982_v43 = vpop.f32.mrb[19].mxu1  ;;  %v987_v56 = vadd.f32 %v980_v17, %v7176_v40 }
 0x286   :  { %v986_v42 = vadd.f32 %v911_v60, %v7168_v46  ;;  %v988_v49 = vadd.f32 %v982_v43, %v7172_v38 }
 0x287   :  { %v4432_v48 = vmul.f32 -1.442695, %v985_v18 }
 0x288   :  { %v4433_v16 = vmul.f32 -1.442695, %v986_v42  ;;  %v4434_v50 = vmul.f32 -1.442695, %v988_v49 }
 0x289   :  { %6326 = vpow2.f32 %v4432_v48 }
 0x28a   :  { %6328 = vpow2.f32 %v4433_v16 }
 0x28b   :  { %6330 = vpow2.f32 %v4434_v50 }
 0x28c   :  { %6332 = vtanh.f32 %v987_v56 }
 0x293   :  { %v6327_v35 = vpop.eup %6326 }
 0x294   :  { %v6329_v6 = vpop.eup %6328  ;;  %v992_v3 = vadd.f32 1.0, %v6327_v35 }
 0x295   :  { %v998_v60 = vadd.f32 1.0, %v6329_v6  ;;  %v6331_v48 = vpop.eup %6330 }
 0x296   :  { %6334 = vrcp.f32 %v992_v3  ;;  %v6333_v55 = vpop.eup %6332  ;;  %v1005_v43 = vadd.f32 1.0, %v6331_v48  ;;  %v8147_v3 = vmov 0.0  }
 0x297   :  { %6336 = vrcp.f32 %v998_v60 }
 0x298   :  { %6338 = vrcp.f32 %v1005_v43 }
 0x2a0   :  { %v6335_v62 = vpop.eup %6334 }
 0x2a1   :  { %v6337_v16 = vpop.eup %6336  ;;  %v1009_v18 = vmul.f32 %v6335_v62, %v6333_v55 }
 0x2a2   :  { %v1008_v42 = vmul.f32 0.0, %v6337_v16  ;;  %v6339_v61 = vpop.eup %6338 }
 0x2a4   :  { %v7179_v47 = vadd.f32 %v1009_v18, %v1008_v42 }
 0x2a6   :  { %6340 = vtanh.f32 %v7179_v47 }
 0x2b0   :  { %v6341_v17 = vpop.eup %6340 }
 0x2b1   :  { %v1012_v49 = vmul.f32 %v6341_v17, %v6339_v61 }
 0x2b3   :  { %1078 = vmatmul.mubr.f32.vlgmr.msra.gmra.mrb[20].mxu0 %v1012_v49  ;;  %1149 = vmatmul.mubr.f32.vlgmr.msra.gmra.mrb[20].mxu1 %v1012_v49 }
 0x2b4   :  { %5230 = vmatpush1.bf16.msra.mxu0 %v6974_v1  ;;  %5262 = vmatpush1.bf16.msra.mxu1 %v6976_v2 }
 0x2b5   :  { %5232 = vmatprep.subr.bf16.mxu0 %v6978_v7  ;;  %5264 = vmatprep.subr.bf16.mxu1 %v6980_v8 }
 0x2b6   :  { %1265 = vmatprep.mubr.f32.mxu0 %v8147_v3  ;;  %1336 = vmatprep.mubr.f32.mxu1 %v8147_v3 }
 0x2b8   :  { %5234 = vmatpush1.bf16.msra.mxu0 %v6986_v13  ;;  %5266 = vmatpush1.bf16.msra.mxu1 %v6988_v14 }
 0x2b9   :  { %5236 = vmatprep.subr.bf16.mxu0 %v6994_v19  ;;  %5268 = vmatprep.subr.bf16.mxu1 %v6996_v21 }
 0x2bc   :  { %5238 = vmatpush1.bf16.msra.mxu0 %v7004_v26  ;;  %5270 = vmatpush1.bf16.msra.mxu1 %v7006_v27 }
 0x2bd   :  { %5240 = vmatprep.subr.bf16.mxu0 %v7012_v33  ;;  %5272 = vmatprep.subr.bf16.mxu1 %v7014_v34 }
 0x2c0   :  { %5242 = vmatpush1.bf16.msra.mxu0 %v7022_v39  ;;  %5274 = vmatpush1.bf16.msra.mxu1 %v7024_v41 }
 0x2c1   :  { %5244 = vmatprep.subr.bf16.mxu0 %v7028_v44  ;;  %5276 = vmatprep.subr.bf16.mxu1 %v7030_v45 }
 0x2c4   :  { %5246 = vmatpush1.bf16.msra.mxu0 %v7040_v52  ;;  %5278 = vmatpush1.bf16.msra.mxu1 %v7042_v53 }
 0x2c5   :  { %5248 = vmatprep.subr.bf16.mxu0 %v7046_v57  ;;  %5280 = vmatprep.subr.bf16.mxu1 %v7048_v58 }
 0x2c8   :  { %5250 = vmatpush1.bf16.msra.mxu0 %v7054_v4  ;;  %5282 = vmatpush1.bf16.msra.mxu1 %v7056_v5 }
 0x2c9   :  { %5252 = vmatprep.subr.bf16.mxu0 %v7060_v10  ;;  %5284 = vmatprep.subr.bf16.mxu1 %v7062_v11 }
 0x2cc   :  { %5254 = vmatpush1.bf16.msra.mxu0 %v7066_v23  ;;  %5286 = vmatpush1.bf16.msra.mxu1 %v7068_v24 }
 0x2cd   :  { %5256 = vmatprep.subr.bf16.mxu0 %v7072_v28  ;;  %5288 = vmatprep.subr.bf16.mxu1 %v7074_v29 }
 0x2d0   :  { %5258 = vmatpush1.bf16.msra.mxu0 %v7078_v36  ;;  %5290 = vmatpush1.bf16.msra.mxu1 %v7080_v37 }
 0x2d1   :  { %5292 = vmatprep.subr.bf16.mxu0 %v6950_v51  ;;  %5324 = vmatprep.subr.bf16.mxu1 %v6958_v54 }
 0x386   :  { %v1079_v50 = vpop.f32.mrb[20].mxu0  ;;  %v1150_v56 = vpop.f32.mrb[20].mxu1 }
 0x387   :  { %v1159_v35 = vrot.slane %v1079_v50, 6  ;;  %v1081_v6 = vpop.f32.mrb[21].mxu0  ;;  %v1152_v60 = vpop.f32.mrb[21].mxu1  ;;  %v1161_v61 = vrot.slane %v1150_v56, 6 }
 0x388   :  { %v1160_v48 = vrot.slane %v1081_v6, 6  ;;  %v1162_v43 = vrot.slane %v1152_v60, 6  ;;  %v1191_v60 = vrot.slane %v7179_v47, 6 }
 0x389   :  { %v1167_v55 = vadd.f32 %v1159_v35, %v7166_v0  ;;  %v1169_v49 = vadd.f32 %v1161_v61, %v7176_v40 }
 0x38a   :  { %v1168_v62 = vadd.f32 %v1160_v48, %v7168_v46  ;;  %v1170_v42 = vadd.f32 %v1162_v43, %v7172_v38 }
 0x38b   :  { %v4435_v16 = vmul.f32 -1.442695, %v1167_v55 }
 0x38c   :  { %v4436_v18 = vmul.f32 -1.442695, %v1168_v62  ;;  %v4437_v17 = vmul.f32 -1.442695, %v1170_v42 }
 0x38d   :  { %6342 = vpow2.f32 %v4435_v16 }
 0x38e   :  { %6344 = vpow2.f32 %v4436_v18 }
 0x38f   :  { %6346 = vpow2.f32 %v4437_v17 }
 0x390   :  { %6348 = vtanh.f32 %v1169_v49 }
 0x397   :  { %v6343_v63 = vpop.eup %6342 }
 0x398   :  { %v6345_v50 = vpop.eup %6344  ;;  %v1174_v31 = vadd.f32 1.0, %v6343_v63 }
 0x399   :  { %v1180_v6 = vadd.f32 1.0, %v6345_v50  ;;  %v6347_v35 = vpop.eup %6346 }
 0x39a   :  { %6350 = vrcp.f32 %v1174_v31  ;;  %v6349_v48 = vpop.eup %6348  ;;  %v1187_v18 = vadd.f32 1.0, %v6347_v35 }
 0x39b   :  { %6352 = vrcp.f32 %v1180_v6 }
 0x39c   :  { %6354 = vrcp.f32 %v1187_v18 }
 0x3a4   :  { %v6351_v55 = vpop.eup %6350 }
 0x3a5   :  { %v6353_v62 = vpop.eup %6352  ;;  %v1194_v16 = vmul.f32 %v6351_v55, %v6349_v48 }
 0x3a6   :  { %v1193_v56 = vmul.f32 %v6353_v62, %v1191_v60  ;;  %v6355_v63 = vpop.eup %6354 }
 0x3a8   :  { %v7221_v43 = vadd.f32 %v1194_v16, %v1193_v56 }
 0x3aa   :  { %6356 = vtanh.f32 %v7221_v43 }
 0x3b4   :  { %v6357_v42 = vpop.eup %6356 }
 0x3b5   :  { %v1197_v61 = vmul.f32 %v6357_v42, %v6355_v63 }
 0x3b7   :  { %v1199_v17 = vrot.slane %v1197_v61, 2 }
 0x3b9   :  { %1266 = vmatmul.mubr.f32.vlgmr.msra.gmra.mrb[22].mxu0 %v1199_v17  ;;  %1337 = vmatmul.mubr.f32.vlgmr.msra.gmra.mrb[22].mxu1 %v1199_v17 }
 0x3ba   :  { %5294 = vmatpush1.bf16.msra.mxu0 %v6974_v1  ;;  %5326 = vmatpush1.bf16.msra.mxu1 %v6976_v2 }
 0x3bb   :  { %5296 = vmatprep.subr.bf16.mxu0 %v6978_v7  ;;  %5328 = vmatprep.subr.bf16.mxu1 %v6980_v8 }
 0x3bc   :  { %1453 = vmatprep.mubr.f32.mxu0 %v8147_v3  ;;  %1524 = vmatprep.mubr.f32.mxu1 %v8147_v3 }
 0x3be   :  { %5298 = vmatpush1.bf16.msra.mxu0 %v6986_v13  ;;  %5330 = vmatpush1.bf16.msra.mxu1 %v6988_v14 }
 0x3bf   :  { %5300 = vmatprep.subr.bf16.mxu0 %v6994_v19  ;;  %5332 = vmatprep.subr.bf16.mxu1 %v6996_v21 }
 0x3c2   :  { %5302 = vmatpush1.bf16.msra.mxu0 %v7004_v26  ;;  %5334 = vmatpush1.bf16.msra.mxu1 %v7006_v27 }
 0x3c3   :  { %5304 = vmatprep.subr.bf16.mxu0 %v7012_v33  ;;  %5336 = vmatprep.subr.bf16.mxu1 %v7014_v34 }
 0x3c6   :  { %5306 = vmatpush1.bf16.msra.mxu0 %v7022_v39  ;;  %5338 = vmatpush1.bf16.msra.mxu1 %v7024_v41 }
 0x3c7   :  { %5308 = vmatprep.subr.bf16.mxu0 %v7028_v44  ;;  %5340 = vmatprep.subr.bf16.mxu1 %v7030_v45 }
 0x3ca   :  { %5310 = vmatpush1.bf16.msra.mxu0 %v7040_v52  ;;  %5342 = vmatpush1.bf16.msra.mxu1 %v7042_v53 }
 0x3cb   :  { %5312 = vmatprep.subr.bf16.mxu0 %v7046_v57  ;;  %5344 = vmatprep.subr.bf16.mxu1 %v7048_v58 }
 0x3ce   :  { %5314 = vmatpush1.bf16.msra.mxu0 %v7054_v4  ;;  %5346 = vmatpush1.bf16.msra.mxu1 %v7056_v5 }
 0x3cf   :  { %5316 = vmatprep.subr.bf16.mxu0 %v7060_v10  ;;  %5348 = vmatprep.subr.bf16.mxu1 %v7062_v11 }
 0x3d2   :  { %5318 = vmatpush1.bf16.msra.mxu0 %v7066_v23  ;;  %5350 = vmatpush1.bf16.msra.mxu1 %v7068_v24 }
 0x3d3   :  { %5320 = vmatprep.subr.bf16.mxu0 %v7072_v28  ;;  %5352 = vmatprep.subr.bf16.mxu1 %v7074_v29 }
 0x3d6   :  { %5322 = vmatpush1.bf16.msra.mxu0 %v7078_v36  ;;  %5354 = vmatpush1.bf16.msra.mxu1 %v7080_v37 }
 0x3d7   :  { %5356 = vmatprep.subr.bf16.mxu0 %v6950_v51  ;;  %5388 = vmatprep.subr.bf16.mxu1 %v6958_v54 }
 0x48c   :  { %v1267_v31 = vpop.f32.mrb[22].mxu0  ;;  %v1338_v47 = vpop.f32.mrb[22].mxu1 }
 0x48d   :  { %v1347_v49 = vrot.slane %v1267_v31, 4  ;;  %v1269_v50 = vpop.f32.mrb[23].mxu0  ;;  %v1340_v6 = vpop.f32.mrb[23].mxu1  ;;  %v1349_v56 = vrot.slane %v1338_v47, 4 }
 0x48e   :  { %v1348_v35 = vrot.slane %v1269_v50, 4  ;;  %v1350_v16 = vrot.slane %v1340_v6, 4  ;;  %v1379_v6 = vrot.slane %v7221_v43, 6 }
 0x48f   :  { %v1355_v48 = vadd.f32 %v1347_v49, %v7166_v0  ;;  %v1357_v42 = vadd.f32 %v1349_v56, %v7176_v40 }
 0x490   :  { %v1356_v55 = vadd.f32 %v1348_v35, %v7168_v46  ;;  %v1358_v18 = vadd.f32 %v1350_v16, %v7172_v38 }
 0x491   :  { %v4438_v60 = vmul.f32 -1.442695, %v1355_v48 }
 0x492   :  { %v4439_v62 = vmul.f32 -1.442695, %v1356_v55  ;;  %v4440_v63 = vmul.f32 -1.442695, %v1358_v18 }
 0x493   :  { %6358 = vpow2.f32 %v4438_v60 }
 0x494   :  { %6360 = vpow2.f32 %v4439_v62 }
 0x495   :  { %6362 = vpow2.f32 %v4440_v63 }
 0x496   :  { %6364 = vtanh.f32 %v1357_v42 }
 0x49d   :  { %v6359_v61 = vpop.eup %6358 }
 0x49e   :  { %v6361_v17 = vpop.eup %6360  ;;  %v1362_v31 = vadd.f32 1.0, %v6359_v61 }
 0x49f   :  { %v1368_v50 = vadd.f32 1.0, %v6361_v17  ;;  %v6363_v49 = vpop.eup %6362 }
 0x4a0   :  { %6366 = vrcp.f32 %v1362_v31  ;;  %v6365_v35 = vpop.eup %6364  ;;  %v1375_v62 = vadd.f32 1.0, %v6363_v49 }
 0x4a1   :  { %6368 = vrcp.f32 %v1368_v50 }
 0x4a2   :  { %6370 = vrcp.f32 %v1375_v62 }
 0x4aa   :  { %v6367_v48 = vpop.eup %6366 }
 0x4ab   :  { %v6369_v55 = vpop.eup %6368  ;;  %v1382_v60 = vmul.f32 %v6367_v48, %v6365_v35 }
 0x4ac   :  { %v1381_v47 = vmul.f32 %v6369_v55, %v1379_v6  ;;  %v6371_v18 = vpop.eup %6370 }
 0x4ae   :  { %v7263_v16 = vadd.f32 %v1382_v60, %v1381_v47 }
 0x4b0   :  { %6372 = vtanh.f32 %v7263_v16 }
 0x4ba   :  { %v6373_v56 = vpop.eup %6372 }
 0x4bb   :  { %v1385_v63 = vmul.f32 %v6373_v56, %v6371_v18 }
 0x4bd   :  { %v1387_v42 = vrot.slane %v1385_v63, 4 }
 0x4bf   :  { %1454 = vmatmul.mubr.f32.vlgmr.msra.gmra.mrb[24].mxu0 %v1387_v42  ;;  %1525 = vmatmul.mubr.f32.vlgmr.msra.gmra.mrb[24].mxu1 %v1387_v42 }
 0x4c0   :  { %5358 = vmatpush1.bf16.msra.mxu0 %v6974_v1  ;;  %5390 = vmatpush1.bf16.msra.mxu1 %v6976_v2 }
 0x4c1   :  { %5360 = vmatprep.subr.bf16.mxu0 %v6978_v7  ;;  %5392 = vmatprep.subr.bf16.mxu1 %v6980_v8 }
 0x4c2   :  { %1641 = vmatprep.mubr.f32.mxu0 %v8147_v3  ;;  %1712 = vmatprep.mubr.f32.mxu1 %v8147_v3 }
 0x4c4   :  { %5362 = vmatpush1.bf16.msra.mxu0 %v6986_v13  ;;  %5394 = vmatpush1.bf16.msra.mxu1 %v6988_v14 }
 0x4c5   :  { %5364 = vmatprep.subr.bf16.mxu0 %v6994_v19  ;;  %5396 = vmatprep.subr.bf16.mxu1 %v6996_v21 }
 0x4c8   :  { %5366 = vmatpush1.bf16.msra.mxu0 %v7004_v26  ;;  %5398 = vmatpush1.bf16.msra.mxu1 %v7006_v27 }
 0x4c9   :  { %5368 = vmatprep.subr.bf16.mxu0 %v7012_v33  ;;  %5400 = vmatprep.subr.bf16.mxu1 %v7014_v34 }
 0x4cc   :  { %5370 = vmatpush1.bf16.msra.mxu0 %v7022_v39  ;;  %5402 = vmatpush1.bf16.msra.mxu1 %v7024_v41 }
 0x4cd   :  { %5372 = vmatprep.subr.bf16.mxu0 %v7028_v44  ;;  %5404 = vmatprep.subr.bf16.mxu1 %v7030_v45 }
 0x4d0   :  { %5374 = vmatpush1.bf16.msra.mxu0 %v7040_v52  ;;  %5406 = vmatpush1.bf16.msra.mxu1 %v7042_v53 }
 0x4d1   :  { %5376 = vmatprep.subr.bf16.mxu0 %v7046_v57  ;;  %5408 = vmatprep.subr.bf16.mxu1 %v7048_v58 }
 0x4d4   :  { %5378 = vmatpush1.bf16.msra.mxu0 %v7054_v4  ;;  %5410 = vmatpush1.bf16.msra.mxu1 %v7056_v5 }
 0x4d5   :  { %5380 = vmatprep.subr.bf16.mxu0 %v7060_v10  ;;  %5412 = vmatprep.subr.bf16.mxu1 %v7062_v11 }
 0x4d8   :  { %5382 = vmatpush1.bf16.msra.mxu0 %v7066_v23  ;;  %5414 = vmatpush1.bf16.msra.mxu1 %v7068_v24 }
 0x4d9   :  { %5384 = vmatprep.subr.bf16.mxu0 %v7072_v28  ;;  %5416 = vmatprep.subr.bf16.mxu1 %v7074_v29 }
 0x4dc   :  { %5386 = vmatpush1.bf16.msra.mxu0 %v7078_v36  ;;  %5418 = vmatpush1.bf16.msra.mxu1 %v7080_v37 }
 0x4dd   :  { %5420 = vmatprep.subr.bf16.mxu0 %v6950_v51  ;;  %5452 = vmatprep.subr.bf16.mxu1 %v6958_v54 }
 0x592   :  { %v1455_v43 = vpop.f32.mrb[24].mxu0  ;;  %v1526_v61 = vpop.f32.mrb[24].mxu1 }
 0x593   :  { %v1535_v17 = vrot.slane %v1455_v43, 2  ;;  %v1457_v31 = vpop.f32.mrb[25].mxu0  ;;  %v1528_v50 = vpop.f32.mrb[25].mxu1  ;;  %v1537_v47 = vrot.slane %v1526_v61, 2 }
 0x594   :  { %v1536_v49 = vrot.slane %v1457_v31, 2  ;;  %v1538_v60 = vrot.slane %v1528_v50, 2  ;;  %v1567_v50 = vrot.slane %v7263_v16, 6 }
 0x595   :  { %v1543_v35 = vadd.f32 %v1535_v17, %v7166_v0  ;;  %v1545_v56 = vadd.f32 %v1537_v47, %v7176_v40 }
 0x596   :  { %v1544_v48 = vadd.f32 %v1536_v49, %v7168_v46  ;;  %v1546_v62 = vadd.f32 %v1538_v60, %v7172_v38 }
 0x597   :  { %v4441_v6 = vmul.f32 -1.442695, %v1543_v35 }
 0x598   :  { %v4442_v55 = vmul.f32 -1.442695, %v1544_v48  ;;  %v4443_v18 = vmul.f32 -1.442695, %v1546_v62 }
 0x599   :  { %6374 = vpow2.f32 %v4441_v6 }
 0x59a   :  { %6376 = vpow2.f32 %v4442_v55 }
 0x59b   :  { %6378 = vpow2.f32 %v4443_v18 }
 0x59c   :  { %6380 = vtanh.f32 %v1545_v56 }
 0x5a3   :  { %v6375_v63 = vpop.eup %6374 }
 0x5a4   :  { %v6377_v42 = vpop.eup %6376  ;;  %v1550_v43 = vadd.f32 1.0, %v6375_v63 }
 0x5a5   :  { %v1556_v31 = vadd.f32 1.0, %v6377_v42  ;;  %v6379_v0 = vpop.eup %6378 }
 0x5a6   :  { %6382 = vrcp.f32 %v1550_v43  ;;  %v6381_v46 = vpop.eup %6380  ;;  %v1563_v38 = vadd.f32 1.0, %v6379_v0 }
 0x5a7   :  { %6384 = vrcp.f32 %v1556_v31 }
 0x5a8   :  { %6386 = vrcp.f32 %v1563_v38 }
 0x5b0   :  { %v6383_v17 = vpop.eup %6382 }
 0x5b1   :  { %v6385_v49 = vpop.eup %6384  ;;  %v1570_v35 = vmul.f32 %v6383_v17, %v6381_v46  ;;  %v8148_v46 = vld [vmem:[#allocation9_spill] sm:$0xff] }
 0x5b2   :  { %v1569_v61 = vmul.f32 %v6385_v49, %v1567_v50  ;;  %v6387_v40 = vpop.eup %6386 }
 0x5b4   :  { %v7305_v48 = vadd.f32 %v1570_v35, %v1569_v61 }
 0x5b6   :  { %6388 = vtanh.f32 %v7305_v48 }
 0x5c0   :  { %v6389_v6 = vpop.eup %6388 }
 0x5c1   :  { %v1573_v55 = vmul.f32 %v6389_v6, %v6387_v40 }
 0x5c3   :  { %v1575_v60 = vrot.slane %v1573_v55, 6  ;;  %v1743_v55 = vrot.slane %v7305_v48, 6 }
 0x5c5   :  { %1642 = vmatmul.mubr.f32.vlgmr.msra.gmra.mrb[26].mxu0 %v1575_v60  ;;  %1713 = vmatmul.mubr.f32.vlgmr.msra.gmra.mrb[26].mxu1 %v1575_v60 }
 0x5c6   :  { %5422 = vmatpush1.bf16.msra.mxu0 %v6974_v1  ;;  %5454 = vmatpush1.bf16.msra.mxu1 %v6976_v2 }
 0x5c7   :  { %5424 = vmatprep.subr.bf16.mxu0 %v6978_v7  ;;  %5456 = vmatprep.subr.bf16.mxu1 %v6980_v8 }
 0x5c8   :  { %1814 = vmatprep.mubr.f32.mxu0 %v8147_v3  ;;  %1885 = vmatprep.mubr.f32.mxu1 %v8147_v3 }
 0x5ca   :  { %5426 = vmatpush1.bf16.msra.mxu0 %v6986_v13  ;;  %5458 = vmatpush1.bf16.msra.mxu1 %v6988_v14 }
 0x5cb   :  { %5428 = vmatprep.subr.bf16.mxu0 %v6994_v19  ;;  %5460 = vmatprep.subr.bf16.mxu1 %v6996_v21 }
 0x5ce   :  { %5430 = vmatpush1.bf16.msra.mxu0 %v7004_v26  ;;  %5462 = vmatpush1.bf16.msra.mxu1 %v7006_v27 }
 0x5cf   :  { %5432 = vmatprep.subr.bf16.mxu0 %v7012_v33  ;;  %5464 = vmatprep.subr.bf16.mxu1 %v7014_v34 }
 0x5d2   :  { %5434 = vmatpush1.bf16.msra.mxu0 %v7022_v39  ;;  %5466 = vmatpush1.bf16.msra.mxu1 %v7024_v41 }
 0x5d3   :  { %5436 = vmatprep.subr.bf16.mxu0 %v7028_v44  ;;  %5468 = vmatprep.subr.bf16.mxu1 %v7030_v45 }
 0x5d6   :  { %5438 = vmatpush1.bf16.msra.mxu0 %v7040_v52  ;;  %5470 = vmatpush1.bf16.msra.mxu1 %v7042_v53 }
 0x5d7   :  { %5440 = vmatprep.subr.bf16.mxu0 %v7046_v57  ;;  %5472 = vmatprep.subr.bf16.mxu1 %v7048_v58 }
 0x5da   :  { %5442 = vmatpush1.bf16.msra.mxu0 %v7054_v4  ;;  %5474 = vmatpush1.bf16.msra.mxu1 %v7056_v5 }
 0x5db   :  { %5444 = vmatprep.subr.bf16.mxu0 %v7060_v10  ;;  %5476 = vmatprep.subr.bf16.mxu1 %v7062_v11 }
 0x5de   :  { %5446 = vmatpush1.bf16.msra.mxu0 %v7066_v23  ;;  %5478 = vmatpush1.bf16.msra.mxu1 %v7068_v24 }
 0x5df   :  { %5448 = vmatprep.subr.bf16.mxu0 %v7072_v28  ;;  %5480 = vmatprep.subr.bf16.mxu1 %v7074_v29 }
 0x5e2   :  { %5450 = vmatpush1.bf16.msra.mxu0 %v7078_v36  ;;  %5482 = vmatpush1.bf16.msra.mxu1 %v7080_v37 }
 0x5e3   :  { %5484 = vmatprep.subr.bf16.mxu0 %v6950_v51  ;;  %5516 = vmatprep.subr.bf16.mxu1 %v6958_v54 }
 0x698   :  { %v1643_v16 = vpop.f32.mrb[26].mxu0  ;;  %v1714_v62 = vpop.f32.mrb[26].mxu1 }
 0x699   :  { %v1719_v47 = vadd.f32 %v1643_v16, %v7130_v59  ;;  %v1645_v18 = vpop.f32.mrb[27].mxu0  ;;  %v1716_v56 = vpop.f32.mrb[27].mxu1  ;;  %v1721_v17 = vadd.f32 %v1714_v62, %v8148_v46 }
 0x69a   :  { %v1720_v63 = vadd.f32 %v1645_v18, %v7134_v12  ;;  %v1722_v31 = vadd.f32 %v1716_v56, %v7136_v15 }
 0x69b   :  { %v4444_v42 = vmul.f32 -1.442695, %v1719_v47 }
 0x69c   :  { %v4445_v43 = vmul.f32 -1.442695, %v1720_v63  ;;  %v4446_v0 = vmul.f32 -1.442695, %v1722_v31 }
 0x69d   :  { %6390 = vpow2.f32 %v4444_v42 }
 0x69e   :  { %6392 = vpow2.f32 %v4445_v43 }
 0x69f   :  { %6394 = vpow2.f32 %v4446_v0 }
 0x6a0   :  { %6396 = vtanh.f32 %v1721_v17 }
 0x6a7   :  { %v6391_v50 = vpop.eup %6390 }
 0x6a8   :  { %v6393_v49 = vpop.eup %6392  ;;  %v1726_v35 = vadd.f32 1.0, %v6391_v50 }
 0x6a9   :  { %v1732_v38 = vadd.f32 1.0, %v6393_v49  ;;  %v6395_v61 = vpop.eup %6394 }
 0x6aa   :  { %6398 = vrcp.f32 %v1726_v35  ;;  %v6397_v40 = vpop.eup %6396  ;;  %v1739_v47 = vadd.f32 1.0, %v6395_v61 }
 0x6ab   :  { %6400 = vrcp.f32 %v1732_v38 }
 0x6ac   :  { %6402 = vrcp.f32 %v1739_v47 }
 0x6b4   :  { %v6399_v6 = vpop.eup %6398 }
 0x6b5   :  { %v6401_v60 = vpop.eup %6400  ;;  %v1746_v16 = vmul.f32 %v6399_v6, %v6397_v40 }
 0x6b6   :  { %v1745_v18 = vmul.f32 %v6401_v60, %v1743_v55  ;;  %v6403_v62 = vpop.eup %6402 }
 0x6b8   :  { %v7347_v56 = vadd.f32 %v1746_v16, %v1745_v18 }
 0x6ba   :  { %6404 = vtanh.f32 %v7347_v56 }
 0x6c4   :  { %v6405_v63 = vpop.eup %6404 }
 0x6c5   :  { %v1749_v42 = vmul.f32 %v6405_v63, %v6403_v62 }
 0x6c7   :  { %1815 = vmatmul.mubr.f32.vlgmr.msra.gmra.mrb[28].mxu0 %v1749_v42  ;;  %1886 = vmatmul.mubr.f32.vlgmr.msra.gmra.mrb[28].mxu1 %v1749_v42 }
 0x6c8   :  { %5486 = vmatpush1.bf16.msra.mxu0 %v6974_v1  ;;  %5518 = vmatpush1.bf16.msra.mxu1 %v6976_v2 }
 0x6c9   :  { %5488 = vmatprep.subr.bf16.mxu0 %v6978_v7  ;;  %5520 = vmatprep.subr.bf16.mxu1 %v6980_v8 }
 0x6ca   :  { %2002 = vmatprep.mubr.f32.mxu0 %v8147_v3  ;;  %2073 = vmatprep.mubr.f32.mxu1 %v8147_v3 }
 0x6cc   :  { %5490 = vmatpush1.bf16.msra.mxu0 %v6986_v13  ;;  %5522 = vmatpush1.bf16.msra.mxu1 %v6988_v14 }
 0x6cd   :  { %5492 = vmatprep.subr.bf16.mxu0 %v6994_v19  ;;  %5524 = vmatprep.subr.bf16.mxu1 %v6996_v21 }
 0x6d0   :  { %5494 = vmatpush1.bf16.msra.mxu0 %v7004_v26  ;;  %5526 = vmatpush1.bf16.msra.mxu1 %v7006_v27 }
 0x6d1   :  { %5496 = vmatprep.subr.bf16.mxu0 %v7012_v33  ;;  %5528 = vmatprep.subr.bf16.mxu1 %v7014_v34 }
 0x6d4   :  { %5498 = vmatpush1.bf16.msra.mxu0 %v7022_v39  ;;  %5530 = vmatpush1.bf16.msra.mxu1 %v7024_v41 }
 0x6d5   :  { %5500 = vmatprep.subr.bf16.mxu0 %v7028_v44  ;;  %5532 = vmatprep.subr.bf16.mxu1 %v7030_v45 }
 0x6d8   :  { %5502 = vmatpush1.bf16.msra.mxu0 %v7040_v52  ;;  %5534 = vmatpush1.bf16.msra.mxu1 %v7042_v53 }
 0x6d9   :  { %5504 = vmatprep.subr.bf16.mxu0 %v7046_v57  ;;  %5536 = vmatprep.subr.bf16.mxu1 %v7048_v58 }
 0x6dc   :  { %5506 = vmatpush1.bf16.msra.mxu0 %v7054_v4  ;;  %5538 = vmatpush1.bf16.msra.mxu1 %v7056_v5 }
 0x6dd   :  { %5508 = vmatprep.subr.bf16.mxu0 %v7060_v10  ;;  %5540 = vmatprep.subr.bf16.mxu1 %v7062_v11 }
 0x6e0   :  { %5510 = vmatpush1.bf16.msra.mxu0 %v7066_v23  ;;  %5542 = vmatpush1.bf16.msra.mxu1 %v7068_v24 }
 0x6e1   :  { %5512 = vmatprep.subr.bf16.mxu0 %v7072_v28  ;;  %5544 = vmatprep.subr.bf16.mxu1 %v7074_v29 }
 0x6e4   :  { %5514 = vmatpush1.bf16.msra.mxu0 %v7078_v36  ;;  %5546 = vmatpush1.bf16.msra.mxu1 %v7080_v37 }
 0x6e5   :  { %5548 = vmatprep.subr.bf16.mxu0 %v6950_v51  ;;  %5580 = vmatprep.subr.bf16.mxu1 %v6958_v54 }
 0x79a   :  { %v1816_v48 = vpop.f32.mrb[28].mxu0  ;;  %v1887_v43 = vpop.f32.mrb[28].mxu1 }
 0x79b   :  { %v1896_v31 = vrot.slane %v1816_v48, 6  ;;  %v1818_v0 = vpop.f32.mrb[29].mxu0  ;;  %v1889_v17 = vpop.f32.mrb[29].mxu1  ;;  %v1898_v51 = vrot.slane %v1887_v43, 6  ;;  %v1928_v48 = vrot.slane %v7347_v56, 6 }
 0x79c   :  { %v1897_v50 = vrot.slane %v1818_v0, 6  ;;  %v1899_v40 = vrot.slane %v1889_v17, 6 }
 0x79d   :  { %v1904_v49 = vadd.f32 %v1896_v31, %v7130_v59  ;;  %v1906_v54 = vadd.f32 %v1898_v51, %v8148_v46  ;;  %v767_v51 = vld [vmem:[#allocation4 + $0x28] sm:$0xff] }
 0x79e   :  { %v1905_v35 = vadd.f32 %v1897_v50, %v7134_v12  ;;  %v1907_v6 = vadd.f32 %v1899_v40, %v7136_v15 }
 0x79f   :  { %v4447_v38 = vmul.f32 -1.442695, %v1904_v49 }
 0x7a0   :  { %v4448_v61 = vmul.f32 -1.442695, %v1905_v35  ;;  %v4449_v55 = vmul.f32 -1.442695, %v1907_v6  ;;  %v763_v6 = vld [vmem:[#allocation4 + $0x8] sm:$0xff] }
 0x7a1   :  { %6406 = vpow2.f32 %v4447_v38 }
 0x7a2   :  { %6408 = vpow2.f32 %v4448_v61 }
 0x7a3   :  { %6410 = vpow2.f32 %v4449_v55  ;;  %v765_v55 = vld [vmem:[#allocation4 + $0x18] sm:$0xff] }
 0x7a4   :  { %6412 = vtanh.f32 %v1906_v54  ;;  %v7434_v54 = vpack.c.bf16 %v767_v51, %v763_v6  ;;  %v801_v6 = vld [vmem:[#allocation4 + $0x138] sm:$0xff]  ;;  %v794_v51 = vld [vmem:[#allocation4 + $0x100] sm:$0xff] }
 0x7ab   :  { %v6407_v60 = vpop.eup %6406 }
 0x7ac   :  { %v6409_v16 = vpop.eup %6408  ;;  %v1911_v47 = vadd.f32 1.0, %v6407_v60  ;;  %v769_v60 = vld [vmem:[#allocation4 + $0x38] sm:$0xff] }
 0x7ad   :  { %v1917_v18 = vadd.f32 1.0, %v6409_v16  ;;  %v6411_v62 = vpop.eup %6410  ;;  %v762_v16 = vld [vmem:[#allocation4] sm:$0xff] }
 0x7ae   :  { %6414 = vrcp.f32 %v1911_v47  ;;  %v6413_v63 = vpop.eup %6412  ;;  %v1924_v17 = vadd.f32 1.0, %v6411_v62  ;;  %v766_v47 = vld [vmem:[#allocation4 + $0x20] sm:$0xff] }
 0x7af   :  { %6416 = vrcp.f32 %v1917_v18  ;;  %v7436_v18 = vpack.c.bf16 %v769_v60, %v765_v55  ;;  %v7438_v62 = vpack.c.bf16 %v766_v47, %v762_v16  ;;  %v798_v55 = vld [vmem:[#allocation4 + $0x120] sm:$0xff]  ;;  %v796_v47 = vld [vmem:[#allocation4 + $0x110] sm:$0xff] }
 0x7b0   :  { %6418 = vrcp.f32 %v1924_v17  ;;  %v773_v17 = vld [vmem:[#allocation4 + $0x58] sm:$0xff]  ;;  %v7486_v16 = vpack.c.bf16 %v798_v55, %v794_v51  ;;  %v818_v55 = vld [vmem:[#allocation4 + $0x1c0] sm:$0xff] }
 0x7b1   :  { %v825_v51 = vld [vmem:[#allocation4 + $0x1f8] sm:$0xff] }
 0x7b8   :  { %v6415_v42 = vpop.eup %6414 }
 0x7b9   :  { %v6417_v31 = vpop.eup %6416  ;;  %v1931_v0 = vmul.f32 %v6415_v42, %v6413_v63  ;;  %v764_v63 = vld [vmem:[#allocation4 + $0x10] sm:$0xff] }
 0x7ba   :  { %v1930_v43 = vmul.f32 %v6417_v31, %v1928_v48  ;;  %v6419_v49 = vpop.eup %6418  ;;  %v768_v42 = vld [vmem:[#allocation4 + $0x30] sm:$0xff]  ;;  %v771_v31 = vld [vmem:[#allocation4 + $0x48] sm:$0xff] }
 0x7bb   :  { %v7441_v48 = vpack.c.bf16 %v768_v42, %v764_v63  ;;  %v800_v63 = vld [vmem:[#allocation4 + $0x130] sm:$0xff]  ;;  %v803_v42 = vld [vmem:[#allocation4 + $0x148] sm:$0xff] }
 0x7bc   :  { %v7389_v50 = vadd.f32 %v1931_v0, %v1930_v43  ;;  %v775_v0 = vld [vmem:[#allocation4 + $0x68] sm:$0xff] }
 0x7bd   :  { %v7446_v43 = vpack.c.bf16 %v775_v0, %v771_v31  ;;  %v7489_v31 = vpack.c.bf16 %v800_v63, %v796_v47  ;;  %v807_v0 = vld [vmem:[#allocation4 + $0x168] sm:$0xff]  ;;  %v822_v47 = vld [vmem:[#allocation4 + $0x1e0] sm:$0xff] }
 0x7be   :  { %6420 = vtanh.f32 %v7389_v50 }
 0x7c8   :  { %v6421_v35 = vpop.eup %6420 }
 0x7c9   :  { %v1934_v38 = vmul.f32 %v6421_v35, %v6419_v49  ;;  %v770_v49 = vld [vmem:[#allocation4 + $0x40] sm:$0xff] }
 0x7ca   :  { %v774_v35 = vld [vmem:[#allocation4 + $0x60] sm:$0xff] }
 0x7cb   :  { %v1936_v61 = vrot.slane %v1934_v38, 2 }
 0x7cd   :  { %2003 = vmatmul.mubr.f32.vlgmr.msra.gmra.mrb[30].mxu0 %v1936_v61  ;;  %2074 = vmatmul.mubr.f32.vlgmr.msra.gmra.mrb[30].mxu1 %v1936_v61  ;;  %v7450_v61 = vpack.c.bf16 %v774_v35, %v770_v49  ;;  %v7493_v49 = vpack.c.bf16 %v807_v0, %v803_v42  ;;  %v820_v42 = vld [vmem:[#allocation4 + $0x1d0] sm:$0xff] }
 0x7ce   :  { %5550 = vmatpush1.bf16.msra.mxu0 %v6974_v1  ;;  %5582 = vmatpush1.bf16.msra.mxu1 %v6976_v2  ;;  %v824_v0 = vld [vmem:[#allocation4 + $0x1f0] sm:$0xff] }
 0x7cf   :  { %5552 = vmatprep.subr.bf16.mxu0 %v6978_v7  ;;  %5584 = vmatprep.subr.bf16.mxu1 %v6980_v8 }
 0x7d0   :  { %2190 = vmatprep.mubr.f32.mxu0 %v8147_v3  ;;  %2261 = vmatprep.mubr.f32.mxu1 %v8147_v3 }
 0x7d2   :  { %5554 = vmatpush1.bf16.msra.mxu0 %v6986_v13  ;;  %5586 = vmatpush1.bf16.msra.mxu1 %v6988_v14 }
 0x7d3   :  { %5556 = vmatprep.subr.bf16.mxu0 %v6994_v19  ;;  %5588 = vmatprep.subr.bf16.mxu1 %v6996_v21 }
 0x7d6   :  { %5558 = vmatpush1.bf16.msra.mxu0 %v7004_v26  ;;  %5590 = vmatpush1.bf16.msra.mxu1 %v7006_v27 }
 0x7d7   :  { %5560 = vmatprep.subr.bf16.mxu0 %v7012_v33  ;;  %5592 = vmatprep.subr.bf16.mxu1 %v7014_v34 }
 0x7da   :  { %5562 = vmatpush1.bf16.msra.mxu0 %v7022_v39  ;;  %5594 = vmatpush1.bf16.msra.mxu1 %v7024_v41 }
 0x7db   :  { %5564 = vmatprep.subr.bf16.mxu0 %v7028_v44  ;;  %5596 = vmatprep.subr.bf16.mxu1 %v7030_v45 }
 0x7de   :  { %5566 = vmatpush1.bf16.msra.mxu0 %v7040_v52  ;;  %5598 = vmatpush1.bf16.msra.mxu1 %v7042_v53 }
 0x7df   :  { %5568 = vmatprep.subr.bf16.mxu0 %v7046_v57  ;;  %5600 = vmatprep.subr.bf16.mxu1 %v7048_v58 }
 0x7e2   :  { %5570 = vmatpush1.bf16.msra.mxu0 %v7054_v4  ;;  %5602 = vmatpush1.bf16.msra.mxu1 %v7056_v5 }
 0x7e3   :  { %5572 = vmatprep.subr.bf16.mxu0 %v7060_v10  ;;  %5604 = vmatprep.subr.bf16.mxu1 %v7062_v11  ;;  %v2116_v10 = vrot.slane %v7389_v50, 6  ;;  %v777_v50 = vld [vmem:[#allocation4 + $0x78] sm:$0xff] }
 0x7e4   :  { %v7448_v38 = vpack.c.bf16 %v777_v50, %v773_v17  ;;  %v805_v17 = vld [vmem:[#allocation4 + $0x158] sm:$0xff] }
 0x7e5   :  { %v809_v50 = vld [vmem:[#allocation4 + $0x178] sm:$0xff] }
 0x7e6   :  { %5574 = vmatpush1.bf16.msra.mxu0 %v7066_v23  ;;  %5606 = vmatpush1.bf16.msra.mxu1 %v7068_v24  ;;  %v7495_v35 = vpack.c.bf16 %v809_v50, %v805_v17  ;;  %v7521_v17 = vpack.c.bf16 %v822_v47, %v818_v55  ;;  %v7525_v50 = vpack.c.bf16 %v824_v0, %v820_v42 }
 0x7e7   :  { %5576 = vmatprep.subr.bf16.mxu0 %v7072_v28  ;;  %5608 = vmatprep.subr.bf16.mxu1 %v7074_v29 }
 0x7ea   :  { %5578 = vmatpush1.bf16.msra.mxu0 %v7078_v36  ;;  %5610 = vmatpush1.bf16.msra.mxu1 %v7080_v37 }
 0x7eb   :  { %5612 = vmatprep.subr.bf16.mxu0 %v7434_v54  ;;  %5644 = vmatprep.subr.bf16.mxu1 %v7436_v18 }
 0x8a0   :  { %v2004_v1 = vpop.f32.mrb[30].mxu0  ;;  %v2075_v2 = vpop.f32.mrb[30].mxu1 }
 0x8a1   :  { %v2084_v7 = vrot.slane %v2004_v1, 4  ;;  %v2006_v8 = vpop.f32.mrb[31].mxu0  ;;  %v2077_v13 = vpop.f32.mrb[31].mxu1  ;;  %v2086_v39 = vrot.slane %v2075_v2, 4  ;;  %v772_v1 = vld [vmem:[#allocation4 + $0x50] sm:$0xff] }
 0x8a2   :  { %v2085_v14 = vrot.slane %v2006_v8, 4  ;;  %v2087_v33 = vrot.slane %v2077_v13, 4  ;;  %v776_v2 = vld [vmem:[#allocation4 + $0x70] sm:$0xff]  ;;  %v779_v8 = vld [vmem:[#allocation4 + $0x88] sm:$0xff] }
 0x8a3   :  { %v2092_v19 = vadd.f32 %v2084_v7, %v7130_v59  ;;  %v2094_v44 = vadd.f32 %v2086_v39, %v8148_v46  ;;  %v7453_v7 = vpack.c.bf16 %v776_v2, %v772_v1  ;;  %v783_v13 = vld [vmem:[#allocation4 + $0xa8] sm:$0xff]  ;;  %v780_v39 = vld [vmem:[#allocation4 + $0x90] sm:$0xff]  ;;  %v802_v1 = vld [vmem:[#allocation4 + $0x140] sm:$0xff] }
 0x8a4   :  { %v2093_v21 = vadd.f32 %v2085_v14, %v7134_v12  ;;  %v2095_v34 = vadd.f32 %v2087_v33, %v7136_v15  ;;  %v781_v14 = vld [vmem:[#allocation4 + $0x98] sm:$0xff]  ;;  %v806_v2 = vld [vmem:[#allocation4 + $0x160] sm:$0xff] }
 0x8a5   :  { %v4450_v26 = vmul.f32 -1.442695, %v2092_v19  ;;  %v7458_v19 = vpack.c.bf16 %v783_v13, %v779_v8  ;;  %v804_v8 = vld [vmem:[#allocation4 + $0x150] sm:$0xff]  ;;  %v7498_v13 = vpack.c.bf16 %v806_v2, %v802_v1 }
 0x8a6   :  { %v4451_v27 = vmul.f32 -1.442695, %v2093_v21  ;;  %v4452_v41 = vmul.f32 -1.442695, %v2095_v34  ;;  %v785_v21 = vld [vmem:[#allocation4 + $0xb8] sm:$0xff] }
 0x8a7   :  { %6422 = vpow2.f32 %v4450_v26  ;;  %v778_v26 = vld [vmem:[#allocation4 + $0x80] sm:$0xff]  ;;  %v7460_v33 = vpack.c.bf16 %v785_v21, %v781_v14  ;;  %v808_v14 = vld [vmem:[#allocation4 + $0x170] sm:$0xff]  ;;  %v811_v21 = vld [vmem:[#allocation4 + $0x188] sm:$0xff] }
 0x8a8   :  { %6424 = vpow2.f32 %v4451_v27  ;;  %v782_v27 = vld [vmem:[#allocation4 + $0xa0] sm:$0xff] }
 0x8a9   :  { %6426 = vpow2.f32 %v4452_v41  ;;  %v7462_v34 = vpack.c.bf16 %v782_v27, %v778_v26  ;;  %v784_v41 = vld [vmem:[#allocation4 + $0xb0] sm:$0xff]  ;;  %v815_v26 = vld [vmem:[#allocation4 + $0x1a8] sm:$0xff]  ;;  %v7502_v27 = vpack.c.bf16 %v808_v14, %v804_v8 }
 0x8aa   :  { %6428 = vtanh.f32 %v2094_v44  ;;  %v7465_v44 = vpack.c.bf16 %v784_v41, %v780_v39  ;;  %v7504_v39 = vpack.c.bf16 %v815_v26, %v811_v21  ;;  %v813_v41 = vld [vmem:[#allocation4 + $0x198] sm:$0xff] }
 0x8b1   :  { %v6423_v45 = vpop.eup %6422 }
 0x8b2   :  { %v6425_v52 = vpop.eup %6424  ;;  %v2099_v53 = vadd.f32 1.0, %v6423_v45  ;;  %v787_v45 = vld [vmem:[#allocation4 + $0xc8] sm:$0xff] }
 0x8b3   :  { %v2105_v57 = vadd.f32 1.0, %v6425_v52  ;;  %v6427_v58 = vpop.eup %6426  ;;  %v791_v52 = vld [vmem:[#allocation4 + $0xe8] sm:$0xff] }
 0x8b4   :  { %6430 = vrcp.f32 %v2099_v53  ;;  %v6429_v4 = vpop.eup %6428  ;;  %v2112_v24 = vadd.f32 1.0, %v6427_v58  ;;  %v789_v53 = vld [vmem:[#allocation4 + $0xd8] sm:$0xff] }
 0x8b5   :  { %6432 = vrcp.f32 %v2105_v57  ;;  %v7470_v57 = vpack.c.bf16 %v791_v52, %v787_v45  ;;  %v793_v58 = vld [vmem:[#allocation4 + $0xf8] sm:$0xff]  ;;  %v810_v52 = vld [vmem:[#allocation4 + $0x180] sm:$0xff] }
 0x8b6   :  { %6434 = vrcp.f32 %v2112_v24  ;;  %v792_v24 = vld [vmem:[#allocation4 + $0xf0] sm:$0xff]  ;;  %v817_v45 = vld [vmem:[#allocation4 + $0x1b8] sm:$0xff] }
 0x8be   :  { %v6431_v5 = vpop.eup %6430 }
 0x8bf   :  { %v6433_v11 = vpop.eup %6432  ;;  %v2119_v23 = vmul.f32 %v6431_v5, %v6429_v4  ;;  %v786_v4 = vld [vmem:[#allocation4 + $0xc0] sm:$0xff] }
 0x8c0   :  { %v2118_v28 = vmul.f32 %v6433_v11, %v2116_v10  ;;  %v6435_v36 = vpop.eup %6434  ;;  %v790_v5 = vld [vmem:[#allocation4 + $0xe0] sm:$0xff]  ;;  %v7472_v10 = vpack.c.bf16 %v793_v58, %v789_v53  ;;  %v7506_v53 = vpack.c.bf16 %v817_v45, %v813_v41 }
 0x8c1   :  { %v7474_v11 = vpack.c.bf16 %v790_v5, %v786_v4  ;;  %v814_v58 = vld [vmem:[#allocation4 + $0x1a0] sm:$0xff]  ;;  %v812_v4 = vld [vmem:[#allocation4 + $0x190] sm:$0xff] }
 0x8c2   :  { %v7429_v29 = vadd.f32 %v2119_v23, %v2118_v28  ;;  %v788_v23 = vld [vmem:[#allocation4 + $0xd0] sm:$0xff] }
 0x8c3   :  { %v7477_v28 = vpack.c.bf16 %v792_v24, %v788_v23  ;;  %v816_v5 = vld [vmem:[#allocation4 + $0x1b0] sm:$0xff]  ;;  %v7509_v23 = vpack.c.bf16 %v814_v58, %v810_v52  ;;  %v819_v24 = vld [vmem:[#allocation4 + $0x1c8] sm:$0xff] }
 0x8c4   :  { %6436 = vtanh.f32 %v7429_v29 }
 0x8ce   :  { %v6437_v37 = vpop.eup %6436 }
 0x8cf   :  { %v2122_v56 = vmul.f32 %v6437_v37, %v6435_v36  ;;  %v795_v36 = vld [vmem:[#allocation4 + $0x108] sm:$0xff] }
 0x8d0   :  { %v799_v37 = vld [vmem:[#allocation4 + $0x128] sm:$0xff] }
 0x8d1   :  { %v2124_v40 = vrot.slane %v2122_v56, 4  ;;  %v797_v56 = vld [vmem:[#allocation4 + $0x118] sm:$0xff] }
 0x8d2   :  { %v7484_v60 = vpack.c.bf16 %v801_v6, %v797_v56  ;;  %v7513_v56 = vpack.c.bf16 %v816_v5, %v812_v4 }
 0x8d3   :  { %2191 = vmatmul.mubr.f32.vlgmr.msra.gmra.mrb[32].mxu0 %v2124_v40  ;;  %2262 = vmatmul.mubr.f32.vlgmr.msra.gmra.mrb[32].mxu1 %v2124_v40  ;;  %v7482_v40 = vpack.c.bf16 %v799_v37, %v795_v36  ;;  %v823_v36 = vld [vmem:[#allocation4 + $0x1e8] sm:$0xff]  ;;  %v821_v37 = vld [vmem:[#allocation4 + $0x1d8] sm:$0xff] }
 0x8d4   :  { %2378 = vmatprep.mubr.f32.mxu0 %v8147_v3  ;;  %2449 = vmatprep.mubr.f32.mxu1 %v8147_v3  ;;  %v7515_v6 = vpack.c.bf16 %v823_v36, %v819_v24  ;;  %v7518_v63 = vpack.c.bf16 %v825_v51, %v821_v37 }
 0x8d5   :  { %5614 = vmatpush1.bf16.msra.mxu0 %v7438_v62  ;;  %5646 = vmatpush1.bf16.msra.mxu1 %v7441_v48 }
 0x8d6   :  { %5616 = vmatprep.subr.bf16.mxu0 %v7446_v43  ;;  %5648 = vmatprep.subr.bf16.mxu1 %v7448_v38 }
 0x8d9   :  { %5618 = vmatpush1.bf16.msra.mxu0 %v7450_v61  ;;  %5650 = vmatpush1.bf16.msra.mxu1 %v7453_v7 }
 0x8da   :  { %5620 = vmatprep.subr.bf16.mxu0 %v7458_v19  ;;  %5652 = vmatprep.subr.bf16.mxu1 %v7460_v33 }
 0x8dd   :  { %5622 = vmatpush1.bf16.msra.mxu0 %v7462_v34  ;;  %5654 = vmatpush1.bf16.msra.mxu1 %v7465_v44 }
 0x8de   :  { %5624 = vmatprep.subr.bf16.mxu0 %v7470_v57  ;;  %5656 = vmatprep.subr.bf16.mxu1 %v7472_v10 }
 0x8e1   :  { %5626 = vmatpush1.bf16.msra.mxu0 %v7474_v11  ;;  %5658 = vmatpush1.bf16.msra.mxu1 %v7477_v28 }
 0x8e2   :  { %5628 = vmatprep.subr.bf16.mxu0 %v7482_v40  ;;  %5660 = vmatprep.subr.bf16.mxu1 %v7484_v60 }
 0x8e5   :  { %5630 = vmatpush1.bf16.msra.mxu0 %v7486_v16  ;;  %5662 = vmatpush1.bf16.msra.mxu1 %v7489_v31 }
 0x8e6   :  { %5632 = vmatprep.subr.bf16.mxu0 %v7493_v49  ;;  %5664 = vmatprep.subr.bf16.mxu1 %v7495_v35 }
 0x8e9   :  { %5634 = vmatpush1.bf16.msra.mxu0 %v7498_v13  ;;  %5666 = vmatpush1.bf16.msra.mxu1 %v7502_v27 }
 0x8ea   :  { %5636 = vmatprep.subr.bf16.mxu0 %v7504_v39  ;;  %5668 = vmatprep.subr.bf16.mxu1 %v7506_v53 }
 0x8ed   :  { %5638 = vmatpush1.bf16.msra.mxu0 %v7509_v23  ;;  %5670 = vmatpush1.bf16.msra.mxu1 %v7513_v56 }
 0x8ee   :  { %5640 = vmatprep.subr.bf16.mxu0 %v7515_v6  ;;  %5672 = vmatprep.subr.bf16.mxu1 %v7518_v63 }
 0x8f1   :  { %5642 = vmatpush1.bf16.msra.mxu0 %v7521_v17  ;;  %5674 = vmatpush1.bf16.msra.mxu1 %v7525_v50 }
 0x8f2   :  { %5700 = vmatprep.subr.bf16.mxu1 %v7434_v54 }
 0x9a6   :  { %v2192_v1 = vpop.f32.mrb[32].mxu0  ;;  %v2263_v2 = vpop.f32.mrb[32].mxu1 }
 0x9a7   :  { %v2272_v8 = vrot.slane %v2192_v1, 2  ;;  %v2194_v14 = vpop.f32.mrb[33].mxu0  ;;  %v2265_v21 = vpop.f32.mrb[33].mxu1  ;;  %v2274_v24 = vrot.slane %v2263_v2, 2  ;;  %v2304_v1 = vrot.slane %v7429_v29, 6  ;;  %v826_v29 = vld [vmem:[%s8120_s8] sm:$0xff] }
 0x9a8   :  { %v2273_v26 = vrot.slane %v2194_v14, 2  ;;  %v2275_v4 = vrot.slane %v2265_v21, 2 }
 0x9a9   :  { %v2280_v41 = vadd.f32 %v2272_v8, %v7130_v59  ;;  %v2282_v37 = vadd.f32 %v2274_v24, %v8148_v46  ;;  %v829_v24 = vld [vmem:[%s8120_s8 + $0x18] sm:$0xff] }
 0x9aa   :  { %v2281_v45 = vadd.f32 %v2273_v26, %v7134_v12  ;;  %v2283_v5 = vadd.f32 %v2275_v4, %v7136_v15  ;;  %v8133_v4 = vmov 0.0|0.0  }
 0x9ab   :  { %v4453_v52 = vmul.f32 -1.442695, %v2280_v41  ;;  %5675 = vmatprep.subr.bf16.mxu0 %v8133_v4 }
 0x9ac   :  { %v4454_v58 = vmul.f32 -1.442695, %v2281_v45  ;;  %v4455_v36 = vmul.f32 -1.442695, %v2283_v5  ;;  %v828_v5 = vld [vmem:[%s8120_s8 + $0x10] sm:$0xff] }
 0x9ad   :  { %6438 = vpow2.f32 %v4453_v52  ;;  %v827_v52 = vld [vmem:[%s8120_s8 + $0x8] sm:$0xff] }
 0x9ae   :  { %6440 = vpow2.f32 %v4454_v58  ;;  %v7561_v58 = vpack.c.bf16 %v827_v52, %v826_v29  ;;  %v7641_v52 = vadd.f32 %v7138_v9, %v7146_v30  ;;  %v8151_v30 = vld [vmem:[#allocation10_spill] sm:$0xff] }
 0x9af   :  { %6442 = vpow2.f32 %v4455_v36  ;;  %v7573_v36 = vpack.c.bf16 %v829_v24, %v828_v5  ;;  %v7645_v5 = vadd.f32 %v7142_v22, %v7150_v32  ;;  %v8150_v22 = vld [vmem:[#allocation11_spill] sm:$0xff] }
 0x9b0   :  { %6444 = vtanh.f32 %v2282_v37  ;;  %v830_v37 = vld [vmem:[%s8120_s8 + $0x20] sm:$0xff]  ;;  %v7656_v32 = vadd.f32 %v8151_v30, %v8150_v22 }
 0x9b1   :  { %8149 = vst [vmem:[#allocation9_spill] sm:$0xff] %v7645_v5 }
 0x9b7   :  { %v6439_v51 = vpop.eup %6438 }
 0x9b8   :  { %v6441_v55 = vpop.eup %6440  ;;  %v2287_v47 = vadd.f32 1.0, %v6439_v51  ;;  %v831_v51 = vld [vmem:[%s8120_s8 + $0x28] sm:$0xff] }
 0x9b9   :  { %v2293_v42 = vadd.f32 1.0, %v6441_v55  ;;  %v6443_v59 = vpop.eup %6442  ;;  %v7583_v55 = vpack.c.bf16 %v831_v51, %v830_v37 }
 0x9ba   :  { %6446 = vrcp.f32 %v2287_v47  ;;  %v6445_v12 = vpop.eup %6444  ;;  %v2300_v15 = vadd.f32 1.0, %v6443_v59  ;;  %v832_v47 = vld [vmem:[%s8120_s8 + $0x30] sm:$0xff] }
 0x9bb   :  { %6448 = vrcp.f32 %v2293_v42  ;;  %v833_v42 = vld [vmem:[%s8120_s8 + $0x38] sm:$0xff] }
 0x9bc   :  { %6450 = vrcp.f32 %v2300_v15  ;;  %v7593_v59 = vpack.c.bf16 %v833_v42, %v832_v47 }
 0x9c4   :  { %v6447_v0 = vpop.eup %6446 }
 0x9c5   :  { %v6449_v8 = vpop.eup %6448  ;;  %v2307_v14 = vmul.f32 %v6447_v0, %v6445_v12  ;;  %v834_v12 = vld [vmem:[%s8120_s8 + $0x40] sm:$0xff]  ;;  %v835_v0 = vld [vmem:[%s8120_s8 + $0x48] sm:$0xff] }
 0x9c6   :  { %v2306_v2 = vmul.f32 %v6449_v8, %v2304_v1  ;;  %v6451_v46 = vpop.eup %6450  ;;  %v7603_v1 = vpack.c.bf16 %v835_v0, %v834_v12  ;;  %v836_v8 = vld [vmem:[%s8120_s8 + $0x50] sm:$0xff] }
 0x9c8   :  { %v7536_v21 = vadd.f32 %v2307_v14, %v2306_v2  ;;  %v837_v14 = vld [vmem:[%s8120_s8 + $0x58] sm:$0xff]  ;;  %v838_v2 = vld [vmem:[%s8120_s8 + $0x60] sm:$0xff] }
 0x9c9   :  { %v7613_v15 = vpack.c.bf16 %v837_v14, %v836_v8  ;;  %v7651_v14 = vadd.f32 %v7144_v25, %v7152_v20 }
 0x9ca   :  { %6452 = vtanh.f32 %v7536_v21 }
 0x9d4   :  { %v6453_v26 = vpop.eup %6452 }
 0x9d5   :  { %v2310_v41 = vmul.f32 %v6453_v26, %v6451_v46  ;;  %v839_v46 = vld [vmem:[%s8120_s8 + $0x68] sm:$0xff] }
 0x9d6   :  { %v7624_v26 = vpack.c.bf16 %v839_v46, %v838_v2 }
 0x9d7   :  { %v2312_v45 = vrot.slane %v2310_v41, 6  ;;  %v840_v41 = vld [vmem:[%s8120_s8 + $0x70] sm:$0xff] }
 0x9d9   :  { %2379 = vmatmul.mubr.f32.vlgmr.msra.gmra.mrb[34].mxu0 %v2312_v45  ;;  %2450 = vmatmul.mubr.f32.vlgmr.msra.gmra.mrb[34].mxu1 %v2312_v45  ;;  %v841_v45 = vld [vmem:[%s8120_s8 + $0x78] sm:$0xff] }
 0x9da   :  { %5702 = vmatpush1.bf16.msra.mxu1 %v7438_v62  ;;  %2627 = vmatprep.mubr.f32.mxu1 %v8147_v3  ;;  %v7634_v29 = vpack.c.bf16 %v841_v45, %v840_v41 }
 0x9db   :  { %5704 = vmatprep.subr.bf16.mxu1 %v7446_v43  ;;  %5677 = vmatpush3.bf16.msra.mxu0 %v7561_v58 }
 0x9dc   :  { %5678 = vmatprep.subr.bf16.mxu0 %v8133_v4  ;;  %4755 = vmatprep.mubr.msk.f32.mxu0 %vm6647_vm5, %v8147_v3 }
 0x9de   :  { %5706 = vmatpush1.bf16.msra.mxu1 %v7450_v61 }
 0x9df   :  { %5708 = vmatprep.subr.bf16.mxu1 %v7458_v19  ;;  %5680 = vmatpush3.bf16.msra.mxu0 %v7573_v36 }
 0x9e0   :  { %5681 = vmatprep.subr.bf16.mxu0 %v8133_v4 }
 0x9e2   :  { %5710 = vmatpush1.bf16.msra.mxu1 %v7462_v34 }
 0x9e3   :  { %5712 = vmatprep.subr.bf16.mxu1 %v7470_v57  ;;  %5683 = vmatpush3.bf16.msra.mxu0 %v7583_v55 }
 0x9e4   :  { %5684 = vmatprep.subr.bf16.mxu0 %v8133_v4 }
 0x9e6   :  { %5714 = vmatpush1.bf16.msra.mxu1 %v7474_v11 }
 0x9e7   :  { %5716 = vmatprep.subr.bf16.mxu1 %v7482_v40  ;;  %5686 = vmatpush3.bf16.msra.mxu0 %v7593_v59 }
 0x9e8   :  { %5687 = vmatprep.subr.bf16.mxu0 %v8133_v4 }
 0x9ea   :  { %5718 = vmatpush1.bf16.msra.mxu1 %v7486_v16 }
 0x9eb   :  { %5720 = vmatprep.subr.bf16.mxu1 %v7493_v49  ;;  %5689 = vmatpush3.bf16.msra.mxu0 %v7603_v1 }
 0x9ec   :  { %5690 = vmatprep.subr.bf16.mxu0 %v8133_v4 }
 0x9ee   :  { %5722 = vmatpush1.bf16.msra.mxu1 %v7498_v13 }
 0x9ef   :  { %5724 = vmatprep.subr.bf16.mxu1 %v7504_v39  ;;  %5692 = vmatpush3.bf16.msra.mxu0 %v7613_v15 }
 0x9f0   :  { %5693 = vmatprep.subr.bf16.mxu0 %v8133_v4 }
 0x9f2   :  { %5726 = vmatpush1.bf16.msra.mxu1 %v7509_v23 }
 0x9f3   :  { %5728 = vmatprep.subr.bf16.mxu1 %v7515_v6  ;;  %5695 = vmatpush3.bf16.msra.mxu0 %v7624_v26 }
 0x9f4   :  { %5696 = vmatprep.subr.bf16.mxu0 %v8133_v4 }
 0x9f6   :  { %5730 = vmatpush1.bf16.msra.mxu1 %v7521_v17 }
 0x9f7   :  { %5763 = vmatprep.subr.bf16.mxu1 %v8133_v4  ;;  %5698 = vmatpush3.bf16.msra.mxu0 %v7634_v29 }
 0x9f8   :  { %5732 = vmatprep.subr.bf16.mxu0 %v7436_v18 }
 0xaac   :  { %v2380_v24 = vpop.f32.mrb[34].mxu0  ;;  %v2451_v37 = vpop.f32.mrb[34].mxu1 }
 0xaad   :  { %v2456_v51 = vadd.f32 %v2380_v24, %v7641_v52  ;;  %v2382_v47 = vpop.f32.mrb[35].mxu0  ;;  %v2453_v42 = vpop.f32.mrb[35].mxu1  ;;  %v2458_v46 = vadd.f32 %v2451_v37, %v7656_v32 }
 0xaae   :  { %v2457_v12 = vadd.f32 %v2382_v47, %v7645_v5  ;;  %v2459_v9 = vadd.f32 %v2453_v42, %v7651_v14  ;;  %v2480_v42 = vrot.slane %v7536_v21, 6 }
 0xaaf   :  { %v4456_v0 = vmul.f32 -1.442695, %v2456_v51 }
 0xab0   :  { %v4457_v8 = vmul.f32 -1.442695, %v2457_v12  ;;  %v4458_v2 = vmul.f32 -1.442695, %v2459_v9 }
 0xab1   :  { %6454 = vpow2.f32 %v4456_v0 }
 0xab2   :  { %6456 = vpow2.f32 %v4457_v8 }
 0xab3   :  { %6458 = vpow2.f32 %v4458_v2 }
 0xab4   :  { %6460 = vtanh.f32 %v2458_v46 }
 0xabb   :  { %v6455_v41 = vpop.eup %6454 }
 0xabc   :  { %v6457_v45 = vpop.eup %6456  ;;  %v2463_v24 = vadd.f32 1.0, %v6455_v41 }
 0xabd   :  { %v2469_v51 = vadd.f32 1.0, %v6457_v45  ;;  %v6459_v25 = vpop.eup %6458 }
 0xabe   :  { %6462 = vrcp.f32 %v2463_v24  ;;  %v6461_v20 = vpop.eup %6460  ;;  %v2476_v8 = vadd.f32 1.0, %v6459_v25 }
 0xabf   :  { %6464 = vrcp.f32 %v2469_v51 }
 0xac0   :  { %6466 = vrcp.f32 %v2476_v8 }
 0xac8   :  { %v6463_v47 = vpop.eup %6462 }
 0xac9   :  { %v6465_v12 = vpop.eup %6464  ;;  %v2483_v0 = vmul.f32 %v6463_v47, %v6461_v20 }
 0xaca   :  { %v2482_v22 = vmul.f32 %v6465_v12, %v2480_v42  ;;  %v6467_v37 = vpop.eup %6466 }
 0xacc   :  { %v7660_v9 = vadd.f32 %v2483_v0, %v2482_v22 }
 0xace   :  { %6468 = vtanh.f32 %v7660_v9  ;;  %v2741_v22 = vrot.slane %v7660_v9, 6 }
 0xad8   :  { %v6469_v30 = vpop.eup %6468 }
 0xad9   :  { %v2486_v2 = vmul.f32 %v6469_v30, %v6467_v37 }
 0xadb   :  { %4756 = vmatmul.mubr.f32.vlgmr.msra.gmra.mrb[36].mxu0 %v2486_v2  ;;  %2628 = vmatmul.mubr.f32.vlgmr.msra.gmra.mrb[36].mxu1 %v2486_v2 }
 0xadc   :  { %5734 = vmatpush1.bf16.msra.mxu0 %v7441_v48  ;;  %2698 = vmatprep.mubr.f32.mxu0 %v8147_v3 }
 0xadd   :  { %5736 = vmatprep.subr.bf16.mxu0 %v7448_v38  ;;  %5765 = vmatpush3.bf16.msra.mxu1 %v7561_v58 }
 0xade   :  { %5766 = vmatprep.subr.bf16.mxu1 %v8133_v4  ;;  %4790 = vmatprep.mubr.msk.f32.mxu1 %vm6647_vm5, %v8147_v3 }
 0xae0   :  { %5738 = vmatpush1.bf16.msra.mxu0 %v7453_v7 }
 0xae1   :  { %5740 = vmatprep.subr.bf16.mxu0 %v7460_v33  ;;  %5768 = vmatpush3.bf16.msra.mxu1 %v7573_v36 }
 0xae2   :  { %5769 = vmatprep.subr.bf16.mxu1 %v8133_v4 }
 0xae4   :  { %5742 = vmatpush1.bf16.msra.mxu0 %v7465_v44 }
 0xae5   :  { %5744 = vmatprep.subr.bf16.mxu0 %v7472_v10  ;;  %5771 = vmatpush3.bf16.msra.mxu1 %v7583_v55 }
 0xae6   :  { %5772 = vmatprep.subr.bf16.mxu1 %v8133_v4 }
 0xae8   :  { %5746 = vmatpush1.bf16.msra.mxu0 %v7477_v28 }
 0xae9   :  { %5748 = vmatprep.subr.bf16.mxu0 %v7484_v60  ;;  %5774 = vmatpush3.bf16.msra.mxu1 %v7593_v59 }
 0xaea   :  { %5775 = vmatprep.subr.bf16.mxu1 %v8133_v4 }
 0xaec   :  { %5750 = vmatpush1.bf16.msra.mxu0 %v7489_v31 }
 0xaed   :  { %5752 = vmatprep.subr.bf16.mxu0 %v7495_v35  ;;  %5777 = vmatpush3.bf16.msra.mxu1 %v7603_v1 }
 0xaee   :  { %5778 = vmatprep.subr.bf16.mxu1 %v8133_v4 }
 0xaf0   :  { %5754 = vmatpush1.bf16.msra.mxu0 %v7502_v27 }
 0xaf1   :  { %5756 = vmatprep.subr.bf16.mxu0 %v7506_v53  ;;  %5780 = vmatpush3.bf16.msra.mxu1 %v7613_v15 }
 0xaf2   :  { %5781 = vmatprep.subr.bf16.mxu1 %v8133_v4 }
 0xaf4   :  { %5758 = vmatpush1.bf16.msra.mxu0 %v7513_v56 }
 0xaf5   :  { %5760 = vmatprep.subr.bf16.mxu0 %v7518_v63  ;;  %5783 = vmatpush3.bf16.msra.mxu1 %v7624_v26 }
 0xaf6   :  { %5784 = vmatprep.subr.bf16.mxu1 %v8133_v4 }
 0xaf8   :  { %5762 = vmatpush1.bf16.msra.mxu0 %v7525_v50 }
 0xaf9   :  { %5788 = vmatprep.subr.bf16.mxu0 %v7434_v54  ;;  %5786 = vmatpush3.bf16.msra.mxu1 %v7634_v29 }
 0xafa   :  { %5820 = vmatprep.subr.bf16.mxu1 %v7436_v18 }
 0xafb   :  { %2699 = vmatmul.mubr.f32.vlgmr.msra.gmra.mrb[38].mxu0 %v2486_v2 }
 0xafc   :  { %5790 = vmatpush1.bf16.msra.mxu0 %v7438_v62  ;;  %2885 = vmatprep.mubr.f32.mxu0 %v8147_v3 }
 0xafd   :  { %5792 = vmatprep.subr.bf16.mxu0 %v7446_v43 }
 0xb00   :  { %5794 = vmatpush1.bf16.msra.mxu0 %v7450_v61 }
 0xb01   :  { %5796 = vmatprep.subr.bf16.mxu0 %v7458_v19 }
 0xb04   :  { %5798 = vmatpush1.bf16.msra.mxu0 %v7462_v34 }
 0xb05   :  { %5800 = vmatprep.subr.bf16.mxu0 %v7470_v57 }
 0xb08   :  { %5802 = vmatpush1.bf16.msra.mxu0 %v7474_v11 }
 0xb09   :  { %5804 = vmatprep.subr.bf16.mxu0 %v7482_v40 }
 0xb0c   :  { %5806 = vmatpush1.bf16.msra.mxu0 %v7486_v16 }
 0xb0d   :  { %5808 = vmatprep.subr.bf16.mxu0 %v7493_v49 }
 0xb10   :  { %5810 = vmatpush1.bf16.msra.mxu0 %v7498_v13 }
 0xb11   :  { %5812 = vmatprep.subr.bf16.mxu0 %v7504_v39 }
 0xb14   :  { %5814 = vmatpush1.bf16.msra.mxu0 %v7509_v23 }
 0xb15   :  { %5816 = vmatprep.subr.bf16.mxu0 %v7515_v6 }
 0xb18   :  { %5818 = vmatpush1.bf16.msra.mxu0 %v7521_v17 }
 0xb19   :  { %5851 = vmatprep.subr.bf16.mxu0 %v8133_v4 }
 0xbae   :  { %v7715_v21 = vpop.f32.mrb[36].mxu0  ;;  %v2629_v46 = vpop.f32.mrb[36].mxu1 }
 0xbaf   :  { %v4757_v41 = vpop.f32.mrb[37].mxu0  ;;  %v2631_v45 = vpop.f32.mrb[37].mxu1  ;;  %v2709_v20 = vrot.slane %v2629_v46, 6 }
 0xbb0   :  { %v2710_v24 = vrot.slane %v2631_v45, 6 }
 0xbb1   :  { %v2717_v47 = vadd.f32 %v2709_v20, %v7641_v52 }
 0xbb2   :  { %v2718_v51 = vadd.f32 %v2710_v24, %v7645_v5 }
 0xbb3   :  { %v4460_v42 = vmul.f32 -1.442695, %v2717_v47 }
 0xbb4   :  { %v4461_v25 = vmul.f32 -1.442695, %v2718_v51 }
 0xbb6   :  { %6470 = vpow2.f32 %v4461_v25 }
 0xbb7   :  { %6472 = vpow2.f32 %v4460_v42 }
 0xbc0   :  { %v6471_v12 = vpop.eup %6470 }
 0xbc1   :  { %v2730_v0 = vadd.f32 1.0, %v6471_v12  ;;  %v6473_v8 = vpop.eup %6472 }
 0xbc2   :  { %v2724_v30 = vadd.f32 1.0, %v6473_v8 }
 0xbc3   :  { %6474 = vrcp.f32 %v2730_v0 }
 0xbc4   :  { %6476 = vrcp.f32 %v2724_v30  ;;  %v8152_v30 = vmov 0.0|0.0  }
 0xbcd   :  { %v6475_v37 = vpop.eup %6474 }
 0xbce   :  { %v2743_v2 = vmul.f32 %v6475_v37, %v2741_v22  ;;  %v2700_v41 = vpop.f32.mrb[38].mxu0  ;;  %v6477_v20 = vpop.eup %6476 }
 0xbcf   :  { %v2711_v45 = vrot.slane %v2700_v41, 6  ;;  %v2702_v4 = vpop.f32.mrb[39].mxu0 }
 0xbd0   :  { %v2712_v24 = vrot.slane %v2702_v4, 6 }
 0xbd1   :  { %v2719_v46 = vadd.f32 %v2711_v45, %v7656_v32 }
 0xbd2   :  { %v2720_v51 = vadd.f32 %v2712_v24, %v7651_v14 }
 0xbd3   :  { %6478 = vtanh.f32 %v2719_v46 }
 0xbd4   :  { %v4462_v25 = vmul.f32 -1.442695, %v2720_v51 }
 0xbd6   :  { %6480 = vpow2.f32 %v4462_v25 }
 0xbdd   :  { %v6479_v47 = vpop.eup %6478 }
 0xbde   :  { %v2744_v42 = vmul.f32 %v6479_v47, %v6477_v20 }
 0xbe0   :  { %v6481_v12 = vpop.eup %6480  ;;  %v7722_v9 = vadd.f32 %v2744_v42, %v2743_v2  ;;  %v7780_v2 = vld [vmem:[%s8121_s9] ss:$0 sm:$0xff] }
 0xbe1   :  { %v2737_v0 = vadd.f32 1.0, %v6481_v12  ;;  %8153 = vst [vmem:[#allocation11_spill] sm:$0xff] %v7780_v2  ;;  %v2560_v20 = vadd.f32 %v7780_v2, %v7715_v21 }
 0xbe2   :  { %6482 = vtanh.f32 %v7722_v9 }
 0xbe3   :  { %6484 = vrcp.f32 %v2737_v0 }
 0xbec   :  { %v6483_v8 = vpop.eup %6482 }
 0xbed   :  { %v6485_v4 = vpop.eup %6484 }
 0xbee   :  { %v2747_v22 = vmul.f32 %v6485_v4, %v6483_v8 }
 0xbf0   :  { %v2749_v37 = vrot.slane %v2747_v22, 2 }
 0xbf2   :  { %4791 = vmatmul.mubr.f32.vlgmr.msra.gmra.mrb[38].mxu1 %v2749_v37  ;;  %2886 = vmatmul.mubr.f32.vlgmr.msra.gmra.mrb[40].mxu0 %v2749_v37 }
 0xbf3   :  { %5822 = vmatpush1.bf16.msra.mxu1 %v7441_v48  ;;  %2956 = vmatprep.mubr.f32.mxu1 %v8147_v3 }
 0xbf4   :  { %5824 = vmatprep.subr.bf16.mxu1 %v7448_v38  ;;  %5853 = vmatpush3.bf16.msra.mxu0 %v7561_v58 }
 0xbf5   :  { %5854 = vmatprep.subr.bf16.mxu0 %v8152_v30  ;;  %4825 = vmatprep.mubr.msk.f32.mxu0 %vm6647_vm5, %v8147_v3 }
 0xbf7   :  { %5826 = vmatpush1.bf16.msra.mxu1 %v7453_v7 }
 0xbf8   :  { %5828 = vmatprep.subr.bf16.mxu1 %v7460_v33  ;;  %5856 = vmatpush3.bf16.msra.mxu0 %v7573_v36 }
 0xbf9   :  { %5857 = vmatprep.subr.bf16.mxu0 %v8152_v30 }
 0xbfb   :  { %5830 = vmatpush1.bf16.msra.mxu1 %v7465_v44 }
 0xbfc   :  { %5832 = vmatprep.subr.bf16.mxu1 %v7472_v10  ;;  %5859 = vmatpush3.bf16.msra.mxu0 %v7583_v55 }
 0xbfd   :  { %5860 = vmatprep.subr.bf16.mxu0 %v8152_v30 }
 0xbff   :  { %5834 = vmatpush1.bf16.msra.mxu1 %v7477_v28 }
 0xc00   :  { %5836 = vmatprep.subr.bf16.mxu1 %v7484_v60  ;;  %5862 = vmatpush3.bf16.msra.mxu0 %v7593_v59 }
 0xc01   :  { %5863 = vmatprep.subr.bf16.mxu0 %v8152_v30 }
 0xc03   :  { %5838 = vmatpush1.bf16.msra.mxu1 %v7489_v31 }
 0xc04   :  { %5840 = vmatprep.subr.bf16.mxu1 %v7495_v35  ;;  %5865 = vmatpush3.bf16.msra.mxu0 %v7603_v1 }
 0xc05   :  { %5866 = vmatprep.subr.bf16.mxu0 %v8152_v30 }
 0xc07   :  { %5842 = vmatpush1.bf16.msra.mxu1 %v7502_v27 }
 0xc08   :  { %5844 = vmatprep.subr.bf16.mxu1 %v7506_v53  ;;  %5868 = vmatpush3.bf16.msra.mxu0 %v7613_v15 }
 0xc09   :  { %5869 = vmatprep.subr.bf16.mxu0 %v8152_v30 }
 0xc0b   :  { %5846 = vmatpush1.bf16.msra.mxu1 %v7513_v56 }
 0xc0c   :  { %5848 = vmatprep.subr.bf16.mxu1 %v7518_v63  ;;  %5871 = vmatpush3.bf16.msra.mxu0 %v7624_v26 }
 0xc0d   :  { %5872 = vmatprep.subr.bf16.mxu0 %v8152_v30 }
 0xc0f   :  { %5850 = vmatpush1.bf16.msra.mxu1 %v7525_v50 }
 0xc10   :  { %5876 = vmatprep.subr.bf16.mxu1 %v7434_v54  ;;  %5874 = vmatpush3.bf16.msra.mxu0 %v7634_v29 }
 0xc11   :  { %5908 = vmatprep.subr.bf16.mxu0 %v7436_v18 }
 0xc12   :  { %2957 = vmatmul.mubr.f32.vlgmr.msra.gmra.mrb[40].mxu1 %v2749_v37 }
 0xc13   :  { %5878 = vmatpush1.bf16.msra.mxu1 %v7438_v62  ;;  %3143 = vmatprep.mubr.f32.mxu1 %v8147_v3 }
 0xc14   :  { %5880 = vmatprep.subr.bf16.mxu1 %v7446_v43 }
 0xc17   :  { %5882 = vmatpush1.bf16.msra.mxu1 %v7450_v61 }
 0xc18   :  { %5884 = vmatprep.subr.bf16.mxu1 %v7458_v19 }
 0xc1b   :  { %5886 = vmatpush1.bf16.msra.mxu1 %v7462_v34 }
 0xc1c   :  { %5888 = vmatprep.subr.bf16.mxu1 %v7470_v57 }
 0xc1f   :  { %5890 = vmatpush1.bf16.msra.mxu1 %v7474_v11 }
 0xc20   :  { %5892 = vmatprep.subr.bf16.mxu1 %v7482_v40 }
 0xc23   :  { %5894 = vmatpush1.bf16.msra.mxu1 %v7486_v16 }
 0xc24   :  { %5896 = vmatprep.subr.bf16.mxu1 %v7493_v49 }
 0xc27   :  { %5898 = vmatpush1.bf16.msra.mxu1 %v7498_v13 }
 0xc28   :  { %5900 = vmatprep.subr.bf16.mxu1 %v7504_v39 }
 0xc2b   :  { %5902 = vmatpush1.bf16.msra.mxu1 %v7509_v23 }
 0xc2c   :  { %5904 = vmatprep.subr.bf16.mxu1 %v7515_v6 }
 0xc2f   :  { %5906 = vmatpush1.bf16.msra.mxu1 %v7521_v17 }
 0xc30   :  { %5939 = vmatprep.subr.bf16.mxu1 %v8152_v30 }
 0xcc5   :  { %v2817_v41 = vpop.f32.mrb[38].mxu1  ;;  %v2887_v45 = vpop.f32.mrb[40].mxu0 }
 0xcc6   :  { %v2818_v24 = vadd.f32 %v7780_v2, %v2817_v41  ;;  %v4792_v46 = vpop.f32.mrb[39].mxu1  ;;  %v2889_v51 = vpop.f32.mrb[41].mxu0  ;;  %v2967_v8 = vrot.slane %v2887_v45, 4 }
 0xcc7   :  { %v2968_v25 = vrot.slane %v2889_v51, 4  ;;  %v2999_v51 = vrot.slane %v7722_v9, 6 }
 0xcc8   :  { %v4355_v47 = vrot.slane %v2818_v24, 6  ;;  %v2975_v4 = vadd.f32 %v2967_v8, %v7641_v52 }
 0xcc9   :  { %v2976_v42 = vadd.f32 %v2968_v25, %v7645_v5 }
 0xcca   :  { %v7787_v12 = vsel %vm4372_vm6, %v2560_v20, %v4355_v47  ;;  %v4463_v22 = vmul.f32 -1.442695, %v2975_v4 }
 0xccb   :  { %v4464_v0 = vmul.f32 -1.442695, %v2976_v42 }
 0xccd   :  { %6486 = vpow2.f32 %v4464_v0 }
 0xcce   :  { %6488 = vpow2.f32 %v4463_v22 }
 0xcd7   :  { %v6487_v37 = vpop.eup %6486 }
 0xcd8   :  { %v2988_v41 = vadd.f32 1.0, %v6487_v37  ;;  %v6489_v46 = vpop.eup %6488 }
 0xcd9   :  { %v2982_v24 = vadd.f32 1.0, %v6489_v46 }
 0xcda   :  { %6490 = vrcp.f32 %v2988_v41 }
 0xcdb   :  { %6492 = vrcp.f32 %v2982_v24 }
 0xce4   :  { %v6491_v21 = vpop.eup %6490 }
 0xce5   :  { %v3001_v2 = vmul.f32 %v6491_v21, %v2999_v51  ;;  %v2958_v25 = vpop.f32.mrb[40].mxu1  ;;  %v6493_v8 = vpop.eup %6492 }
 0xce6   :  { %v2969_v5 = vrot.slane %v2958_v25, 4  ;;  %v2960_v20 = vpop.f32.mrb[41].mxu1  ;;  %v8154_v25 = vld [vmem:[#allocation11_spill] sm:$0xff] }
 0xce7   :  { %v2970_v47 = vrot.slane %v2960_v20, 4 }
 0xce8   :  { %v2977_v45 = vadd.f32 %v2969_v5, %v7656_v32 }
 0xce9   :  { %v2978_v42 = vadd.f32 %v2970_v47, %v7651_v14 }
 0xcea   :  { %6494 = vtanh.f32 %v2977_v45 }
 0xceb   :  { %v4465_v0 = vmul.f32 -1.442695, %v2978_v42 }
 0xced   :  { %6496 = vpow2.f32 %v4465_v0 }
 0xcf4   :  { %v6495_v4 = vpop.eup %6494 }
 0xcf5   :  { %v3002_v22 = vmul.f32 %v6495_v4, %v6493_v8  ;;  %v8155_v8 = vld [vmem:[#allocation9_spill] sm:$0xff] }
 0xcf7   :  { %v6497_v37 = vpop.eup %6496  ;;  %v7793_v9 = vadd.f32 %v3002_v22, %v3001_v2 }
 0xcf8   :  { %v2995_v41 = vadd.f32 1.0, %v6497_v37 }
 0xcf9   :  { %6498 = vtanh.f32 %v7793_v9 }
 0xcfa   :  { %6500 = vrcp.f32 %v2995_v41 }
 0xd03   :  { %v6499_v46 = vpop.eup %6498 }
 0xd04   :  { %v6501_v51 = vpop.eup %6500 }
 0xd05   :  { %v3005_v21 = vmul.f32 %v6501_v51, %v6499_v46 }
 0xd07   :  { %v3007_v5 = vrot.slane %v3005_v21, 4 }
 0xd09   :  { %4826 = vmatmul.mubr.f32.vlgmr.msra.gmra.mrb[42].mxu0 %v3007_v5  ;;  %3144 = vmatmul.mubr.f32.vlgmr.msra.gmra.mrb[42].mxu1 %v3007_v5 }
 0xd0a   :  { %5910 = vmatpush1.bf16.msra.mxu0 %v7441_v48  ;;  %3214 = vmatprep.mubr.f32.mxu0 %v8147_v3 }
 0xd0b   :  { %5912 = vmatprep.subr.bf16.mxu0 %v7448_v38  ;;  %5941 = vmatpush3.bf16.msra.mxu1 %v7561_v58 }
 0xd0c   :  { %5942 = vmatprep.subr.bf16.mxu1 %v8152_v30  ;;  %4860 = vmatprep.mubr.msk.f32.mxu1 %vm6647_vm5, %v8147_v3 }
 0xd0e   :  { %5914 = vmatpush1.bf16.msra.mxu0 %v7453_v7 }
 0xd0f   :  { %5916 = vmatprep.subr.bf16.mxu0 %v7460_v33  ;;  %5944 = vmatpush3.bf16.msra.mxu1 %v7573_v36 }
 0xd10   :  { %5945 = vmatprep.subr.bf16.mxu1 %v8152_v30 }
 0xd12   :  { %5918 = vmatpush1.bf16.msra.mxu0 %v7465_v44 }
 0xd13   :  { %5920 = vmatprep.subr.bf16.mxu0 %v7472_v10  ;;  %5947 = vmatpush3.bf16.msra.mxu1 %v7583_v55 }
 0xd14   :  { %5948 = vmatprep.subr.bf16.mxu1 %v8152_v30 }
 0xd16   :  { %5922 = vmatpush1.bf16.msra.mxu0 %v7477_v28 }
 0xd17   :  { %5924 = vmatprep.subr.bf16.mxu0 %v7484_v60  ;;  %5950 = vmatpush3.bf16.msra.mxu1 %v7593_v59 }
 0xd18   :  { %5951 = vmatprep.subr.bf16.mxu1 %v8152_v30 }
 0xd1a   :  { %5926 = vmatpush1.bf16.msra.mxu0 %v7489_v31 }
 0xd1b   :  { %5928 = vmatprep.subr.bf16.mxu0 %v7495_v35  ;;  %5953 = vmatpush3.bf16.msra.mxu1 %v7603_v1 }
 0xd1c   :  { %5954 = vmatprep.subr.bf16.mxu1 %v8152_v30 }
 0xd1e   :  { %5930 = vmatpush1.bf16.msra.mxu0 %v7502_v27 }
 0xd1f   :  { %5932 = vmatprep.subr.bf16.mxu0 %v7506_v53  ;;  %5956 = vmatpush3.bf16.msra.mxu1 %v7613_v15 }
 0xd20   :  { %5957 = vmatprep.subr.bf16.mxu1 %v8152_v30 }
 0xd22   :  { %5934 = vmatpush1.bf16.msra.mxu0 %v7513_v56 }
 0xd23   :  { %5936 = vmatprep.subr.bf16.mxu0 %v7518_v63  ;;  %5959 = vmatpush3.bf16.msra.mxu1 %v7624_v26 }
 0xd24   :  { %5960 = vmatprep.subr.bf16.mxu1 %v8152_v30 }
 0xd26   :  { %5938 = vmatpush1.bf16.msra.mxu0 %v7525_v50 }
 0xd27   :  { %5964 = vmatprep.subr.bf16.mxu0 %v7434_v54  ;;  %5962 = vmatpush3.bf16.msra.mxu1 %v7634_v29 }
 0xd28   :  { %5996 = vmatprep.subr.bf16.mxu1 %v7436_v18 }
 0xd29   :  { %3215 = vmatmul.mubr.f32.vlgmr.msra.gmra.mrb[44].mxu0 %v3007_v5 }
 0xd2a   :  { %5966 = vmatpush1.bf16.msra.mxu0 %v7438_v62  ;;  %3401 = vmatprep.mubr.f32.mxu0 %v8147_v3 }
 0xd2b   :  { %5968 = vmatprep.subr.bf16.mxu0 %v7446_v43 }
 0xd2e   :  { %5970 = vmatpush1.bf16.msra.mxu0 %v7450_v61 }
 0xd2f   :  { %5972 = vmatprep.subr.bf16.mxu0 %v7458_v19 }
 0xd32   :  { %5974 = vmatpush1.bf16.msra.mxu0 %v7462_v34 }
 0xd33   :  { %5976 = vmatprep.subr.bf16.mxu0 %v7470_v57 }
 0xd36   :  { %5978 = vmatpush1.bf16.msra.mxu0 %v7474_v11 }
 0xd37   :  { %5980 = vmatprep.subr.bf16.mxu0 %v7482_v40 }
 0xd3a   :  { %5982 = vmatpush1.bf16.msra.mxu0 %v7486_v16 }
 0xd3b   :  { %5984 = vmatprep.subr.bf16.mxu0 %v7493_v49 }
 0xd3e   :  { %5986 = vmatpush1.bf16.msra.mxu0 %v7498_v13 }
 0xd3f   :  { %5988 = vmatprep.subr.bf16.mxu0 %v7504_v39 }
 0xd42   :  { %5990 = vmatpush1.bf16.msra.mxu0 %v7509_v23 }
 0xd43   :  { %5992 = vmatprep.subr.bf16.mxu0 %v7515_v6 }
 0xd46   :  { %5994 = vmatpush1.bf16.msra.mxu0 %v7521_v17 }
 0xd47   :  { %6027 = vmatprep.subr.bf16.mxu0 %v8152_v30 }
 0xddc   :  { %v3075_v2 = vpop.f32.mrb[42].mxu0  ;;  %v3145_v24 = vpop.f32.mrb[42].mxu1 }
 0xddd   :  { %v3076_v20 = vadd.f32 %v8154_v25, %v3075_v2  ;;  %v4827_v47 = vpop.f32.mrb[43].mxu0  ;;  %v3147_v45 = vpop.f32.mrb[43].mxu1  ;;  %v3225_v41 = vrot.slane %v3145_v24, 2 }
 0xdde   :  { %v3226_v42 = vrot.slane %v3147_v45, 2  ;;  %v3257_v47 = vrot.slane %v7793_v9, 6 }
 0xddf   :  { %v4358_v0 = vrot.slane %v3076_v20, 4  ;;  %v3233_v46 = vadd.f32 %v3225_v41, %v7641_v52 }
 0xde0   :  { %v3234_v4 = vadd.f32 %v3226_v42, %v8155_v8 }
 0xde1   :  { %v7852_v22 = vsel %vm4374_vm7, %v7787_v12, %v4358_v0  ;;  %v4466_v51 = vmul.f32 -1.442695, %v3233_v46 }
 0xde2   :  { %v4467_v37 = vmul.f32 -1.442695, %v3234_v4 }
 0xde4   :  { %6502 = vpow2.f32 %v4467_v37 }
 0xde5   :  { %6504 = vpow2.f32 %v4466_v51 }
 0xdee   :  { %v6503_v21 = vpop.eup %6502 }
 0xdef   :  { %v3246_v5 = vadd.f32 1.0, %v6503_v21  ;;  %v6505_v2 = vpop.eup %6504 }
 0xdf0   :  { %v3240_v45 = vadd.f32 1.0, %v6505_v2 }
 0xdf1   :  { %6506 = vrcp.f32 %v3246_v5 }
 0xdf2   :  { %6508 = vrcp.f32 %v3240_v45 }
 0xdfb   :  { %v6507_v20 = vpop.eup %6506 }
 0xdfc   :  { %v3259_v42 = vmul.f32 %v6507_v20, %v3257_v47  ;;  %v3216_v8 = vpop.f32.mrb[44].mxu0  ;;  %v6509_v37 = vpop.eup %6508  ;;  %v8156_v20 = vld [vmem:[#allocation11_spill] sm:$0xff] }
 0xdfd   :  { %v3227_v25 = vrot.slane %v3216_v8, 2  ;;  %v3218_v12 = vpop.f32.mrb[45].mxu0 }
 0xdfe   :  { %v3228_v0 = vrot.slane %v3218_v12, 2  ;;  %v8157_v12 = vld [vmem:[#allocation14_spill] sm:$0xff] }
 0xdff   :  { %v3235_v24 = vadd.f32 %v3227_v25, %v7656_v32 }
 0xe00   :  { %v3236_v52 = vadd.f32 %v3228_v0, %v7651_v14 }
 0xe01   :  { %6510 = vtanh.f32 %v3235_v24 }
 0xe02   :  { %v4468_v4 = vmul.f32 -1.442695, %v3236_v52  ;;  %v8158_v52 = vld [vmem:[#allocation8_spill] sm:$0xff] }
 0xe03   :  { %vm4381_vm9 = vcmp.lt.s32.totalorder %v8158_v52, 32 }
 0xe04   :  { %6512 = vpow2.f32 %v4468_v4 }
 0xe0b   :  { %v6511_v41 = vpop.eup %6510 }
 0xe0c   :  { %v3260_v46 = vmul.f32 %v6511_v41, %v6509_v37 }
 0xe0e   :  { %v6513_v51 = vpop.eup %6512  ;;  %v7858_v9 = vadd.f32 %v3260_v46, %v3259_v42  ;;  %v8159_v46 = vld [vmem:[#allocation12_spill] sm:$0xff] }
 0xe0f   :  { %v3253_v21 = vadd.f32 1.0, %v6513_v51 }
 0xe10   :  { %6514 = vtanh.f32 %v7858_v9 }
 0xe11   :  { %6516 = vrcp.f32 %v3253_v21 }
 0xe1a   :  { %v6515_v5 = vpop.eup %6514 }
 0xe1b   :  { %v6517_v2 = vpop.eup %6516 }
 0xe1c   :  { %v3263_v47 = vmul.f32 %v6517_v2, %v6515_v5 }
 0xe1e   :  { %v3265_v32 = vrot.slane %v3263_v47, 6 }
 0xe20   :  { %4861 = vmatmul.mubr.f32.vlgmr.msra.gmra.mrb[44].mxu1 %v3265_v32  ;;  %3402 = vmatmul.mubr.f32.vlgmr.msra.gmra.mrb[46].mxu0 %v3265_v32 }
 0xe21   :  { %5998 = vmatpush1.bf16.msra.mxu1 %v7441_v48  ;;  %3472 = vmatprep.mubr.f32.mxu1 %v8147_v3 }
 0xe22   :  { %6000 = vmatprep.subr.bf16.mxu1 %v7448_v38  ;;  %6029 = vmatpush3.bf16.msra.mxu0 %v7561_v58 }
 0xe23   :  { %6030 = vmatprep.subr.bf16.mxu0 %v8152_v30  ;;  %4895 = vmatprep.mubr.msk.f32.mxu0 %vm6647_vm5, %v8147_v3 }
 0xe25   :  { %6002 = vmatpush1.bf16.msra.mxu1 %v7453_v7 }
 0xe26   :  { %6004 = vmatprep.subr.bf16.mxu1 %v7460_v33  ;;  %6032 = vmatpush3.bf16.msra.mxu0 %v7573_v36 }
 0xe27   :  { %6033 = vmatprep.subr.bf16.mxu0 %v8152_v30 }
 0xe29   :  { %6006 = vmatpush1.bf16.msra.mxu1 %v7465_v44 }
 0xe2a   :  { %6008 = vmatprep.subr.bf16.mxu1 %v7472_v10  ;;  %6035 = vmatpush3.bf16.msra.mxu0 %v7583_v55 }
 0xe2b   :  { %6036 = vmatprep.subr.bf16.mxu0 %v8152_v30 }
 0xe2d   :  { %6010 = vmatpush1.bf16.msra.mxu1 %v7477_v28 }
 0xe2e   :  { %6012 = vmatprep.subr.bf16.mxu1 %v7484_v60  ;;  %6038 = vmatpush3.bf16.msra.mxu0 %v7593_v59 }
 0xe2f   :  { %6039 = vmatprep.subr.bf16.mxu0 %v8152_v30 }
 0xe31   :  { %6014 = vmatpush1.bf16.msra.mxu1 %v7489_v31 }
 0xe32   :  { %6016 = vmatprep.subr.bf16.mxu1 %v7495_v35  ;;  %6041 = vmatpush3.bf16.msra.mxu0 %v7603_v1 }
 0xe33   :  { %6042 = vmatprep.subr.bf16.mxu0 %v8152_v30 }
 0xe35   :  { %6018 = vmatpush1.bf16.msra.mxu1 %v7502_v27 }
 0xe36   :  { %6020 = vmatprep.subr.bf16.mxu1 %v7506_v53  ;;  %6044 = vmatpush3.bf16.msra.mxu0 %v7613_v15 }
 0xe37   :  { %6045 = vmatprep.subr.bf16.mxu0 %v8152_v30 }
 0xe39   :  { %6022 = vmatpush1.bf16.msra.mxu1 %v7513_v56 }
 0xe3a   :  { %6024 = vmatprep.subr.bf16.mxu1 %v7518_v63  ;;  %6047 = vmatpush3.bf16.msra.mxu0 %v7624_v26 }
 0xe3b   :  { %6048 = vmatprep.subr.bf16.mxu0 %v8152_v30 }
 0xe3d   :  { %6026 = vmatpush1.bf16.msra.mxu1 %v7525_v50 }
 0xe3e   :  { %6052 = vmatprep.subr.bf16.mxu1 %v7434_v54  ;;  %6050 = vmatpush3.bf16.msra.mxu0 %v7634_v29 }
 0xe3f   :  { %6084 = vmatprep.subr.bf16.mxu0 %v7436_v18 }
 0xe40   :  { %3473 = vmatmul.mubr.f32.vlgmr.msra.gmra.mrb[46].mxu1 %v3265_v32  ;;  %v3503_v32 = vrot.slane %v7858_v9, 6 }
 0xe41   :  { %6054 = vmatpush1.bf16.msra.mxu1 %v7438_v62  ;;  %3644 = vmatprep.mubr.f32.mxu1 %v8147_v3 }
 0xe42   :  { %6056 = vmatprep.subr.bf16.mxu1 %v7446_v43 }
 0xe45   :  { %6058 = vmatpush1.bf16.msra.mxu1 %v7450_v61 }
 0xe46   :  { %6060 = vmatprep.subr.bf16.mxu1 %v7458_v19 }
 0xe49   :  { %6062 = vmatpush1.bf16.msra.mxu1 %v7462_v34 }
 0xe4a   :  { %6064 = vmatprep.subr.bf16.mxu1 %v7470_v57 }
 0xe4d   :  { %6066 = vmatpush1.bf16.msra.mxu1 %v7474_v11 }
 0xe4e   :  { %6068 = vmatprep.subr.bf16.mxu1 %v7482_v40 }
 0xe51   :  { %6070 = vmatpush1.bf16.msra.mxu1 %v7486_v16 }
 0xe52   :  { %6072 = vmatprep.subr.bf16.mxu1 %v7493_v49 }
 0xe55   :  { %6074 = vmatpush1.bf16.msra.mxu1 %v7498_v13 }
 0xe56   :  { %6076 = vmatprep.subr.bf16.mxu1 %v7504_v39 }
 0xe59   :  { %6078 = vmatpush1.bf16.msra.mxu1 %v7509_v23 }
 0xe5a   :  { %6080 = vmatprep.subr.bf16.mxu1 %v7515_v6 }
 0xe5d   :  { %6082 = vmatpush1.bf16.msra.mxu1 %v7521_v17 }
 0xe5e   :  { %6115 = vmatprep.subr.bf16.mxu1 %v8152_v30 }
 0xef3   :  { %v3333_v14 = vpop.f32.mrb[44].mxu1  ;;  %v3403_v25 = vpop.f32.mrb[46].mxu0 }
 0xef4   :  { %v3334_v45 = vadd.f32 %v8156_v20, %v3333_v14  ;;  %v4862_v42 = vpop.f32.mrb[45].mxu1  ;;  %v3405_v8 = vpop.f32.mrb[47].mxu0  ;;  %v3479_v51 = vadd.f32 %v3403_v25, %v8159_v46 }
 0xef5   :  { %v3480_v0 = vadd.f32 %v3405_v8, %v8157_v12  ;;  %v8160_v8 = vld [vmem:[#allocation13_spill] sm:$0xff] }
 0xef6   :  { %v4361_v24 = vrot.slane %v3334_v45, 2  ;;  %v4469_v21 = vmul.f32 -1.442695, %v3479_v51 }
 0xef7   :  { %v4470_v4 = vmul.f32 -1.442695, %v3480_v0 }
 0xef8   :  { %v4377_v37 = vsel %vm4376_vm8, %v7852_v22, %v4361_v24 }
 0xef9   :  { %6518 = vpow2.f32 %v4470_v4  ;;  %v7920_v41 = vsel %vm4381_vm9, %v4377_v37, -1e+30  ;;  %v8161_v4 = vld [vmem:[#allocation15_spill] sm:$0xff] }
 0xefa   :  { %4384 = vmax.xlane.f32.xlu0 %v7920_v41  ;;  %6520 = vpow2.f32 %v4469_v21 }
 0xf03   :  { %v6519_v5 = vpop.eup %6518 }
 0xf04   :  { %v3492_v2 = vadd.f32 1.0, %v6519_v5  ;;  %v6521_v47 = vpop.eup %6520 }
 0xf05   :  { %v3486_v45 = vadd.f32 1.0, %v6521_v47 }
 0xf06   :  { %6522 = vrcp.f32 %v3492_v2 }
 0xf07   :  { %6524 = vrcp.f32 %v3486_v45 }
 0xf10   :  { %v6523_v14 = vpop.eup %6522 }
 0xf11   :  { %v3505_v22 = vmul.f32 %v6523_v14, %v3503_v32  ;;  %v6525_v51 = vpop.eup %6524 }
 0xf13   :  { %v3474_v42 = vpop.f32.mrb[46].mxu1 }
 0xf14   :  { %v3481_v0 = vadd.f32 %v3474_v42, %v8160_v8  ;;  %v3476_v24 = vpop.f32.mrb[47].mxu1 }
 0xf15   :  { %v3482_v37 = vadd.f32 %v3476_v24, %v8161_v4 }
 0xf16   :  { %6526 = vtanh.f32 %v3481_v0 }
 0xf17   :  { %v4471_v25 = vmul.f32 -1.442695, %v3482_v37 }
 0xf19   :  { %6528 = vpow2.f32 %v4471_v25 }
 0xf20   :  { %v6527_v21 = vpop.eup %6526 }
 0xf21   :  { %v3506_v5 = vmul.f32 %v6527_v21, %v6525_v51 }
 0xf23   :  { %v6529_v2 = vpop.eup %6528  ;;  %v7927_v52 = vadd.f32 %v3506_v5, %v3505_v22 }
 0xf24   :  { %v3499_v9 = vadd.f32 1.0, %v6529_v2 }
 0xf25   :  { %6530 = vtanh.f32 %v7927_v52 }
 0xf26   :  { %6532 = vrcp.f32 %v3499_v9 }
 0xf2f   :  { %v6531_v47 = vpop.eup %6530 }
 0xf30   :  { %v6533_v32 = vpop.eup %6532 }
 0xf31   :  { %v3509_v14 = vmul.f32 %v6533_v32, %v6531_v47 }
 0xf33   :  { %4896 = vmatmul.mubr.f32.vlgmr.msra.gmra.mrb[48].mxu0 %v3509_v14  ;;  %3645 = vmatmul.mubr.f32.vlgmr.msra.gmra.mrb[48].mxu1 %v3509_v14 }
 0xf34   :  { %6086 = vmatpush1.bf16.msra.mxu0 %v7441_v48  ;;  %3715 = vmatprep.mubr.f32.mxu0 %v8147_v3 }
 0xf35   :  { %6088 = vmatprep.subr.bf16.mxu0 %v7448_v38  ;;  %6117 = vmatpush3.bf16.msra.mxu1 %v7561_v58 }
 0xf36   :  { %6118 = vmatprep.subr.bf16.mxu1 %v8152_v30  ;;  %4930 = vmatprep.mubr.msk.f32.mxu1 %vm6647_vm5, %v8147_v3 }
 0xf38   :  { %6090 = vmatpush1.bf16.msra.mxu0 %v7453_v7 }
 0xf39   :  { %6092 = vmatprep.subr.bf16.mxu0 %v7460_v33  ;;  %6120 = vmatpush3.bf16.msra.mxu1 %v7573_v36 }
 0xf3a   :  { %6121 = vmatprep.subr.bf16.mxu1 %v8152_v30 }
 0xf3c   :  { %6094 = vmatpush1.bf16.msra.mxu0 %v7465_v44 }
 0xf3d   :  { %6096 = vmatprep.subr.bf16.mxu0 %v7472_v10  ;;  %6123 = vmatpush3.bf16.msra.mxu1 %v7583_v55 }
 0xf3e   :  { %6124 = vmatprep.subr.bf16.mxu1 %v8152_v30 }
 0xf40   :  { %6098 = vmatpush1.bf16.msra.mxu0 %v7477_v28 }
 0xf41   :  { %6100 = vmatprep.subr.bf16.mxu0 %v7484_v60  ;;  %6126 = vmatpush3.bf16.msra.mxu1 %v7593_v59 }
 0xf42   :  { %6127 = vmatprep.subr.bf16.mxu1 %v8152_v30 }
 0xf44   :  { %6102 = vmatpush1.bf16.msra.mxu0 %v7489_v31 }
 0xf45   :  { %6104 = vmatprep.subr.bf16.mxu0 %v7495_v35  ;;  %6129 = vmatpush3.bf16.msra.mxu1 %v7603_v1 }
 0xf46   :  { %6130 = vmatprep.subr.bf16.mxu1 %v8152_v30 }
 0xf48   :  { %6106 = vmatpush1.bf16.msra.mxu0 %v7502_v27 }
 0xf49   :  { %6108 = vmatprep.subr.bf16.mxu0 %v7506_v53  ;;  %6132 = vmatpush3.bf16.msra.mxu1 %v7613_v15 }
 0xf4a   :  { %6133 = vmatprep.subr.bf16.mxu1 %v8152_v30 }
 0xf4c   :  { %6110 = vmatpush1.bf16.msra.mxu0 %v7513_v56 }
 0xf4d   :  { %6112 = vmatprep.subr.bf16.mxu0 %v7518_v63  ;;  %6135 = vmatpush3.bf16.msra.mxu1 %v7624_v26 }
 0xf4e   :  { %6136 = vmatprep.subr.bf16.mxu1 %v8152_v30 }
 0xf50   :  { %6114 = vmatpush1.bf16.msra.mxu0 %v7525_v50 }
 0xf51   :  { %6140 = vmatprep.subr.bf16.mxu0 %v7434_v54  ;;  %6138 = vmatpush3.bf16.msra.mxu1 %v7634_v29 }
 0xf52   :  { %6172 = vmatprep.subr.bf16.mxu1 %v7436_v18 }
 0xf53   :  { %3716 = vmatmul.mubr.f32.vlgmr.msra.gmra.mrb[50].mxu0 %v3509_v14 }
 0xf54   :  { %6142 = vmatpush1.bf16.msra.mxu0 %v7438_v62  ;;  %3902 = vmatprep.mubr.f32.mxu0 %v8147_v3 }
 0xf55   :  { %6144 = vmatprep.subr.bf16.mxu0 %v7446_v43 }
 0xf58   :  { %6146 = vmatpush1.bf16.msra.mxu0 %v7450_v61 }
 0xf59   :  { %6148 = vmatprep.subr.bf16.mxu0 %v7458_v19 }
 0xf5c   :  { %6150 = vmatpush1.bf16.msra.mxu0 %v7462_v34 }
 0xf5d   :  { %6152 = vmatprep.subr.bf16.mxu0 %v7470_v57 }
 0xf60   :  { %6154 = vmatpush1.bf16.msra.mxu0 %v7474_v11 }
 0xf61   :  { %6156 = vmatprep.subr.bf16.mxu0 %v7482_v40 }
 0xf64   :  { %6158 = vmatpush1.bf16.msra.mxu0 %v7486_v16 }
 0xf65   :  { %6160 = vmatprep.subr.bf16.mxu0 %v7493_v49 }
 0xf68   :  { %6162 = vmatpush1.bf16.msra.mxu0 %v7498_v13 }
 0xf69   :  { %6164 = vmatprep.subr.bf16.mxu0 %v7504_v39 }
 0xf6c   :  { %6166 = vmatpush1.bf16.msra.mxu0 %v7509_v23 }
 0xf6d   :  { %6168 = vmatprep.subr.bf16.mxu0 %v7515_v6 }
 0xf70   :  { %6170 = vmatpush1.bf16.msra.mxu0 %v7521_v17 }
 0xf71   :  { %6203 = vmatprep.subr.bf16.mxu0 %v8152_v30 }
 0xf87   :  { %v4385_v45 = vpop.xlane.xlu0 %4384 }
 0xf88   :  { %v4388_v22 = vsub.f32 %v7920_v41, %v4385_v45 }
 0xf8a   :  { %v4390_v42 = vmul.f32 1.442695, %v4388_v22 }
 0xf8c   :  { %6534 = vpow2.f32 %v4390_v42  ;;  %v3758_v42 = vrot.slane %v7927_v52, 6 }
 0xf96   :  { %v6535_v0 = vpop.eup %6534 }
 0xf97   :  { %4394 = vadd.xlane.f32.xlu0 %v6535_v0 }
0x1006   :  { %v7983_v24 = vpop.f32.mrb[48].mxu0  ;;  %v3646_v37 = vpop.f32.mrb[48].mxu1 }
0x1007   :  { %8162 = vst [vmem:[#allocation10_spill] sm:$0xff] %v7983_v24  ;;  %v4897_v25 = vpop.f32.mrb[49].mxu0  ;;  %v3648_v51 = vpop.f32.mrb[49].mxu1  ;;  %v3726_v9 = vrot.slane %v3646_v37, 6 }
0x1008   :  { %v3727_v21 = vrot.slane %v3648_v51, 6 }
0x1009   :  { %v3734_v47 = vadd.f32 %v3726_v9, %v8159_v46 }
0x100a   :  { %v3735_v5 = vadd.f32 %v3727_v21, %v8157_v12 }
0x100b   :  { %v4472_v32 = vmul.f32 -1.442695, %v3734_v47 }
0x100c   :  { %v4473_v2 = vmul.f32 -1.442695, %v3735_v5 }
0x100e   :  { %6536 = vpow2.f32 %v4473_v2 }
0x100f   :  { %6538 = vpow2.f32 %v4472_v32 }
0x1018   :  { %v6537_v14 = vpop.eup %6536 }
0x1019   :  { %v3747_v41 = vadd.f32 1.0, %v6537_v14  ;;  %v6539_v45 = vpop.eup %6538 }
0x101a   :  { %v3741_v25 = vadd.f32 1.0, %v6539_v45 }
0x101b   :  { %6540 = vrcp.f32 %v3747_v41 }
0x1024   :  { %v4395_v0 = vpop.xlane.xlu0 %4394 }
0x1025   :  { %v6541_v24 = vpop.eup %6540  ;;  %6542 = vlog2.f32 %v4395_v0 }
0x1026   :  { %v3760_v51 = vmul.f32 %v6541_v24, %v3758_v42  ;;  %v3717_v20 = vpop.f32.mrb[50].mxu0  ;;  %6544 = vrcp.f32 %v3741_v25 }
0x1027   :  { %v3728_v21 = vrot.slane %v3717_v20, 6  ;;  %v3719_v5 = vpop.f32.mrb[51].mxu0 }
0x1028   :  { %v3729_v37 = vrot.slane %v3719_v5, 6 }
0x1029   :  { %v3736_v2 = vadd.f32 %v3728_v21, %v8160_v8 }
0x102a   :  { %v3737_v9 = vadd.f32 %v3729_v37, %v8161_v4 }
0x102b   :  { %6546 = vtanh.f32 %v3736_v2 }
0x102c   :  { %v4474_v47 = vmul.f32 -1.442695, %v3737_v9 }
0x102e   :  { %6548 = vpow2.f32 %v4474_v47 }
0x102f   :  { %v6543_v32 = vpop.eup %6542 }
0x1030   :  { %v4399_v14 = vmul.f32 0.6931472, %v6543_v32  ;;  %v6545_v41 = vpop.eup %6544 }
0x1032   :  { %v4402_v52 = vsub.f32 %v4388_v22, %v4399_v14 }
0x1034   :  { %4404 = vst [vmem:[%s8122_s10] sm:$0xff] %v4402_v52 }
0x1035   :  { %v6547_v24 = vpop.eup %6546 }
0x1036   :  { %v3761_v20 = vmul.f32 %v6547_v24, %v6545_v41 }
0x1038   :  { %v6549_v45 = vpop.eup %6548  ;;  %v7993_v42 = vadd.f32 %v3761_v20, %v3760_v51 }
0x1039   :  { %v3754_v0 = vadd.f32 1.0, %v6549_v45 }
0x103a   :  { %6550 = vtanh.f32 %v7993_v42  ;;  %v4016_v2 = vrot.slane %v7993_v42, 6 }
0x103b   :  { %6552 = vrcp.f32 %v3754_v0 }
0x1044   :  { %v6551_v25 = vpop.eup %6550 }
0x1045   :  { %v6553_v21 = vpop.eup %6552 }
0x1046   :  { %v3764_v5 = vmul.f32 %v6553_v21, %v6551_v25 }
0x1048   :  { %v3766_v37 = vrot.slane %v3764_v5, 2 }
0x104a   :  { %4931 = vmatmul.mubr.f32.vlgmr.msra.gmra.mrb[50].mxu1 %v3766_v37  ;;  %3903 = vmatmul.mubr.f32.vlgmr.msra.gmra.mrb[52].mxu0 %v3766_v37 }
0x104b   :  { %6174 = vmatpush1.bf16.msra.mxu1 %v7441_v48  ;;  %3973 = vmatprep.mubr.f32.mxu1 %v8147_v3 }
0x104c   :  { %6176 = vmatprep.subr.bf16.mxu1 %v7448_v38  ;;  %6205 = vmatpush3.bf16.msra.mxu0 %v7561_v58 }
0x104d   :  { %6206 = vmatprep.subr.bf16.mxu0 %v8152_v30  ;;  %4965 = vmatprep.mubr.msk.f32.mxu0 %vm6647_vm5, %v8147_v3 }
0x104f   :  { %6178 = vmatpush1.bf16.msra.mxu1 %v7453_v7 }
0x1050   :  { %6180 = vmatprep.subr.bf16.mxu1 %v7460_v33  ;;  %6208 = vmatpush3.bf16.msra.mxu0 %v7573_v36 }
0x1051   :  { %6209 = vmatprep.subr.bf16.mxu0 %v8152_v30 }
0x1053   :  { %6182 = vmatpush1.bf16.msra.mxu1 %v7465_v44 }
0x1054   :  { %6184 = vmatprep.subr.bf16.mxu1 %v7472_v10  ;;  %6211 = vmatpush3.bf16.msra.mxu0 %v7583_v55 }
0x1055   :  { %6212 = vmatprep.subr.bf16.mxu0 %v8152_v30 }
0x1057   :  { %6186 = vmatpush1.bf16.msra.mxu1 %v7477_v28 }
0x1058   :  { %6188 = vmatprep.subr.bf16.mxu1 %v7484_v60  ;;  %6214 = vmatpush3.bf16.msra.mxu0 %v7593_v59 }
0x1059   :  { %6215 = vmatprep.subr.bf16.mxu0 %v8152_v30 }
0x105b   :  { %6190 = vmatpush1.bf16.msra.mxu1 %v7489_v31 }
0x105c   :  { %6192 = vmatprep.subr.bf16.mxu1 %v7495_v35  ;;  %6217 = vmatpush3.bf16.msra.mxu0 %v7603_v1 }
0x105d   :  { %6218 = vmatprep.subr.bf16.mxu0 %v8152_v30 }
0x105f   :  { %6194 = vmatpush1.bf16.msra.mxu1 %v7502_v27 }
0x1060   :  { %6196 = vmatprep.subr.bf16.mxu1 %v7506_v53  ;;  %6220 = vmatpush3.bf16.msra.mxu0 %v7613_v15 }
0x1061   :  { %6221 = vmatprep.subr.bf16.mxu0 %v8152_v30 }
0x1063   :  { %6198 = vmatpush1.bf16.msra.mxu1 %v7513_v56 }
0x1064   :  { %6200 = vmatprep.subr.bf16.mxu1 %v7518_v63  ;;  %6223 = vmatpush3.bf16.msra.mxu0 %v7624_v26 }
0x1065   :  { %6224 = vmatprep.subr.bf16.mxu0 %v8152_v30 }
0x1067   :  { %6202 = vmatpush1.bf16.msra.mxu1 %v7525_v50 }
0x1068   :  { %6228 = vmatprep.subr.bf16.mxu1 %v7434_v54  ;;  %6226 = vmatpush3.bf16.msra.mxu0 %v7634_v29 }
0x1069   :  { %6260 = vmatprep.subr.bf16.mxu0 %v7436_v18 }
0x106a   :  { %3974 = vmatmul.mubr.f32.vlgmr.msra.gmra.mrb[52].mxu1 %v3766_v37 }
0x106b   :  { %6230 = vmatpush1.bf16.msra.mxu1 %v7438_v62  ;;  %4160 = vmatprep.mubr.f32.mxu1 %v8147_v3  ;;  %v8163_v62 = vld [vmem:[#allocation11_spill] sm:$0xff] }
0x106c   :  { %6232 = vmatprep.subr.bf16.mxu1 %v7446_v43 }
0x106f   :  { %6234 = vmatpush1.bf16.msra.mxu1 %v7450_v61 }
0x1070   :  { %6236 = vmatprep.subr.bf16.mxu1 %v7458_v19 }
0x1073   :  { %6238 = vmatpush1.bf16.msra.mxu1 %v7462_v34 }
0x1074   :  { %6240 = vmatprep.subr.bf16.mxu1 %v7470_v57  ;;  %v8164_v57 = vld [vmem:[#allocation10_spill] sm:$0xff] }
0x1077   :  { %6242 = vmatpush1.bf16.msra.mxu1 %v7474_v11  ;;  %v3577_v11 = vadd.f32 %v8163_v62, %v8164_v57 }
0x1078   :  { %6244 = vmatprep.subr.bf16.mxu1 %v7482_v40 }
0x107b   :  { %6246 = vmatpush1.bf16.msra.mxu1 %v7486_v16 }
0x107c   :  { %6248 = vmatprep.subr.bf16.mxu1 %v7493_v49 }
0x107f   :  { %6250 = vmatpush1.bf16.msra.mxu1 %v7498_v13 }
0x1080   :  { %6252 = vmatprep.subr.bf16.mxu1 %v7504_v39 }
0x1083   :  { %6254 = vmatpush1.bf16.msra.mxu1 %v7509_v23 }
0x1084   :  { %6256 = vmatprep.subr.bf16.mxu1 %v7515_v6 }
0x1087   :  { %6258 = vmatpush1.bf16.msra.mxu1 %v7521_v17 }
0x1088   :  { %6291 = vmatprep.subr.bf16.mxu1 %v8152_v30 }
0x111d   :  { %v3834_v54 = vpop.f32.mrb[50].mxu1  ;;  %v3904_v18 = vpop.f32.mrb[52].mxu0 }
0x111e   :  { %v3835_v43 = vadd.f32 %v8163_v62, %v3834_v54  ;;  %v4932_v61 = vpop.f32.mrb[51].mxu1  ;;  %v3906_v19 = vpop.f32.mrb[53].mxu0  ;;  %v3984_v39 = vrot.slane %v3904_v18, 4 }
0x111f   :  { %v3985_v34 = vrot.slane %v3906_v19, 4 }
0x1120   :  { %v4364_v40 = vrot.slane %v3835_v43, 6  ;;  %v3992_v23 = vadd.f32 %v3984_v39, %v8159_v46 }
0x1121   :  { %v3993_v16 = vadd.f32 %v3985_v34, %v8157_v12 }
0x1122   :  { %v8053_v49 = vsel %vm4372_vm6, %v3577_v11, %v4364_v40  ;;  %v4475_v6 = vmul.f32 -1.442695, %v3992_v23 }
0x1123   :  { %v4476_v13 = vmul.f32 -1.442695, %v3993_v16 }
0x1125   :  { %6554 = vpow2.f32 %v4476_v13 }
0x1126   :  { %6556 = vpow2.f32 %v4475_v6 }
0x112f   :  { %v6555_v17 = vpop.eup %6554 }
0x1130   :  { %v4005_v22 = vadd.f32 1.0, %v6555_v17  ;;  %v6557_v51 = vpop.eup %6556 }
0x1131   :  { %v3999_v47 = vadd.f32 1.0, %v6557_v51 }
0x1132   :  { %6558 = vrcp.f32 %v4005_v22 }
0x1133   :  { %6560 = vrcp.f32 %v3999_v47 }
0x113c   :  { %v6559_v9 = vpop.eup %6558 }
0x113d   :  { %v4018_v32 = vmul.f32 %v6559_v9, %v4016_v2  ;;  %v3975_v14 = vpop.f32.mrb[52].mxu1  ;;  %v6561_v25 = vpop.eup %6560 }
0x113e   :  { %v3986_v52 = vrot.slane %v3975_v14, 4  ;;  %v3977_v41 = vpop.f32.mrb[53].mxu1 }
0x113f   :  { %v3987_v24 = vrot.slane %v3977_v41, 4 }
0x1140   :  { %v3994_v20 = vadd.f32 %v3986_v52, %v8160_v8 }
0x1141   :  { %v3995_v45 = vadd.f32 %v3987_v24, %v8161_v4 }
0x1142   :  { %6562 = vtanh.f32 %v3994_v20 }
0x1143   :  { %v4477_v0 = vmul.f32 -1.442695, %v3995_v45 }
0x1145   :  { %6564 = vpow2.f32 %v4477_v0 }
0x114c   :  { %v6563_v21 = vpop.eup %6562 }
0x114d   :  { %v4019_v5 = vmul.f32 %v6563_v21, %v6561_v25 }
0x114f   :  { %v6565_v37 = vpop.eup %6564  ;;  %v8059_v42 = vadd.f32 %v4019_v5, %v4018_v32 }
0x1150   :  { %v4012_v54 = vadd.f32 1.0, %v6565_v37 }
0x1151   :  { %6566 = vtanh.f32 %v8059_v42 }
0x1152   :  { %6568 = vrcp.f32 %v4012_v54 }
0x115b   :  { %v6567_v18 = vpop.eup %6566 }
0x115c   :  { %v6569_v43 = vpop.eup %6568 }
0x115d   :  { %v4022_v61 = vmul.f32 %v6569_v43, %v6567_v18 }
0x115f   :  { %v4024_v19 = vrot.slane %v4022_v61, 4 }
0x1161   :  { %4966 = vmatmul.mubr.f32.vlgmr.msra.gmra.mrb[54].mxu0 %v4024_v19  ;;  %4161 = vmatmul.mubr.f32.vlgmr.msra.gmra.mrb[54].mxu1 %v4024_v19 }
0x1162   :  { %6262 = vmatpush1.bf16.msra.mxu0 %v7441_v48  ;;  %4231 = vmatprep.mubr.f32.mxu0 %v8147_v3 }
0x1163   :  { %6264 = vmatprep.subr.bf16.mxu0 %v7448_v38  ;;  %6293 = vmatpush3.bf16.msra.mxu1 %v7561_v58  ;;  %v4274_v58 = vrot.slane %v8059_v42, 6 }
0x1164   :  { %6294 = vmatprep.subr.bf16.mxu1 %v8152_v30  ;;  %5000 = vmatprep.mubr.msk.f32.mxu1 %vm6647_vm5, %v8147_v3 }
0x1166   :  { %6266 = vmatpush1.bf16.msra.mxu0 %v7453_v7 }
0x1167   :  { %6268 = vmatprep.subr.bf16.mxu0 %v7460_v33  ;;  %6296 = vmatpush3.bf16.msra.mxu1 %v7573_v36 }
0x1168   :  { %6297 = vmatprep.subr.bf16.mxu1 %v8152_v30 }
0x116a   :  { %6270 = vmatpush1.bf16.msra.mxu0 %v7465_v44 }
0x116b   :  { %6272 = vmatprep.subr.bf16.mxu0 %v7472_v10  ;;  %6299 = vmatpush3.bf16.msra.mxu1 %v7583_v55 }
0x116c   :  { %6300 = vmatprep.subr.bf16.mxu1 %v8152_v30 }
0x116e   :  { %6274 = vmatpush1.bf16.msra.mxu0 %v7477_v28 }
0x116f   :  { %6276 = vmatprep.subr.bf16.mxu0 %v7484_v60  ;;  %6302 = vmatpush3.bf16.msra.mxu1 %v7593_v59 }
0x1170   :  { %6303 = vmatprep.subr.bf16.mxu1 %v8152_v30 }
0x1172   :  { %6278 = vmatpush1.bf16.msra.mxu0 %v7489_v31 }
0x1173   :  { %6280 = vmatprep.subr.bf16.mxu0 %v7495_v35  ;;  %6305 = vmatpush3.bf16.msra.mxu1 %v7603_v1 }
0x1174   :  { %6306 = vmatprep.subr.bf16.mxu1 %v8152_v30 }
0x1176   :  { %6282 = vmatpush1.bf16.msra.mxu0 %v7502_v27 }
0x1177   :  { %6284 = vmatprep.subr.bf16.mxu0 %v7506_v53  ;;  %6308 = vmatpush3.bf16.msra.mxu1 %v7613_v15 }
0x1178   :  { %6309 = vmatprep.subr.bf16.mxu1 %v8152_v30 }
0x117a   :  { %6286 = vmatpush1.bf16.msra.mxu0 %v7513_v56 }
0x117b   :  { %6288 = vmatprep.subr.bf16.mxu0 %v7518_v63  ;;  %6311 = vmatpush3.bf16.msra.mxu1 %v7624_v26 }
0x117c   :  { %6312 = vmatprep.subr.bf16.mxu1 %v8152_v30 }
0x117e   :  { %6290 = vmatpush1.bf16.msra.mxu0 %v7525_v50 }
0x117f   :  { %6314 = vmatpush3.bf16.msra.mxu1 %v7634_v29 }
0x1181   :  { %4232 = vmatmul.mubr.f32.vlgmr.msra.gmra.mrb[56].mxu0 %v4024_v19 }
0x1234   :  { %v4092_v3 = vpop.f32.mrb[54].mxu0  ;;  %v4162_v48 = vpop.f32.mrb[54].mxu1 }
0x1235   :  { %v4093_v38 = vadd.f32 %v8163_v62, %v4092_v3  ;;  %v4967_v7 = vpop.f32.mrb[55].mxu0  ;;  %v4164_v33 = vpop.f32.mrb[55].mxu1  ;;  %v4242_v35 = vrot.slane %v4162_v48, 2 }
0x1236   :  { %v4243_v44 = vrot.slane %v4164_v33, 2 }
0x1237   :  { %v4367_v10 = vrot.slane %v4093_v38, 4  ;;  %v4250_v27 = vadd.f32 %v4242_v35, %v8159_v46 }
0x1238   :  { %v4251_v28 = vadd.f32 %v4243_v44, %v8157_v12 }
0x1239   :  { %v4379_v60 = vsel %vm4374_vm7, %v8053_v49, %v4367_v10  ;;  %v4478_v53 = vmul.f32 -1.442695, %v4250_v27 }
0x123a   :  { %v4479_v31 = vmul.f32 -1.442695, %v4251_v28 }
0x123c   :  { %6570 = vpow2.f32 %v4479_v31 }
0x123d   :  { %6572 = vpow2.f32 %v4478_v53 }
0x1246   :  { %v6571_v56 = vpop.eup %6570 }
0x1247   :  { %v4263_v63 = vadd.f32 1.0, %v6571_v56  ;;  %v6573_v50 = vpop.eup %6572 }
0x1248   :  { %v4257_v55 = vadd.f32 1.0, %v6573_v50 }
0x1249   :  { %6574 = vrcp.f32 %v4263_v63 }
0x124a   :  { %6576 = vrcp.f32 %v4257_v55 }
0x1253   :  { %v6575_v36 = vpop.eup %6574 }
0x1254   :  { %v4276_v59 = vmul.f32 %v6575_v36, %v4274_v58  ;;  %v4233_v1 = vpop.f32.mrb[56].mxu0  ;;  %v6577_v62 = vpop.eup %6576 }
0x1255   :  { %v4244_v15 = vrot.slane %v4233_v1, 2  ;;  %v4235_v26 = vpop.f32.mrb[57].mxu0 }
0x1256   :  { %v4245_v29 = vrot.slane %v4235_v26, 2 }
0x1257   :  { %v4252_v30 = vadd.f32 %v4244_v15, %v8160_v8 }
0x1258   :  { %v4253_v12 = vadd.f32 %v4245_v29, %v8161_v4  ;;  %v6590_v4 = vld [vmem:[%s8121_s9] ss:$0 sm:$0xff] }
0x1259   :  { %6578 = vtanh.f32 %v4252_v30 }
0x125a   :  { %v4480_v46 = vmul.f32 -1.442695, %v4253_v12 }
0x125c   :  { %6580 = vpow2.f32 %v4480_v46 }
0x1263   :  { %v6579_v34 = vpop.eup %6578 }
0x1264   :  { %v4277_v57 = vmul.f32 %v6579_v34, %v6577_v62 }
0x1266   :  { %v6581_v11 = vpop.eup %6580  ;;  %v4278_v40 = vadd.f32 %v4277_v57, %v4276_v59 }
0x1267   :  { %v4270_v16 = vadd.f32 1.0, %v6581_v11 }
0x1268   :  { %6582 = vtanh.f32 %v4278_v40 }
0x1269   :  { %6584 = vrcp.f32 %v4270_v16 }
0x1272   :  { %v6583_v49 = vpop.eup %6582 }
0x1273   :  { %v6585_v13 = vpop.eup %6584 }
0x1274   :  { %v4280_v39 = vmul.f32 %v6585_v13, %v6583_v49 }
0x1276   :  { %v4282_v23 = vrot.slane %v4280_v39, 6 }
0x1278   :  { %5001 = vmatmul.mubr.f32.vlgmr.msra.gmra.mrb[56].mxu1 %v4282_v23 }
0x134b   :  { %v4350_v8 = vpop.f32.mrb[56].mxu1 }
0x134c   :  { %v4351_v6 = vadd.f32 %v6590_v4, %v4350_v8  ;;  %v5002_v17 = vpop.f32.mrb[57].mxu1 }
0x134e   :  { %v4370_v22 = vrot.slane %v4351_v6, 2 }
0x1350   :  { %v4380_v51 = vsel %vm4376_vm8, %v4379_v60, %v4370_v22 }
0x1351   :  { %v4383_v9 = vsel %vm4381_vm9, %v4380_v51, -1e+30 }
0x1352   :  { %4386 = vmax.xlane.f32.xlu1 %v4383_v9 }
0x13df   :  { %v4387_v47 = vpop.xlane.xlu1 %4386 }
0x13e0   :  { %v4389_v32 = vsub.f32 %v4383_v9, %v4387_v47 }
0x13e2   :  { %v4392_v14 = vmul.f32 1.442695, %v4389_v32 }
0x13e4   :  { %6586 = vpow2.f32 %v4392_v14 }
0x13ee   :  { %v6587_v52 = vpop.eup %6586 }
0x13ef   :  { %4396 = vadd.xlane.f32.xlu0 %v6587_v52 }
0x147c   :  { %v4397_v41 = vpop.xlane.xlu0 %4396 }
0x147d   :  { %6588 = vlog2.f32 %v4397_v41 }
0x1487   :  { %v6589_v24 = vpop.eup %6588 }
0x1488   :  { %v4401_v20 = vmul.f32 0.6931472, %v6589_v24 }
0x148a   :  { %v4403_v45 = vsub.f32 %v4389_v32, %v4401_v20 }
0x148c   :  { %4405 = vst [vmem:[%s8122_s10 + $0x8] sm:$0xff] %v4403_v45 }
0x148d   :  { %4410 = vsyncpa [#allocation3], 1 }
0x148e   :  { %4411 = vsyncpa [#allocation5], 1 }

</bundles_post_ra>
